<compile_context>
chip_gen: v7x
topology: tpu7x:2x2x1
jax: 0.10.0
libtpu: 0.0.40
codegen_flags: <defaults>
</compile_context>

<pallas_src>
import numpy as np
import jax
import jax.numpy as jnp
from jax.experimental import pallas as pl
from jax.experimental.pallas import tpu as pltpu

# ----------------------------- hyper / net config -----------------------------
IN_DIM = 4
HIDDEN = 32
OUT_DIM = 1
UPDATE_LR = 0.01
UPDATE_STEP = 5          # -> err has UPDATE_STEP + 1 entries
N_STEPS = UPDATE_STEP + 1
N_STEPS_PAD = 8          # pad the step axis to a full sublane for one dense store

F32 = jnp.float32


# --------------------------- in-kernel math helpers ---------------------------
def _fwd2(x, w1, b1, w2, b2, w3, b3):
    """MLP forward on 2-D activations (rows = task*set). Weights are (in, out)."""
    z1 = jnp.dot(x, w1, preferred_element_type=F32) + b1
    a1 = jnp.maximum(z1, 0.0)
    z2 = jnp.dot(a1, w2, preferred_element_type=F32) + b2
    a2 = jnp.maximum(z2, 0.0)
    z3 = jnp.dot(a2, w3, preferred_element_type=F32) + b3
    return z1, a1, z2, a2, z3


def _fwd3(x, w1, b1, w2, b2, w3, b3):
    """Per-task MLP forward. x:(T,S,I); weights:(T,in,out); biases broadcastable."""
    z1 = jnp.einsum('tsi,tih->tsh', x, w1, preferred_element_type=F32) + b1
    a1 = jnp.maximum(z1, 0.0)
    z2 = jnp.einsum('tsh,thg->tsg', a1, w2, preferred_element_type=F32) + b2
    a2 = jnp.maximum(z2, 0.0)
    z3 = jnp.einsum('tsg,tgo->tso', a2, w3, preferred_element_type=F32) + b3
    return z1, a1, z2, a2, z3


def _sq_mean(pred, y):
    """Per-task mean squared error (== F.mse_loss per task) -> (T, 1)."""
    T, Q, O = pred.shape
    d = pred - y
    s = jnp.sum(jnp.sum(d * d, axis=2, keepdims=True), axis=1, keepdims=True)
    return s.reshape(T, 1) * (1.0 / float(Q * O))


def _weight_grads(x, dz1, a1, dz2, a2, dlog):
    """Per-task parameter gradients; contractions run over the sample axis 's'
    directly (no explicit swapaxes -> no materialized per-task transposes)."""
    dw3 = jnp.einsum('tsg,tso->tgo', a2, dlog, preferred_element_type=F32)
    db3 = jnp.sum(dlog, axis=1, keepdims=True)
    dw2 = jnp.einsum('tsh,tsg->thg', a1, dz2, preferred_element_type=F32)
    db2 = jnp.sum(dz2, axis=1, keepdims=True)
    dw1 = jnp.einsum('tsi,tsh->tih', x, dz1, preferred_element_type=F32)
    db1 = jnp.sum(dz1, axis=1, keepdims=True)
    return dw1, db1, dw2, db2, dw3, db3


def _grads_shared(x, y, theta):
    """Backprop through the shared (un-adapted) theta. The data path runs as
    dense (T*S, .) 2-D matmuls; weight gradients stay per-task."""
    w1, b1, w2, b2, w3, b3 = theta
    T, S, I = x.shape
    O = y.shape[2]
    x2 = x.reshape(T * S, I)
    z1, a1, z2, a2, logits = _fwd2(x2, w1, b1, w2, b2, w3, b3)
    dlog = (2.0 / float(S * O)) * (logits - y.reshape(T * S, O))        # (TS,O)
    da2 = jnp.einsum('no,go->ng', dlog, w3, preferred_element_type=F32)  # (TS,H)
    dz2 = jnp.where(z2 > 0.0, da2, 0.0)
    da1 = jnp.einsum('ng,hg->nh', dz2, w2, preferred_element_type=F32)   # (TS,H)
    dz1 = jnp.where(z1 > 0.0, da1, 0.0)
    H = a1.shape[1]
    return _weight_grads(x,
                         dz1.reshape(T, S, H), a1.reshape(T, S, H),
                         dz2.reshape(T, S, H), a2.reshape(T, S, H),
                         dlog.reshape(T, S, O))


def _grads_fast(x, y, fast):
    """Backprop through per-task fast weights (batched over the task axis)."""
    w1, b1, w2, b2, w3, b3 = fast
    S, O = x.shape[1], y.shape[2]
    z1, a1, z2, a2, logits = _fwd3(x, w1, b1, w2, b2, w3, b3)
    dlog = (2.0 / float(S * O)) * (logits - y)                           # (T,S,O)
    da2 = jnp.einsum('tso,tgo->tsg', dlog, w3, preferred_element_type=F32)
    dz2 = jnp.where(z2 > 0.0, da2, 0.0)
    da1 = jnp.einsum('tsg,thg->tsh', dz2, w2, preferred_element_type=F32)
    dz1 = jnp.where(z1 > 0.0, da1, 0.0)
    return _weight_grads(x, dz1, a1, dz2, a2, dlog)


# ----------------------------------- kernel -----------------------------------
def maml_kernel(xs_ref, ys_ref, xq_ref, yq_ref,
                w1_ref, b1_ref, w2_ref, b2_ref, w3_ref, b3_ref,
                err_ref):
    xs = xs_ref[...]           # (T, setsz, IN_DIM)
    ys = ys_ref[...]           # (T, setsz, OUT_DIM)
    xq = xq_ref[...]           # (T, querysz, IN_DIM)
    yq = yq_ref[...]           # (T, querysz, OUT_DIM)
    T, Q, _ = xq.shape

    theta = (w1_ref[...], b1_ref[...], w2_ref[...],
             b2_ref[...], w3_ref[...], b3_ref[...])

    losses = []

    # step 0: query loss under the shared meta parameters — one dense chain
    # over all T*Q rows (fills sublanes instead of T separate tiny matmuls).
    logits0 = _fwd2(xq.reshape(T * Q, -1), *theta)[-1].reshape(T, Q, OUT_DIM)
    losses.append(_sq_mean(logits0, yq))

    # first inner SGD step (shared theta -> per-task fast weights); implicit
    # broadcasting instead of materialized jnp.broadcast_to of theta.
    g = _grads_shared(xs, ys, theta)
    fast = tuple(p[None] - UPDATE_LR * gp for p, gp in zip(theta, g))
    losses.append(_sq_mean(_fwd3(xq, *fast)[-1], yq))

    # remaining inner steps: T independent chains batched over the task axis
    # (UPDATE_STEP is a small static constant -> unrolled).
    for _ in range(1, UPDATE_STEP):
        g = _grads_fast(xs, ys, fast)
        fast = tuple(p - UPDATE_LR * gp for p, gp in zip(fast, g))
        losses.append(_sq_mean(_fwd3(xq, *fast)[-1], yq))

    # Pad the step axis 6 -> 8 and write the whole block with ONE store.
    losses.append(jnp.zeros((T, N_STEPS_PAD - N_STEPS), dtype=F32))
    err_ref[...] = jnp.concatenate(losses, axis=1)


# ----------------------------------- wrapper -----------------------------------
def maml_forward(x_spt, y_spt, x_qry, y_qry, params, *, task_block=None):
    """err[k] = sum_i mse(query_i, fast_weights_i^(k)) / (querysz * task_num),
    matching MAML.forward's returned `err` (meta Adam step omitted)."""
    task_num, setsz, in_dim = x_spt.shape
    querysz = x_qry.shape[1]
    w1, b1, w2, b2, w3, b3 = params

    # PyTorch (out, in) weights -> (in, out) once, outside the kernel: removes
    # every per-step transpose from the kernel's serial critical path.
    w1t, w2t, w3t = w1.T, w2.T, w3.T
    b1r, b2r, b3r = b1.reshape(1, -1), b2.reshape(1, -1), b3.reshape(1, -1)

    # Task-block sizing: tiny task counts run as one block; otherwise use >= 2
    # blocks (both v7x TensorCores get work), each a multiple of 8 sublanes,
    # capped at 64 to avoid vreg spills in the unrolled 5-step inner chain.
    if task_block is None:
        if task_num <= 8:
            task_block = task_num
        else:
            half = -(-task_num // 2)                  # ceil(task_num / 2)
            task_block = min(64, ((half + 7) // 8) * 8)

    n_blocks = -(-task_num // task_block)
    padded = n_blocks * task_block
    if padded != task_num:
        pad = ((0, padded - task_num), (0, 0), (0, 0))
        x_spt, y_spt = jnp.pad(x_spt, pad), jnp.pad(y_spt, pad)
        x_qry, y_qry = jnp.pad(x_qry, pad), jnp.pad(y_qry, pad)

    full = lambda a: pl.BlockSpec(a.shape, lambda i: (0, 0))

    # Cheap scheduler hint: kernel is latency-bound, not byte-bound.
    flops_per_row = 2 * (in_dim * HIDDEN + HIDDEN * HIDDEN + HIDDEN * OUT_DIM)
    rows = task_num * (UPDATE_STEP * (3 * setsz + querysz) + querysz)
    bytes_accessed = 4 * int(x_spt.size + y_spt.size + x_qry.size + y_qry.size
                             + sum(int(p.size) for p in params)
                             + padded * N_STEPS_PAD)

    err_per_task = pl.pallas_call(
        maml_kernel,
        out_shape=jax.ShapeDtypeStruct((padded, N_STEPS_PAD), F32),
        grid=(n_blocks,),
        in_specs=[
            pl.BlockSpec((task_block, setsz, in_dim),    lambda i: (i, 0, 0)),
            pl.BlockSpec((task_block, setsz, OUT_DIM),   lambda i: (i, 0, 0)),
            pl.BlockSpec((task_block, querysz, in_dim),  lambda i: (i, 0, 0)),
            pl.BlockSpec((task_block, querysz, OUT_DIM), lambda i: (i, 0, 0)),
            full(w1t), full(b1r), full(w2t), full(b2r), full(w3t), full(b3r),
        ],
        out_specs=pl.BlockSpec((task_block, N_STEPS_PAD), lambda i: (i, 0)),
        compiler_params=pltpu.CompilerParams(
            dimension_semantics=("parallel",)),   # distinct output block per i
        cost_estimate=pl.CostEstimate(flops=int(flops_per_row * rows),
                                      transcendentals=0,
                                      bytes_accessed=bytes_accessed),
    )(x_spt, y_spt, x_qry, y_qry, w1t, b1r, w2t, b2r, w3t, b3r)

    # Reference: error[k] += per-task mean loss; err = error / (querysz*task_num).
    err = jnp.sum(err_per_task[:task_num, :N_STEPS], axis=0) / float(querysz * task_num)
    return err


# ------------------------------- init / reference ------------------------------
def kaiming_normal(key, shape):
    # torch.nn.init.kaiming_normal_ default: fan_in mode, gain = sqrt(2).
    fan_in = shape[1]
    return jax.random.normal(key, shape, dtype=F32) * np.sqrt(2.0 / fan_in)


def init_params(key):
    k1, k2, k3 = jax.random.split(key, 3)
    return (kaiming_normal(k1, (HIDDEN, IN_DIM)), jnp.zeros((HIDDEN,), F32),
            kaiming_normal(k2, (HIDDEN, HIDDEN)), jnp.zeros((HIDDEN,), F32),
            kaiming_normal(k3, (OUT_DIM, HIDDEN)), jnp.zeros((OUT_DIM,), F32))


def _ref_forward(x_spt, y_spt, x_qry, y_qry, params):
    """Pure-JAX reference of MAML.forward's returned err (autodiff inner grads)."""
    def net(x, p):
        w1, b1, w2, b2, w3, b3 = p
        h = jnp.maximum(x @ w1.T + b1, 0.0)
        h = jnp.maximum(h @ w2.T + b2, 0.0)
        return h @ w3.T + b3

    mse = lambda pred, y: jnp.mean((pred - y) ** 2)
    task_num, querysz = x_spt.shape[0], x_qry.shape[1]
    err = np.zeros(N_STEPS, dtype=np.float64)
    for i in range(task_num):
        xs_i, ys_i, xq_i, yq_i = x_spt[i], y_spt[i], x_qry[i], y_qry[i]
        loss_fn = lambda p: mse(net(xs_i, p), ys_i)
        p = tuple(params)
        err[0] += float(mse(net(xq_i, p), yq_i))
        for k in range(UPDATE_STEP):
            g = jax.grad(loss_fn)(p)
            p = tuple(pi - UPDATE_LR * gi for pi, gi in zip(p, g))
            err[k + 1] += float(mse(net(xq_i, p), yq_i))
    return err / (querysz * task_num)


if __name__ == "__main__":
    key = jax.random.PRNGKey(0)
    kp, kxs, kys, kxq, kyq, kbig = jax.random.split(key, 6)

    task_num, setsz, querysz = 2, 8, 8
    params = init_params(kp)

    x_spt = jax.random.normal(kxs, (task_num, setsz, IN_DIM), dtype=F32)
    y_spt = jax.random.normal(kys, (task_num, setsz, OUT_DIM), dtype=F32)
    x_qry = jax.random.normal(kxq, (task_num, querysz, IN_DIM), dtype=F32)
    y_qry = jax.random.normal(kyq, (task_num, querysz, OUT_DIM), dtype=F32)

    err = maml_forward(x_spt, y_spt, x_qry, y_qry, params)
    err = jax.block_until_ready(err)

    # Host-side cast to match the reference's np.float64 return (compute was f32).
    err_np = np.asarray(err, dtype=np.float64)
    assert err_np.shape == (N_STEPS,)
    assert np.all(np.isfinite(err_np))

    # Cross-check against a pure-JAX (autodiff) reference of the same math.
    ref = _ref_forward(x_spt, y_spt, x_qry, y_qry, params)
    np.testing.assert_allclose(err_np, ref, rtol=2e-3, atol=1e-5)

    # Exercise the multi-block (>=2 grid blocks, padded-task) path once.
    k1, k2, k3, k4 = jax.random.split(kbig, 4)
    t2 = 20
    xs2 = jax.random.normal(k1, (t2, setsz, IN_DIM), dtype=F32)
    ys2 = jax.random.normal(k2, (t2, setsz, OUT_DIM), dtype=F32)
    xq2 = jax.random.normal(k3, (t2, querysz, IN_DIM), dtype=F32)
    yq2 = jax.random.normal(k4, (t2, querysz, OUT_DIM), dtype=F32)
    err2 = jax.block_until_ready(maml_forward(xs2, ys2, xq2, yq2, params))
    assert np.asarray(err2).shape == (N_STEPS,)
    assert np.all(np.isfinite(np.asarray(err2)))

    print("KERNEL_OK")
</pallas_src>

<mosaic_0001>
module attributes {stable_mosaic.version = 11 : i64} {
  func.func @maml_kernel(%arg0: i32, %arg1: memref<2x8x4xf32, #tpu.memory_space<vmem>>, %arg2: memref<2x8x1xf32, #tpu.memory_space<vmem>>, %arg3: memref<2x8x4xf32, #tpu.memory_space<vmem>>, %arg4: memref<2x8x1xf32, #tpu.memory_space<vmem>>, %arg5: memref<4x32xf32, #tpu.memory_space<vmem>>, %arg6: memref<1x32xf32, #tpu.memory_space<vmem>>, %arg7: memref<32x32xf32, #tpu.memory_space<vmem>>, %arg8: memref<1x32xf32, #tpu.memory_space<vmem>>, %arg9: memref<32x1xf32, #tpu.memory_space<vmem>>, %arg10: memref<1x1xf32, #tpu.memory_space<vmem>>, %arg11: memref<2x8xf32, #tpu.memory_space<vmem>>) attributes {dimension_semantics = [#tpu.dimension_semantics<parallel>], iteration_bounds = array<i64: 1>, scalar_prefetch = 0 : i64, scratch_operands = 0 : i64, tpu.core_type = #tpu.core_type<tc>, window_params = [{transform_indices = @transform_0, window_bounds = array<i64: 2, 8, 4>}, {transform_indices = @transform_1, window_bounds = array<i64: 2, 8, 1>}, {transform_indices = @transform_2, window_bounds = array<i64: 2, 8, 4>}, {transform_indices = @transform_3, window_bounds = array<i64: 2, 8, 1>}, {pipeline_mode = #tpu.pipeline_mode<synchronous>, transform_indices = @transform_4, window_bounds = array<i64: 4, 32>}, {pipeline_mode = #tpu.pipeline_mode<synchronous>, transform_indices = @transform_5, window_bounds = array<i64: 1, 32>}, {pipeline_mode = #tpu.pipeline_mode<synchronous>, transform_indices = @transform_6, window_bounds = array<i64: 32, 32>}, {pipeline_mode = #tpu.pipeline_mode<synchronous>, transform_indices = @transform_7, window_bounds = array<i64: 1, 32>}, {pipeline_mode = #tpu.pipeline_mode<synchronous>, transform_indices = @transform_8, window_bounds = array<i64: 32, 1>}, {pipeline_mode = #tpu.pipeline_mode<synchronous>, transform_indices = @transform_9, window_bounds = array<i64: 1, 1>}, {transform_indices = @transform_10, window_bounds = array<i64: 2, 8>}]} {
    %c0 = arith.constant 0 : index
    %c0_0 = arith.constant 0 : index
    %c0_1 = arith.constant 0 : index
    %0 = vector.load %arg1[%c0, %c0_0, %c0_1] : memref<2x8x4xf32, #tpu.memory_space<vmem>>, vector<2x8x4xf32>
    %c0_2 = arith.constant 0 : index
    %c0_3 = arith.constant 0 : index
    %c0_4 = arith.constant 0 : index
    %1 = vector.load %arg2[%c0_2, %c0_3, %c0_4] : memref<2x8x1xf32, #tpu.memory_space<vmem>>, vector<2x8x1xf32>
    %c0_5 = arith.constant 0 : index
    %c0_6 = arith.constant 0 : index
    %c0_7 = arith.constant 0 : index
    %2 = vector.load %arg3[%c0_5, %c0_6, %c0_7] : memref<2x8x4xf32, #tpu.memory_space<vmem>>, vector<2x8x4xf32>
    %c0_8 = arith.constant 0 : index
    %c0_9 = arith.constant 0 : index
    %c0_10 = arith.constant 0 : index
    %3 = vector.load %arg4[%c0_8, %c0_9, %c0_10] : memref<2x8x1xf32, #tpu.memory_space<vmem>>, vector<2x8x1xf32>
    %c0_11 = arith.constant 0 : index
    %c0_12 = arith.constant 0 : index
    %4 = vector.load %arg5[%c0_11, %c0_12] : memref<4x32xf32, #tpu.memory_space<vmem>>, vector<4x32xf32>
    %c0_13 = arith.constant 0 : index
    %c0_14 = arith.constant 0 : index
    %5 = vector.load %arg6[%c0_13, %c0_14] : memref<1x32xf32, #tpu.memory_space<vmem>>, vector<1x32xf32>
    %c0_15 = arith.constant 0 : index
    %c0_16 = arith.constant 0 : index
    %6 = vector.load %arg7[%c0_15, %c0_16] : memref<32x32xf32, #tpu.memory_space<vmem>>, vector<32x32xf32>
    %c0_17 = arith.constant 0 : index
    %c0_18 = arith.constant 0 : index
    %7 = vector.load %arg8[%c0_17, %c0_18] : memref<1x32xf32, #tpu.memory_space<vmem>>, vector<1x32xf32>
    %c0_19 = arith.constant 0 : index
    %c0_20 = arith.constant 0 : index
    %8 = vector.load %arg9[%c0_19, %c0_20] : memref<32x1xf32, #tpu.memory_space<vmem>>, vector<32x1xf32>
    %c0_21 = arith.constant 0 : index
    %c0_22 = arith.constant 0 : index
    %9 = vector.load %arg10[%c0_21, %c0_22] : memref<1x1xf32, #tpu.memory_space<vmem>>, vector<1x1xf32>
    %10 = vector.shape_cast %2 : vector<2x8x4xf32> to vector<16x4xf32>
    %cst = arith.constant dense<0.000000e+00> : vector<16x32xf32>
    %11 = tpu.matmul %10, %4, %cst {dimension_numbers = #tpu.dot_dimension_numbers<[1], [0], [0], [1], [0, 0, 1, 1], [], []>} : vector<16x4xf32>, vector<4x32xf32>, vector<16x32xf32> -> vector<16x32xf32>
    %12 = vector.broadcast %5 : vector<1x32xf32> to vector<16x32xf32>
    %13 = arith.addf %11, %12 : vector<16x32xf32>
    %cst_23 = arith.constant 0.000000e+00 : f32
    %14 = vector.broadcast %cst_23 : f32 to vector<16x32xf32>
    %15 = arith.maximumf %13, %14 : vector<16x32xf32>
    %cst_24 = arith.constant dense<0.000000e+00> : vector<16x32xf32>
    %16 = tpu.matmul %15, %6, %cst_24 {dimension_numbers = #tpu.dot_dimension_numbers<[1], [0], [0], [1], [0, 0, 1, 1], [], []>} : vector<16x32xf32>, vector<32x32xf32>, vector<16x32xf32> -> vector<16x32xf32>
    %17 = vector.broadcast %7 : vector<1x32xf32> to vector<16x32xf32>
    %18 = arith.addf %16, %17 : vector<16x32xf32>
    %cst_25 = arith.constant 0.000000e+00 : f32
    %19 = vector.broadcast %cst_25 : f32 to vector<16x32xf32>
    %20 = arith.maximumf %18, %19 : vector<16x32xf32>
    %cst_26 = arith.constant dense<0.000000e+00> : vector<16x1xf32>
    %21 = tpu.matmul %20, %8, %cst_26 {dimension_numbers = #tpu.dot_dimension_numbers<[1], [0], [0], [1], [0, 0, 1, 1], [], []>} : vector<16x32xf32>, vector<32x1xf32>, vector<16x1xf32> -> vector<16x1xf32>
    %22 = vector.broadcast %9 : vector<1x1xf32> to vector<16x1xf32>
    %23 = arith.addf %21, %22 : vector<16x1xf32>
    %24 = vector.shape_cast %23 : vector<16x1xf32> to vector<2x8x1xf32>
    %25 = arith.subf %24, %3 : vector<2x8x1xf32>
    %26 = arith.mulf %25, %25 : vector<2x8x1xf32>
    %cst_27 = arith.constant dense<0.000000e+00> : vector<2x8xf32>
    %27 = vector.multi_reduction <add>, %26, %cst_27 [2] : vector<2x8x1xf32> to vector<2x8xf32>
    %28 = vector.shape_cast %27 : vector<2x8xf32> to vector<2x8x1xf32>
    %cst_28 = arith.constant dense<0.000000e+00> : vector<2x1xf32>
    %29 = vector.multi_reduction <add>, %28, %cst_28 [1] : vector<2x8x1xf32> to vector<2x1xf32>
    %30 = vector.shape_cast %29 : vector<2x1xf32> to vector<2x1x1xf32>
    %31 = vector.shape_cast %30 : vector<2x1x1xf32> to vector<2x1xf32>
    %cst_29 = arith.constant 1.250000e-01 : f32
    %32 = vector.broadcast %cst_29 : f32 to vector<2x1xf32>
    %33 = arith.mulf %31, %32 : vector<2x1xf32>
    %34 = vector.shape_cast %0 : vector<2x8x4xf32> to vector<16x4xf32>
    %cst_30 = arith.constant dense<0.000000e+00> : vector<16x32xf32>
    %35 = tpu.matmul %34, %4, %cst_30 {dimension_numbers = #tpu.dot_dimension_numbers<[1], [0], [0], [1], [0, 0, 1, 1], [], []>} : vector<16x4xf32>, vector<4x32xf32>, vector<16x32xf32> -> vector<16x32xf32>
    %36 = vector.broadcast %5 : vector<1x32xf32> to vector<16x32xf32>
    %37 = arith.addf %35, %36 : vector<16x32xf32>
    %cst_31 = arith.constant 0.000000e+00 : f32
    %38 = vector.broadcast %cst_31 : f32 to vector<16x32xf32>
    %39 = arith.maximumf %37, %38 : vector<16x32xf32>
    %cst_32 = arith.constant dense<0.000000e+00> : vector<16x32xf32>
    %40 = tpu.matmul %39, %6, %cst_32 {dimension_numbers = #tpu.dot_dimension_numbers<[1], [0], [0], [1], [0, 0, 1, 1], [], []>} : vector<16x32xf32>, vector<32x32xf32>, vector<16x32xf32> -> vector<16x32xf32>
    %41 = vector.broadcast %7 : vector<1x32xf32> to vector<16x32xf32>
    %42 = arith.addf %40, %41 : vector<16x32xf32>
    %cst_33 = arith.constant 0.000000e+00 : f32
    %43 = vector.broadcast %cst_33 : f32 to vector<16x32xf32>
    %44 = arith.maximumf %42, %43 : vector<16x32xf32>
    %cst_34 = arith.constant dense<0.000000e+00> : vector<16x1xf32>
    %45 = tpu.matmul %44, %8, %cst_34 {dimension_numbers = #tpu.dot_dimension_numbers<[1], [0], [0], [1], [0, 0, 1, 1], [], []>} : vector<16x32xf32>, vector<32x1xf32>, vector<16x1xf32> -> vector<16x1xf32>
    %46 = vector.broadcast %9 : vector<1x1xf32> to vector<16x1xf32>
    %47 = arith.addf %45, %46 : vector<16x1xf32>
    %48 = vector.shape_cast %1 : vector<2x8x1xf32> to vector<16x1xf32>
    %49 = arith.subf %47, %48 : vector<16x1xf32>
    %cst_35 = arith.constant 2.500000e-01 : f32
    %50 = vector.broadcast %cst_35 : f32 to vector<16x1xf32>
    %51 = arith.mulf %50, %49 : vector<16x1xf32>
    "tpu.trace_start"() <{level = 10 : i32, message = "no,go->ng"}> : () -> ()
    %cst_36 = arith.constant dense<0.000000e+00> : vector<16x32xf32>
    %52 = tpu.matmul %51, %8, %cst_36 {dimension_numbers = #tpu.dot_dimension_numbers<[1], [1], [0], [0], [0, 0, 1, 0], [], []>} : vector<16x1xf32>, vector<32x1xf32>, vector<16x32xf32> -> vector<16x32xf32>
    %cst_37 = arith.constant 0.000000e+00 : f32
    "tpu.trace_stop"() : () -> ()
    %53 = vector.broadcast %cst_37 : f32 to vector<16x32xf32>
    %54 = arith.cmpf ogt, %42, %53 : vector<16x32xf32>
    %cst_38 = arith.constant 0.000000e+00 : f32
    %55 = vector.broadcast %cst_38 : f32 to vector<16x32xf32>
    %56 = arith.select %54, %52, %55 : vector<16x32xi1>, vector<16x32xf32>
    "tpu.trace_start"() <{level = 10 : i32, message = "ng,hg->nh"}> : () -> ()
    %cst_39 = arith.constant dense<0.000000e+00> : vector<16x32xf32>
    %57 = tpu.matmul %56, %6, %cst_39 {dimension_numbers = #tpu.dot_dimension_numbers<[1], [1], [0], [0], [0, 0, 1, 0], [], []>} : vector<16x32xf32>, vector<32x32xf32>, vector<16x32xf32> -> vector<16x32xf32>
    %cst_40 = arith.constant 0.000000e+00 : f32
    "tpu.trace_stop"() : () -> ()
    %58 = vector.broadcast %cst_40 : f32 to vector<16x32xf32>
    %59 = arith.cmpf ogt, %37, %58 : vector<16x32xf32>
    %cst_41 = arith.constant 0.000000e+00 : f32
    %60 = vector.broadcast %cst_41 : f32 to vector<16x32xf32>
    %61 = arith.select %59, %57, %60 : vector<16x32xi1>, vector<16x32xf32>
    %62 = vector.shape_cast %61 : vector<16x32xf32> to vector<2x8x32xf32>
    %63 = vector.shape_cast %39 : vector<16x32xf32> to vector<2x8x32xf32>
    %64 = vector.shape_cast %56 : vector<16x32xf32> to vector<2x8x32xf32>
    %65 = vector.shape_cast %44 : vector<16x32xf32> to vector<2x8x32xf32>
    %66 = vector.shape_cast %51 : vector<16x1xf32> to vector<2x8x1xf32>
    "tpu.trace_start"() <{level = 10 : i32, message = "tsg,tso->tgo"}> : () -> ()
    %cst_42 = arith.constant dense<0.000000e+00> : vector<2x32x1xf32>
    %67 = tpu.matmul %65, %66, %cst_42 {dimension_numbers = #tpu.dot_dimension_numbers<[1], [1], [2], [2], [0, 0, 0, 2, 1, 2], [0], [0]>} : vector<2x8x32xf32>, vector<2x8x1xf32>, vector<2x32x1xf32> -> vector<2x32x1xf32>
    "tpu.trace_stop"() : () -> ()
    %cst_43 = arith.constant dense<0.000000e+00> : vector<2x1xf32>
    %68 = vector.multi_reduction <add>, %66, %cst_43 [1] : vector<2x8x1xf32> to vector<2x1xf32>
    %69 = vector.shape_cast %68 : vector<2x1xf32> to vector<2x1x1xf32>
    "tpu.trace_start"() <{level = 10 : i32, message = "tsh,tsg->thg"}> : () -> ()
    %cst_44 = arith.constant dense<0.000000e+00> : vector<2x32x32xf32>
    %70 = tpu.matmul %63, %64, %cst_44 {dimension_numbers = #tpu.dot_dimension_numbers<[1], [1], [2], [2], [0, 0, 0, 2, 1, 2], [0], [0]>} : vector<2x8x32xf32>, vector<2x8x32xf32>, vector<2x32x32xf32> -> vector<2x32x32xf32>
    "tpu.trace_stop"() : () -> ()
    %cst_45 = arith.constant dense<0.000000e+00> : vector<2x32xf32>
    %71 = vector.multi_reduction <add>, %64, %cst_45 [1] : vector<2x8x32xf32> to vector<2x32xf32>
    %72 = vector.shape_cast %71 : vector<2x32xf32> to vector<2x1x32xf32>
    "tpu.trace_start"() <{level = 10 : i32, message = "tsi,tsh->tih"}> : () -> ()
    %cst_46 = arith.constant dense<0.000000e+00> : vector<2x4x32xf32>
    %73 = tpu.matmul %0, %62, %cst_46 {dimension_numbers = #tpu.dot_dimension_numbers<[1], [1], [2], [2], [0, 0, 0, 2, 1, 2], [0], [0]>} : vector<2x8x4xf32>, vector<2x8x32xf32>, vector<2x4x32xf32> -> vector<2x4x32xf32>
    "tpu.trace_stop"() : () -> ()
    %cst_47 = arith.constant dense<0.000000e+00> : vector<2x32xf32>
    %74 = vector.multi_reduction <add>, %62, %cst_47 [1] : vector<2x8x32xf32> to vector<2x32xf32>
    %75 = vector.shape_cast %74 : vector<2x32xf32> to vector<2x1x32xf32>
    %76 = vector.shape_cast %4 : vector<4x32xf32> to vector<1x4x32xf32>
    %cst_48 = arith.constant 0.00999999977 : f32
    %77 = vector.broadcast %cst_48 : f32 to vector<2x4x32xf32>
    %78 = arith.mulf %77, %73 : vector<2x4x32xf32>
    %79 = vector.broadcast %76 : vector<1x4x32xf32> to vector<2x4x32xf32>
    %80 = arith.subf %79, %78 : vector<2x4x32xf32>
    %81 = vector.shape_cast %5 : vector<1x32xf32> to vector<1x1x32xf32>
    %cst_49 = arith.constant 0.00999999977 : f32
    %82 = vector.broadcast %cst_49 : f32 to vector<2x1x32xf32>
    %83 = arith.mulf %82, %75 : vector<2x1x32xf32>
    %84 = vector.broadcast %81 : vector<1x1x32xf32> to vector<2x1x32xf32>
    %85 = arith.subf %84, %83 : vector<2x1x32xf32>
    %86 = vector.shape_cast %6 : vector<32x32xf32> to vector<1x32x32xf32>
    %cst_50 = arith.constant 0.00999999977 : f32
    %87 = vector.broadcast %cst_50 : f32 to vector<2x32x32xf32>
    %88 = arith.mulf %87, %70 : vector<2x32x32xf32>
    %89 = vector.broadcast %86 : vector<1x32x32xf32> to vector<2x32x32xf32>
    %90 = arith.subf %89, %88 : vector<2x32x32xf32>
    %91 = vector.shape_cast %7 : vector<1x32xf32> to vector<1x1x32xf32>
    %cst_51 = arith.constant 0.00999999977 : f32
    %92 = vector.broadcast %cst_51 : f32 to vector<2x1x32xf32>
    %93 = arith.mulf %92, %72 : vector<2x1x32xf32>
    %94 = vector.broadcast %91 : vector<1x1x32xf32> to vector<2x1x32xf32>
    %95 = arith.subf %94, %93 : vector<2x1x32xf32>
    %96 = vector.shape_cast %8 : vector<32x1xf32> to vector<1x32x1xf32>
    %cst_52 = arith.constant 0.00999999977 : f32
    %97 = vector.broadcast %cst_52 : f32 to vector<2x32x1xf32>
    %98 = arith.mulf %97, %67 : vector<2x32x1xf32>
    %99 = vector.broadcast %96 : vector<1x32x1xf32> to vector<2x32x1xf32>
    %100 = arith.subf %99, %98 : vector<2x32x1xf32>
    %101 = vector.shape_cast %9 : vector<1x1xf32> to vector<1x1x1xf32>
    %cst_53 = arith.constant 0.00999999977 : f32
    %102 = vector.broadcast %cst_53 : f32 to vector<2x1x1xf32>
    %103 = arith.mulf %102, %69 : vector<2x1x1xf32>
    %104 = vector.broadcast %101 : vector<1x1x1xf32> to vector<2x1x1xf32>
    %105 = arith.subf %104, %103 : vector<2x1x1xf32>
    "tpu.trace_start"() <{level = 10 : i32, message = "tsi,tih->tsh"}> : () -> ()
    %cst_54 = arith.constant dense<0.000000e+00> : vector<2x8x32xf32>
    %106 = tpu.matmul %2, %80, %cst_54 {dimension_numbers = #tpu.dot_dimension_numbers<[2], [1], [1], [2], [0, 0, 0, 1, 1, 2], [0], [0]>} : vector<2x8x4xf32>, vector<2x4x32xf32>, vector<2x8x32xf32> -> vector<2x8x32xf32>
    "tpu.trace_stop"() : () -> ()
    %107 = vector.broadcast %85 : vector<2x1x32xf32> to vector<2x8x32xf32>
    %108 = arith.addf %106, %107 : vector<2x8x32xf32>
    %cst_55 = arith.constant 0.000000e+00 : f32
    %109 = vector.broadcast %cst_55 : f32 to vector<2x8x32xf32>
    %110 = arith.maximumf %108, %109 : vector<2x8x32xf32>
    "tpu.trace_start"() <{level = 10 : i32, message = "tsh,thg->tsg"}> : () -> ()
    %cst_56 = arith.constant dense<0.000000e+00> : vector<2x8x32xf32>
    %111 = tpu.matmul %110, %90, %cst_56 {dimension_numbers = #tpu.dot_dimension_numbers<[2], [1], [1], [2], [0, 0, 0, 1, 1, 2], [0], [0]>} : vector<2x8x32xf32>, vector<2x32x32xf32>, vector<2x8x32xf32> -> vector<2x8x32xf32>
    "tpu.trace_stop"() : () -> ()
    %112 = vector.broadcast %95 : vector<2x1x32xf32> to vector<2x8x32xf32>
    %113 = arith.addf %111, %112 : vector<2x8x32xf32>
    %cst_57 = arith.constant 0.000000e+00 : f32
    %114 = vector.broadcast %cst_57 : f32 to vector<2x8x32xf32>
    %115 = arith.maximumf %113, %114 : vector<2x8x32xf32>
    "tpu.trace_start"() <{level = 10 : i32, message = "tsg,tgo->tso"}> : () -> ()
    %cst_58 = arith.constant dense<0.000000e+00> : vector<2x8x1xf32>
    %116 = tpu.matmul %115, %100, %cst_58 {dimension_numbers = #tpu.dot_dimension_numbers<[2], [1], [1], [2], [0, 0, 0, 1, 1, 2], [0], [0]>} : vector<2x8x32xf32>, vector<2x32x1xf32>, vector<2x8x1xf32> -> vector<2x8x1xf32>
    "tpu.trace_stop"() : () -> ()
    %117 = vector.broadcast %105 : vector<2x1x1xf32> to vector<2x8x1xf32>
    %118 = arith.addf %116, %117 : vector<2x8x1xf32>
    %119 = arith.subf %118, %3 : vector<2x8x1xf32>
    %120 = arith.mulf %119, %119 : vector<2x8x1xf32>
    %cst_59 = arith.constant dense<0.000000e+00> : vector<2x8xf32>
    %121 = vector.multi_reduction <add>, %120, %cst_59 [2] : vector<2x8x1xf32> to vector<2x8xf32>
    %122 = vector.shape_cast %121 : vector<2x8xf32> to vector<2x8x1xf32>
    %cst_60 = arith.constant dense<0.000000e+00> : vector<2x1xf32>
    %123 = vector.multi_reduction <add>, %122, %cst_60 [1] : vector<2x8x1xf32> to vector<2x1xf32>
    %124 = vector.shape_cast %123 : vector<2x1xf32> to vector<2x1x1xf32>
    %125 = vector.shape_cast %124 : vector<2x1x1xf32> to vector<2x1xf32>
    %cst_61 = arith.constant 1.250000e-01 : f32
    %126 = vector.broadcast %cst_61 : f32 to vector<2x1xf32>
    %127 = arith.mulf %125, %126 : vector<2x1xf32>
    "tpu.trace_start"() <{level = 10 : i32, message = "tsi,tih->tsh"}> : () -> ()
    %cst_62 = arith.constant dense<0.000000e+00> : vector<2x8x32xf32>
    %128 = tpu.matmul %0, %80, %cst_62 {dimension_numbers = #tpu.dot_dimension_numbers<[2], [1], [1], [2], [0, 0, 0, 1, 1, 2], [0], [0]>} : vector<2x8x4xf32>, vector<2x4x32xf32>, vector<2x8x32xf32> -> vector<2x8x32xf32>
    "tpu.trace_stop"() : () -> ()
    %129 = vector.broadcast %85 : vector<2x1x32xf32> to vector<2x8x32xf32>
    %130 = arith.addf %128, %129 : vector<2x8x32xf32>
    %cst_63 = arith.constant 0.000000e+00 : f32
    %131 = vector.broadcast %cst_63 : f32 to vector<2x8x32xf32>
    %132 = arith.maximumf %130, %131 : vector<2x8x32xf32>
    "tpu.trace_start"() <{level = 10 : i32, message = "tsh,thg->tsg"}> : () -> ()
    %cst_64 = arith.constant dense<0.000000e+00> : vector<2x8x32xf32>
    %133 = tpu.matmul %132, %90, %cst_64 {dimension_numbers = #tpu.dot_dimension_numbers<[2], [1], [1], [2], [0, 0, 0, 1, 1, 2], [0], [0]>} : vector<2x8x32xf32>, vector<2x32x32xf32>, vector<2x8x32xf32> -> vector<2x8x32xf32>
    "tpu.trace_stop"() : () -> ()
    %134 = vector.broadcast %95 : vector<2x1x32xf32> to vector<2x8x32xf32>
    %135 = arith.addf %133, %134 : vector<2x8x32xf32>
    %cst_65 = arith.constant 0.000000e+00 : f32
    %136 = vector.broadcast %cst_65 : f32 to vector<2x8x32xf32>
    %137 = arith.maximumf %135, %136 : vector<2x8x32xf32>
    "tpu.trace_start"() <{level = 10 : i32, message = "tsg,tgo->tso"}> : () -> ()
    %cst_66 = arith.constant dense<0.000000e+00> : vector<2x8x1xf32>
    %138 = tpu.matmul %137, %100, %cst_66 {dimension_numbers = #tpu.dot_dimension_numbers<[2], [1], [1], [2], [0, 0, 0, 1, 1, 2], [0], [0]>} : vector<2x8x32xf32>, vector<2x32x1xf32>, vector<2x8x1xf32> -> vector<2x8x1xf32>
    "tpu.trace_stop"() : () -> ()
    %139 = vector.broadcast %105 : vector<2x1x1xf32> to vector<2x8x1xf32>
    %140 = arith.addf %138, %139 : vector<2x8x1xf32>
    %141 = arith.subf %140, %1 : vector<2x8x1xf32>
    %cst_67 = arith.constant 2.500000e-01 : f32
    %142 = vector.broadcast %cst_67 : f32 to vector<2x8x1xf32>
    %143 = arith.mulf %142, %141 : vector<2x8x1xf32>
    "tpu.trace_start"() <{level = 10 : i32, message = "tso,tgo->tsg"}> : () -> ()
    %cst_68 = arith.constant dense<0.000000e+00> : vector<2x8x32xf32>
    %144 = tpu.matmul %143, %100, %cst_68 {dimension_numbers = #tpu.dot_dimension_numbers<[2], [2], [1], [1], [0, 0, 0, 1, 1, 1], [0], [0]>} : vector<2x8x1xf32>, vector<2x32x1xf32>, vector<2x8x32xf32> -> vector<2x8x32xf32>
    %cst_69 = arith.constant 0.000000e+00 : f32
    "tpu.trace_stop"() : () -> ()
    %145 = vector.broadcast %cst_69 : f32 to vector<2x8x32xf32>
    %146 = arith.cmpf ogt, %135, %145 : vector<2x8x32xf32>
    %cst_70 = arith.constant 0.000000e+00 : f32
    %147 = vector.broadcast %cst_70 : f32 to vector<2x8x32xf32>
    %148 = arith.select %146, %144, %147 : vector<2x8x32xi1>, vector<2x8x32xf32>
    "tpu.trace_start"() <{level = 10 : i32, message = "tsg,thg->tsh"}> : () -> ()
    %cst_71 = arith.constant dense<0.000000e+00> : vector<2x8x32xf32>
    %149 = tpu.matmul %148, %90, %cst_71 {dimension_numbers = #tpu.dot_dimension_numbers<[2], [2], [1], [1], [0, 0, 0, 1, 1, 1], [0], [0]>} : vector<2x8x32xf32>, vector<2x32x32xf32>, vector<2x8x32xf32> -> vector<2x8x32xf32>
    %cst_72 = arith.constant 0.000000e+00 : f32
    "tpu.trace_stop"() : () -> ()
    %150 = vector.broadcast %cst_72 : f32 to vector<2x8x32xf32>
    %151 = arith.cmpf ogt, %130, %150 : vector<2x8x32xf32>
    %cst_73 = arith.constant 0.000000e+00 : f32
    %152 = vector.broadcast %cst_73 : f32 to vector<2x8x32xf32>
    %153 = arith.select %151, %149, %152 : vector<2x8x32xi1>, vector<2x8x32xf32>
    "tpu.trace_start"() <{level = 10 : i32, message = "tsg,tso->tgo"}> : () -> ()
    %cst_74 = arith.constant dense<0.000000e+00> : vector<2x32x1xf32>
    %154 = tpu.matmul %137, %143, %cst_74 {dimension_numbers = #tpu.dot_dimension_numbers<[1], [1], [2], [2], [0, 0, 0, 2, 1, 2], [0], [0]>} : vector<2x8x32xf32>, vector<2x8x1xf32>, vector<2x32x1xf32> -> vector<2x32x1xf32>
    "tpu.trace_stop"() : () -> ()
    %cst_75 = arith.constant dense<0.000000e+00> : vector<2x1xf32>
    %155 = vector.multi_reduction <add>, %143, %cst_75 [1] : vector<2x8x1xf32> to vector<2x1xf32>
    %156 = vector.shape_cast %155 : vector<2x1xf32> to vector<2x1x1xf32>
    "tpu.trace_start"() <{level = 10 : i32, message = "tsh,tsg->thg"}> : () -> ()
    %cst_76 = arith.constant dense<0.000000e+00> : vector<2x32x32xf32>
    %157 = tpu.matmul %132, %148, %cst_76 {dimension_numbers = #tpu.dot_dimension_numbers<[1], [1], [2], [2], [0, 0, 0, 2, 1, 2], [0], [0]>} : vector<2x8x32xf32>, vector<2x8x32xf32>, vector<2x32x32xf32> -> vector<2x32x32xf32>
    "tpu.trace_stop"() : () -> ()
    %cst_77 = arith.constant dense<0.000000e+00> : vector<2x32xf32>
    %158 = vector.multi_reduction <add>, %148, %cst_77 [1] : vector<2x8x32xf32> to vector<2x32xf32>
    %159 = vector.shape_cast %158 : vector<2x32xf32> to vector<2x1x32xf32>
    "tpu.trace_start"() <{level = 10 : i32, message = "tsi,tsh->tih"}> : () -> ()
    %cst_78 = arith.constant dense<0.000000e+00> : vector<2x4x32xf32>
    %160 = tpu.matmul %0, %153, %cst_78 {dimension_numbers = #tpu.dot_dimension_numbers<[1], [1], [2], [2], [0, 0, 0, 2, 1, 2], [0], [0]>} : vector<2x8x4xf32>, vector<2x8x32xf32>, vector<2x4x32xf32> -> vector<2x4x32xf32>
    "tpu.trace_stop"() : () -> ()
    %cst_79 = arith.constant dense<0.000000e+00> : vector<2x32xf32>
    %161 = vector.multi_reduction <add>, %153, %cst_79 [1] : vector<2x8x32xf32> to vector<2x32xf32>
    %162 = vector.shape_cast %161 : vector<2x32xf32> to vector<2x1x32xf32>
    %cst_80 = arith.constant 0.00999999977 : f32
    %163 = vector.broadcast %cst_80 : f32 to vector<2x4x32xf32>
    %164 = arith.mulf %163, %160 : vector<2x4x32xf32>
    %165 = arith.subf %80, %164 : vector<2x4x32xf32>
    %cst_81 = arith.constant 0.00999999977 : f32
    %166 = vector.broadcast %cst_81 : f32 to vector<2x1x32xf32>
    %167 = arith.mulf %166, %162 : vector<2x1x32xf32>
    %168 = arith.subf %85, %167 : vector<2x1x32xf32>
    %cst_82 = arith.constant 0.00999999977 : f32
    %169 = vector.broadcast %cst_82 : f32 to vector<2x32x32xf32>
    %170 = arith.mulf %169, %157 : vector<2x32x32xf32>
    %171 = arith.subf %90, %170 : vector<2x32x32xf32>
    %cst_83 = arith.constant 0.00999999977 : f32
    %172 = vector.broadcast %cst_83 : f32 to vector<2x1x32xf32>
    %173 = arith.mulf %172, %159 : vector<2x1x32xf32>
    %174 = arith.subf %95, %173 : vector<2x1x32xf32>
    %cst_84 = arith.constant 0.00999999977 : f32
    %175 = vector.broadcast %cst_84 : f32 to vector<2x32x1xf32>
    %176 = arith.mulf %175, %154 : vector<2x32x1xf32>
    %177 = arith.subf %100, %176 : vector<2x32x1xf32>
    %cst_85 = arith.constant 0.00999999977 : f32
    %178 = vector.broadcast %cst_85 : f32 to vector<2x1x1xf32>
    %179 = arith.mulf %178, %156 : vector<2x1x1xf32>
    %180 = arith.subf %105, %179 : vector<2x1x1xf32>
    "tpu.trace_start"() <{level = 10 : i32, message = "tsi,tih->tsh"}> : () -> ()
    %cst_86 = arith.constant dense<0.000000e+00> : vector<2x8x32xf32>
    %181 = tpu.matmul %2, %165, %cst_86 {dimension_numbers = #tpu.dot_dimension_numbers<[2], [1], [1], [2], [0, 0, 0, 1, 1, 2], [0], [0]>} : vector<2x8x4xf32>, vector<2x4x32xf32>, vector<2x8x32xf32> -> vector<2x8x32xf32>
    "tpu.trace_stop"() : () -> ()
    %182 = vector.broadcast %168 : vector<2x1x32xf32> to vector<2x8x32xf32>
    %183 = arith.addf %181, %182 : vector<2x8x32xf32>
    %cst_87 = arith.constant 0.000000e+00 : f32
    %184 = vector.broadcast %cst_87 : f32 to vector<2x8x32xf32>
    %185 = arith.maximumf %183, %184 : vector<2x8x32xf32>
    "tpu.trace_start"() <{level = 10 : i32, message = "tsh,thg->tsg"}> : () -> ()
    %cst_88 = arith.constant dense<0.000000e+00> : vector<2x8x32xf32>
    %186 = tpu.matmul %185, %171, %cst_88 {dimension_numbers = #tpu.dot_dimension_numbers<[2], [1], [1], [2], [0, 0, 0, 1, 1, 2], [0], [0]>} : vector<2x8x32xf32>, vector<2x32x32xf32>, vector<2x8x32xf32> -> vector<2x8x32xf32>
    "tpu.trace_stop"() : () -> ()
    %187 = vector.broadcast %174 : vector<2x1x32xf32> to vector<2x8x32xf32>
    %188 = arith.addf %186, %187 : vector<2x8x32xf32>
    %cst_89 = arith.constant 0.000000e+00 : f32
    %189 = vector.broadcast %cst_89 : f32 to vector<2x8x32xf32>
    %190 = arith.maximumf %188, %189 : vector<2x8x32xf32>
    "tpu.trace_start"() <{level = 10 : i32, message = "tsg,tgo->tso"}> : () -> ()
    %cst_90 = arith.constant dense<0.000000e+00> : vector<2x8x1xf32>
    %191 = tpu.matmul %190, %177, %cst_90 {dimension_numbers = #tpu.dot_dimension_numbers<[2], [1], [1], [2], [0, 0, 0, 1, 1, 2], [0], [0]>} : vector<2x8x32xf32>, vector<2x32x1xf32>, vector<2x8x1xf32> -> vector<2x8x1xf32>
    "tpu.trace_stop"() : () -> ()
    %192 = vector.broadcast %180 : vector<2x1x1xf32> to vector<2x8x1xf32>
    %193 = arith.addf %191, %192 : vector<2x8x1xf32>
    %194 = arith.subf %193, %3 : vector<2x8x1xf32>
    %195 = arith.mulf %194, %194 : vector<2x8x1xf32>
    %cst_91 = arith.constant dense<0.000000e+00> : vector<2x8xf32>
    %196 = vector.multi_reduction <add>, %195, %cst_91 [2] : vector<2x8x1xf32> to vector<2x8xf32>
    %197 = vector.shape_cast %196 : vector<2x8xf32> to vector<2x8x1xf32>
    %cst_92 = arith.constant dense<0.000000e+00> : vector<2x1xf32>
    %198 = vector.multi_reduction <add>, %197, %cst_92 [1] : vector<2x8x1xf32> to vector<2x1xf32>
    %199 = vector.shape_cast %198 : vector<2x1xf32> to vector<2x1x1xf32>
    %200 = vector.shape_cast %199 : vector<2x1x1xf32> to vector<2x1xf32>
    %cst_93 = arith.constant 1.250000e-01 : f32
    %201 = vector.broadcast %cst_93 : f32 to vector<2x1xf32>
    %202 = arith.mulf %200, %201 : vector<2x1xf32>
    "tpu.trace_start"() <{level = 10 : i32, message = "tsi,tih->tsh"}> : () -> ()
    %cst_94 = arith.constant dense<0.000000e+00> : vector<2x8x32xf32>
    %203 = tpu.matmul %0, %165, %cst_94 {dimension_numbers = #tpu.dot_dimension_numbers<[2], [1], [1], [2], [0, 0, 0, 1, 1, 2], [0], [0]>} : vector<2x8x4xf32>, vector<2x4x32xf32>, vector<2x8x32xf32> -> vector<2x8x32xf32>
    "tpu.trace_stop"() : () -> ()
    %204 = vector.broadcast %168 : vector<2x1x32xf32> to vector<2x8x32xf32>
    %205 = arith.addf %203, %204 : vector<2x8x32xf32>
    %cst_95 = arith.constant 0.000000e+00 : f32
    %206 = vector.broadcast %cst_95 : f32 to vector<2x8x32xf32>
    %207 = arith.maximumf %205, %206 : vector<2x8x32xf32>
    "tpu.trace_start"() <{level = 10 : i32, message = "tsh,thg->tsg"}> : () -> ()
    %cst_96 = arith.constant dense<0.000000e+00> : vector<2x8x32xf32>
    %208 = tpu.matmul %207, %171, %cst_96 {dimension_numbers = #tpu.dot_dimension_numbers<[2], [1], [1], [2], [0, 0, 0, 1, 1, 2], [0], [0]>} : vector<2x8x32xf32>, vector<2x32x32xf32>, vector<2x8x32xf32> -> vector<2x8x32xf32>
    "tpu.trace_stop"() : () -> ()
    %209 = vector.broadcast %174 : vector<2x1x32xf32> to vector<2x8x32xf32>
    %210 = arith.addf %208, %209 : vector<2x8x32xf32>
    %cst_97 = arith.constant 0.000000e+00 : f32
    %211 = vector.broadcast %cst_97 : f32 to vector<2x8x32xf32>
    %212 = arith.maximumf %210, %211 : vector<2x8x32xf32>
    "tpu.trace_start"() <{level = 10 : i32, message = "tsg,tgo->tso"}> : () -> ()
    %cst_98 = arith.constant dense<0.000000e+00> : vector<2x8x1xf32>
    %213 = tpu.matmul %212, %177, %cst_98 {dimension_numbers = #tpu.dot_dimension_numbers<[2], [1], [1], [2], [0, 0, 0, 1, 1, 2], [0], [0]>} : vector<2x8x32xf32>, vector<2x32x1xf32>, vector<2x8x1xf32> -> vector<2x8x1xf32>
    "tpu.trace_stop"() : () -> ()
    %214 = vector.broadcast %180 : vector<2x1x1xf32> to vector<2x8x1xf32>
    %215 = arith.addf %213, %214 : vector<2x8x1xf32>
    %216 = arith.subf %215, %1 : vector<2x8x1xf32>
    %cst_99 = arith.constant 2.500000e-01 : f32
    %217 = vector.broadcast %cst_99 : f32 to vector<2x8x1xf32>
    %218 = arith.mulf %217, %216 : vector<2x8x1xf32>
    "tpu.trace_start"() <{level = 10 : i32, message = "tso,tgo->tsg"}> : () -> ()
    %cst_100 = arith.constant dense<0.000000e+00> : vector<2x8x32xf32>
    %219 = tpu.matmul %218, %177, %cst_100 {dimension_numbers = #tpu.dot_dimension_numbers<[2], [2], [1], [1], [0, 0, 0, 1, 1, 1], [0], [0]>} : vector<2x8x1xf32>, vector<2x32x1xf32>, vector<2x8x32xf32> -> vector<2x8x32xf32>
    %cst_101 = arith.constant 0.000000e+00 : f32
    "tpu.trace_stop"() : () -> ()
    %220 = vector.broadcast %cst_101 : f32 to vector<2x8x32xf32>
    %221 = arith.cmpf ogt, %210, %220 : vector<2x8x32xf32>
    %cst_102 = arith.constant 0.000000e+00 : f32
    %222 = vector.broadcast %cst_102 : f32 to vector<2x8x32xf32>
    %223 = arith.select %221, %219, %222 : vector<2x8x32xi1>, vector<2x8x32xf32>
    "tpu.trace_start"() <{level = 10 : i32, message = "tsg,thg->tsh"}> : () -> ()
    %cst_103 = arith.constant dense<0.000000e+00> : vector<2x8x32xf32>
    %224 = tpu.matmul %223, %171, %cst_103 {dimension_numbers = #tpu.dot_dimension_numbers<[2], [2], [1], [1], [0, 0, 0, 1, 1, 1], [0], [0]>} : vector<2x8x32xf32>, vector<2x32x32xf32>, vector<2x8x32xf32> -> vector<2x8x32xf32>
    %cst_104 = arith.constant 0.000000e+00 : f32
    "tpu.trace_stop"() : () -> ()
    %225 = vector.broadcast %cst_104 : f32 to vector<2x8x32xf32>
    %226 = arith.cmpf ogt, %205, %225 : vector<2x8x32xf32>
    %cst_105 = arith.constant 0.000000e+00 : f32
    %227 = vector.broadcast %cst_105 : f32 to vector<2x8x32xf32>
    %228 = arith.select %226, %224, %227 : vector<2x8x32xi1>, vector<2x8x32xf32>
    "tpu.trace_start"() <{level = 10 : i32, message = "tsg,tso->tgo"}> : () -> ()
    %cst_106 = arith.constant dense<0.000000e+00> : vector<2x32x1xf32>
    %229 = tpu.matmul %212, %218, %cst_106 {dimension_numbers = #tpu.dot_dimension_numbers<[1], [1], [2], [2], [0, 0, 0, 2, 1, 2], [0], [0]>} : vector<2x8x32xf32>, vector<2x8x1xf32>, vector<2x32x1xf32> -> vector<2x32x1xf32>
    "tpu.trace_stop"() : () -> ()
    %cst_107 = arith.constant dense<0.000000e+00> : vector<2x1xf32>
    %230 = vector.multi_reduction <add>, %218, %cst_107 [1] : vector<2x8x1xf32> to vector<2x1xf32>
    %231 = vector.shape_cast %230 : vector<2x1xf32> to vector<2x1x1xf32>
    "tpu.trace_start"() <{level = 10 : i32, message = "tsh,tsg->thg"}> : () -> ()
    %cst_108 = arith.constant dense<0.000000e+00> : vector<2x32x32xf32>
    %232 = tpu.matmul %207, %223, %cst_108 {dimension_numbers = #tpu.dot_dimension_numbers<[1], [1], [2], [2], [0, 0, 0, 2, 1, 2], [0], [0]>} : vector<2x8x32xf32>, vector<2x8x32xf32>, vector<2x32x32xf32> -> vector<2x32x32xf32>
    "tpu.trace_stop"() : () -> ()
    %cst_109 = arith.constant dense<0.000000e+00> : vector<2x32xf32>
    %233 = vector.multi_reduction <add>, %223, %cst_109 [1] : vector<2x8x32xf32> to vector<2x32xf32>
    %234 = vector.shape_cast %233 : vector<2x32xf32> to vector<2x1x32xf32>
    "tpu.trace_start"() <{level = 10 : i32, message = "tsi,tsh->tih"}> : () -> ()
    %cst_110 = arith.constant dense<0.000000e+00> : vector<2x4x32xf32>
    %235 = tpu.matmul %0, %228, %cst_110 {dimension_numbers = #tpu.dot_dimension_numbers<[1], [1], [2], [2], [0, 0, 0, 2, 1, 2], [0], [0]>} : vector<2x8x4xf32>, vector<2x8x32xf32>, vector<2x4x32xf32> -> vector<2x4x32xf32>
    "tpu.trace_stop"() : () -> ()
    %cst_111 = arith.constant dense<0.000000e+00> : vector<2x32xf32>
    %236 = vector.multi_reduction <add>, %228, %cst_111 [1] : vector<2x8x32xf32> to vector<2x32xf32>
    %237 = vector.shape_cast %236 : vector<2x32xf32> to vector<2x1x32xf32>
    %cst_112 = arith.constant 0.00999999977 : f32
    %238 = vector.broadcast %cst_112 : f32 to vector<2x4x32xf32>
    %239 = arith.mulf %238, %235 : vector<2x4x32xf32>
    %240 = arith.subf %165, %239 : vector<2x4x32xf32>
    %cst_113 = arith.constant 0.00999999977 : f32
    %241 = vector.broadcast %cst_113 : f32 to vector<2x1x32xf32>
    %242 = arith.mulf %241, %237 : vector<2x1x32xf32>
    %243 = arith.subf %168, %242 : vector<2x1x32xf32>
    %cst_114 = arith.constant 0.00999999977 : f32
    %244 = vector.broadcast %cst_114 : f32 to vector<2x32x32xf32>
    %245 = arith.mulf %244, %232 : vector<2x32x32xf32>
    %246 = arith.subf %171, %245 : vector<2x32x32xf32>
    %cst_115 = arith.constant 0.00999999977 : f32
    %247 = vector.broadcast %cst_115 : f32 to vector<2x1x32xf32>
    %248 = arith.mulf %247, %234 : vector<2x1x32xf32>
    %249 = arith.subf %174, %248 : vector<2x1x32xf32>
    %cst_116 = arith.constant 0.00999999977 : f32
    %250 = vector.broadcast %cst_116 : f32 to vector<2x32x1xf32>
    %251 = arith.mulf %250, %229 : vector<2x32x1xf32>
    %252 = arith.subf %177, %251 : vector<2x32x1xf32>
    %cst_117 = arith.constant 0.00999999977 : f32
    %253 = vector.broadcast %cst_117 : f32 to vector<2x1x1xf32>
    %254 = arith.mulf %253, %231 : vector<2x1x1xf32>
    %255 = arith.subf %180, %254 : vector<2x1x1xf32>
    "tpu.trace_start"() <{level = 10 : i32, message = "tsi,tih->tsh"}> : () -> ()
    %cst_118 = arith.constant dense<0.000000e+00> : vector<2x8x32xf32>
    %256 = tpu.matmul %2, %240, %cst_118 {dimension_numbers = #tpu.dot_dimension_numbers<[2], [1], [1], [2], [0, 0, 0, 1, 1, 2], [0], [0]>} : vector<2x8x4xf32>, vector<2x4x32xf32>, vector<2x8x32xf32> -> vector<2x8x32xf32>
    "tpu.trace_stop"() : () -> ()
    %257 = vector.broadcast %243 : vector<2x1x32xf32> to vector<2x8x32xf32>
    %258 = arith.addf %256, %257 : vector<2x8x32xf32>
    %cst_119 = arith.constant 0.000000e+00 : f32
    %259 = vector.broadcast %cst_119 : f32 to vector<2x8x32xf32>
    %260 = arith.maximumf %258, %259 : vector<2x8x32xf32>
    "tpu.trace_start"() <{level = 10 : i32, message = "tsh,thg->tsg"}> : () -> ()
    %cst_120 = arith.constant dense<0.000000e+00> : vector<2x8x32xf32>
    %261 = tpu.matmul %260, %246, %cst_120 {dimension_numbers = #tpu.dot_dimension_numbers<[2], [1], [1], [2], [0, 0, 0, 1, 1, 2], [0], [0]>} : vector<2x8x32xf32>, vector<2x32x32xf32>, vector<2x8x32xf32> -> vector<2x8x32xf32>
    "tpu.trace_stop"() : () -> ()
    %262 = vector.broadcast %249 : vector<2x1x32xf32> to vector<2x8x32xf32>
    %263 = arith.addf %261, %262 : vector<2x8x32xf32>
    %cst_121 = arith.constant 0.000000e+00 : f32
    %264 = vector.broadcast %cst_121 : f32 to vector<2x8x32xf32>
    %265 = arith.maximumf %263, %264 : vector<2x8x32xf32>
    "tpu.trace_start"() <{level = 10 : i32, message = "tsg,tgo->tso"}> : () -> ()
    %cst_122 = arith.constant dense<0.000000e+00> : vector<2x8x1xf32>
    %266 = tpu.matmul %265, %252, %cst_122 {dimension_numbers = #tpu.dot_dimension_numbers<[2], [1], [1], [2], [0, 0, 0, 1, 1, 2], [0], [0]>} : vector<2x8x32xf32>, vector<2x32x1xf32>, vector<2x8x1xf32> -> vector<2x8x1xf32>
    "tpu.trace_stop"() : () -> ()
    %267 = vector.broadcast %255 : vector<2x1x1xf32> to vector<2x8x1xf32>
    %268 = arith.addf %266, %267 : vector<2x8x1xf32>
    %269 = arith.subf %268, %3 : vector<2x8x1xf32>
    %270 = arith.mulf %269, %269 : vector<2x8x1xf32>
    %cst_123 = arith.constant dense<0.000000e+00> : vector<2x8xf32>
    %271 = vector.multi_reduction <add>, %270, %cst_123 [2] : vector<2x8x1xf32> to vector<2x8xf32>
    %272 = vector.shape_cast %271 : vector<2x8xf32> to vector<2x8x1xf32>
    %cst_124 = arith.constant dense<0.000000e+00> : vector<2x1xf32>
    %273 = vector.multi_reduction <add>, %272, %cst_124 [1] : vector<2x8x1xf32> to vector<2x1xf32>
    %274 = vector.shape_cast %273 : vector<2x1xf32> to vector<2x1x1xf32>
    %275 = vector.shape_cast %274 : vector<2x1x1xf32> to vector<2x1xf32>
    %cst_125 = arith.constant 1.250000e-01 : f32
    %276 = vector.broadcast %cst_125 : f32 to vector<2x1xf32>
    %277 = arith.mulf %275, %276 : vector<2x1xf32>
    "tpu.trace_start"() <{level = 10 : i32, message = "tsi,tih->tsh"}> : () -> ()
    %cst_126 = arith.constant dense<0.000000e+00> : vector<2x8x32xf32>
    %278 = tpu.matmul %0, %240, %cst_126 {dimension_numbers = #tpu.dot_dimension_numbers<[2], [1], [1], [2], [0, 0, 0, 1, 1, 2], [0], [0]>} : vector<2x8x4xf32>, vector<2x4x32xf32>, vector<2x8x32xf32> -> vector<2x8x32xf32>
    "tpu.trace_stop"() : () -> ()
    %279 = vector.broadcast %243 : vector<2x1x32xf32> to vector<2x8x32xf32>
    %280 = arith.addf %278, %279 : vector<2x8x32xf32>
    %cst_127 = arith.constant 0.000000e+00 : f32
    %281 = vector.broadcast %cst_127 : f32 to vector<2x8x32xf32>
    %282 = arith.maximumf %280, %281 : vector<2x8x32xf32>
    "tpu.trace_start"() <{level = 10 : i32, message = "tsh,thg->tsg"}> : () -> ()
    %cst_128 = arith.constant dense<0.000000e+00> : vector<2x8x32xf32>
    %283 = tpu.matmul %282, %246, %cst_128 {dimension_numbers = #tpu.dot_dimension_numbers<[2], [1], [1], [2], [0, 0, 0, 1, 1, 2], [0], [0]>} : vector<2x8x32xf32>, vector<2x32x32xf32>, vector<2x8x32xf32> -> vector<2x8x32xf32>
    "tpu.trace_stop"() : () -> ()
    %284 = vector.broadcast %249 : vector<2x1x32xf32> to vector<2x8x32xf32>
    %285 = arith.addf %283, %284 : vector<2x8x32xf32>
    %cst_129 = arith.constant 0.000000e+00 : f32
    %286 = vector.broadcast %cst_129 : f32 to vector<2x8x32xf32>
    %287 = arith.maximumf %285, %286 : vector<2x8x32xf32>
    "tpu.trace_start"() <{level = 10 : i32, message = "tsg,tgo->tso"}> : () -> ()
    %cst_130 = arith.constant dense<0.000000e+00> : vector<2x8x1xf32>
    %288 = tpu.matmul %287, %252, %cst_130 {dimension_numbers = #tpu.dot_dimension_numbers<[2], [1], [1], [2], [0, 0, 0, 1, 1, 2], [0], [0]>} : vector<2x8x32xf32>, vector<2x32x1xf32>, vector<2x8x1xf32> -> vector<2x8x1xf32>
    "tpu.trace_stop"() : () -> ()
    %289 = vector.broadcast %255 : vector<2x1x1xf32> to vector<2x8x1xf32>
    %290 = arith.addf %288, %289 : vector<2x8x1xf32>
    %291 = arith.subf %290, %1 : vector<2x8x1xf32>
    %cst_131 = arith.constant 2.500000e-01 : f32
    %292 = vector.broadcast %cst_131 : f32 to vector<2x8x1xf32>
    %293 = arith.mulf %292, %291 : vector<2x8x1xf32>
    "tpu.trace_start"() <{level = 10 : i32, message = "tso,tgo->tsg"}> : () -> ()
    %cst_132 = arith.constant dense<0.000000e+00> : vector<2x8x32xf32>
    %294 = tpu.matmul %293, %252, %cst_132 {dimension_numbers = #tpu.dot_dimension_numbers<[2], [2], [1], [1], [0, 0, 0, 1, 1, 1], [0], [0]>} : vector<2x8x1xf32>, vector<2x32x1xf32>, vector<2x8x32xf32> -> vector<2x8x32xf32>
    %cst_133 = arith.constant 0.000000e+00 : f32
    "tpu.trace_stop"() : () -> ()
    %295 = vector.broadcast %cst_133 : f32 to vector<2x8x32xf32>
    %296 = arith.cmpf ogt, %285, %295 : vector<2x8x32xf32>
    %cst_134 = arith.constant 0.000000e+00 : f32
    %297 = vector.broadcast %cst_134 : f32 to vector<2x8x32xf32>
    %298 = arith.select %296, %294, %297 : vector<2x8x32xi1>, vector<2x8x32xf32>
    "tpu.trace_start"() <{level = 10 : i32, message = "tsg,thg->tsh"}> : () -> ()
    %cst_135 = arith.constant dense<0.000000e+00> : vector<2x8x32xf32>
    %299 = tpu.matmul %298, %246, %cst_135 {dimension_numbers = #tpu.dot_dimension_numbers<[2], [2], [1], [1], [0, 0, 0, 1, 1, 1], [0], [0]>} : vector<2x8x32xf32>, vector<2x32x32xf32>, vector<2x8x32xf32> -> vector<2x8x32xf32>
    %cst_136 = arith.constant 0.000000e+00 : f32
    "tpu.trace_stop"() : () -> ()
    %300 = vector.broadcast %cst_136 : f32 to vector<2x8x32xf32>
    %301 = arith.cmpf ogt, %280, %300 : vector<2x8x32xf32>
    %cst_137 = arith.constant 0.000000e+00 : f32
    %302 = vector.broadcast %cst_137 : f32 to vector<2x8x32xf32>
    %303 = arith.select %301, %299, %302 : vector<2x8x32xi1>, vector<2x8x32xf32>
    "tpu.trace_start"() <{level = 10 : i32, message = "tsg,tso->tgo"}> : () -> ()
    %cst_138 = arith.constant dense<0.000000e+00> : vector<2x32x1xf32>
    %304 = tpu.matmul %287, %293, %cst_138 {dimension_numbers = #tpu.dot_dimension_numbers<[1], [1], [2], [2], [0, 0, 0, 2, 1, 2], [0], [0]>} : vector<2x8x32xf32>, vector<2x8x1xf32>, vector<2x32x1xf32> -> vector<2x32x1xf32>
    "tpu.trace_stop"() : () -> ()
    %cst_139 = arith.constant dense<0.000000e+00> : vector<2x1xf32>
    %305 = vector.multi_reduction <add>, %293, %cst_139 [1] : vector<2x8x1xf32> to vector<2x1xf32>
    %306 = vector.shape_cast %305 : vector<2x1xf32> to vector<2x1x1xf32>
    "tpu.trace_start"() <{level = 10 : i32, message = "tsh,tsg->thg"}> : () -> ()
    %cst_140 = arith.constant dense<0.000000e+00> : vector<2x32x32xf32>
    %307 = tpu.matmul %282, %298, %cst_140 {dimension_numbers = #tpu.dot_dimension_numbers<[1], [1], [2], [2], [0, 0, 0, 2, 1, 2], [0], [0]>} : vector<2x8x32xf32>, vector<2x8x32xf32>, vector<2x32x32xf32> -> vector<2x32x32xf32>
    "tpu.trace_stop"() : () -> ()
    %cst_141 = arith.constant dense<0.000000e+00> : vector<2x32xf32>
    %308 = vector.multi_reduction <add>, %298, %cst_141 [1] : vector<2x8x32xf32> to vector<2x32xf32>
    %309 = vector.shape_cast %308 : vector<2x32xf32> to vector<2x1x32xf32>
    "tpu.trace_start"() <{level = 10 : i32, message = "tsi,tsh->tih"}> : () -> ()
    %cst_142 = arith.constant dense<0.000000e+00> : vector<2x4x32xf32>
    %310 = tpu.matmul %0, %303, %cst_142 {dimension_numbers = #tpu.dot_dimension_numbers<[1], [1], [2], [2], [0, 0, 0, 2, 1, 2], [0], [0]>} : vector<2x8x4xf32>, vector<2x8x32xf32>, vector<2x4x32xf32> -> vector<2x4x32xf32>
    "tpu.trace_stop"() : () -> ()
    %cst_143 = arith.constant dense<0.000000e+00> : vector<2x32xf32>
    %311 = vector.multi_reduction <add>, %303, %cst_143 [1] : vector<2x8x32xf32> to vector<2x32xf32>
    %312 = vector.shape_cast %311 : vector<2x32xf32> to vector<2x1x32xf32>
    %cst_144 = arith.constant 0.00999999977 : f32
    %313 = vector.broadcast %cst_144 : f32 to vector<2x4x32xf32>
    %314 = arith.mulf %313, %310 : vector<2x4x32xf32>
    %315 = arith.subf %240, %314 : vector<2x4x32xf32>
    %cst_145 = arith.constant 0.00999999977 : f32
    %316 = vector.broadcast %cst_145 : f32 to vector<2x1x32xf32>
    %317 = arith.mulf %316, %312 : vector<2x1x32xf32>
    %318 = arith.subf %243, %317 : vector<2x1x32xf32>
    %cst_146 = arith.constant 0.00999999977 : f32
    %319 = vector.broadcast %cst_146 : f32 to vector<2x32x32xf32>
    %320 = arith.mulf %319, %307 : vector<2x32x32xf32>
    %321 = arith.subf %246, %320 : vector<2x32x32xf32>
    %cst_147 = arith.constant 0.00999999977 : f32
    %322 = vector.broadcast %cst_147 : f32 to vector<2x1x32xf32>
    %323 = arith.mulf %322, %309 : vector<2x1x32xf32>
    %324 = arith.subf %249, %323 : vector<2x1x32xf32>
    %cst_148 = arith.constant 0.00999999977 : f32
    %325 = vector.broadcast %cst_148 : f32 to vector<2x32x1xf32>
    %326 = arith.mulf %325, %304 : vector<2x32x1xf32>
    %327 = arith.subf %252, %326 : vector<2x32x1xf32>
    %cst_149 = arith.constant 0.00999999977 : f32
    %328 = vector.broadcast %cst_149 : f32 to vector<2x1x1xf32>
    %329 = arith.mulf %328, %306 : vector<2x1x1xf32>
    %330 = arith.subf %255, %329 : vector<2x1x1xf32>
    "tpu.trace_start"() <{level = 10 : i32, message = "tsi,tih->tsh"}> : () -> ()
    %cst_150 = arith.constant dense<0.000000e+00> : vector<2x8x32xf32>
    %331 = tpu.matmul %2, %315, %cst_150 {dimension_numbers = #tpu.dot_dimension_numbers<[2], [1], [1], [2], [0, 0, 0, 1, 1, 2], [0], [0]>} : vector<2x8x4xf32>, vector<2x4x32xf32>, vector<2x8x32xf32> -> vector<2x8x32xf32>
    "tpu.trace_stop"() : () -> ()
    %332 = vector.broadcast %318 : vector<2x1x32xf32> to vector<2x8x32xf32>
    %333 = arith.addf %331, %332 : vector<2x8x32xf32>
    %cst_151 = arith.constant 0.000000e+00 : f32
    %334 = vector.broadcast %cst_151 : f32 to vector<2x8x32xf32>
    %335 = arith.maximumf %333, %334 : vector<2x8x32xf32>
    "tpu.trace_start"() <{level = 10 : i32, message = "tsh,thg->tsg"}> : () -> ()
    %cst_152 = arith.constant dense<0.000000e+00> : vector<2x8x32xf32>
    %336 = tpu.matmul %335, %321, %cst_152 {dimension_numbers = #tpu.dot_dimension_numbers<[2], [1], [1], [2], [0, 0, 0, 1, 1, 2], [0], [0]>} : vector<2x8x32xf32>, vector<2x32x32xf32>, vector<2x8x32xf32> -> vector<2x8x32xf32>
    "tpu.trace_stop"() : () -> ()
    %337 = vector.broadcast %324 : vector<2x1x32xf32> to vector<2x8x32xf32>
    %338 = arith.addf %336, %337 : vector<2x8x32xf32>
    %cst_153 = arith.constant 0.000000e+00 : f32
    %339 = vector.broadcast %cst_153 : f32 to vector<2x8x32xf32>
    %340 = arith.maximumf %338, %339 : vector<2x8x32xf32>
    "tpu.trace_start"() <{level = 10 : i32, message = "tsg,tgo->tso"}> : () -> ()
    %cst_154 = arith.constant dense<0.000000e+00> : vector<2x8x1xf32>
    %341 = tpu.matmul %340, %327, %cst_154 {dimension_numbers = #tpu.dot_dimension_numbers<[2], [1], [1], [2], [0, 0, 0, 1, 1, 2], [0], [0]>} : vector<2x8x32xf32>, vector<2x32x1xf32>, vector<2x8x1xf32> -> vector<2x8x1xf32>
    "tpu.trace_stop"() : () -> ()
    %342 = vector.broadcast %330 : vector<2x1x1xf32> to vector<2x8x1xf32>
    %343 = arith.addf %341, %342 : vector<2x8x1xf32>
    %344 = arith.subf %343, %3 : vector<2x8x1xf32>
    %345 = arith.mulf %344, %344 : vector<2x8x1xf32>
    %cst_155 = arith.constant dense<0.000000e+00> : vector<2x8xf32>
    %346 = vector.multi_reduction <add>, %345, %cst_155 [2] : vector<2x8x1xf32> to vector<2x8xf32>
    %347 = vector.shape_cast %346 : vector<2x8xf32> to vector<2x8x1xf32>
    %cst_156 = arith.constant dense<0.000000e+00> : vector<2x1xf32>
    %348 = vector.multi_reduction <add>, %347, %cst_156 [1] : vector<2x8x1xf32> to vector<2x1xf32>
    %349 = vector.shape_cast %348 : vector<2x1xf32> to vector<2x1x1xf32>
    %350 = vector.shape_cast %349 : vector<2x1x1xf32> to vector<2x1xf32>
    %cst_157 = arith.constant 1.250000e-01 : f32
    %351 = vector.broadcast %cst_157 : f32 to vector<2x1xf32>
    %352 = arith.mulf %350, %351 : vector<2x1xf32>
    "tpu.trace_start"() <{level = 10 : i32, message = "tsi,tih->tsh"}> : () -> ()
    %cst_158 = arith.constant dense<0.000000e+00> : vector<2x8x32xf32>
    %353 = tpu.matmul %0, %315, %cst_158 {dimension_numbers = #tpu.dot_dimension_numbers<[2], [1], [1], [2], [0, 0, 0, 1, 1, 2], [0], [0]>} : vector<2x8x4xf32>, vector<2x4x32xf32>, vector<2x8x32xf32> -> vector<2x8x32xf32>
    "tpu.trace_stop"() : () -> ()
    %354 = vector.broadcast %318 : vector<2x1x32xf32> to vector<2x8x32xf32>
    %355 = arith.addf %353, %354 : vector<2x8x32xf32>
    %cst_159 = arith.constant 0.000000e+00 : f32
    %356 = vector.broadcast %cst_159 : f32 to vector<2x8x32xf32>
    %357 = arith.maximumf %355, %356 : vector<2x8x32xf32>
    "tpu.trace_start"() <{level = 10 : i32, message = "tsh,thg->tsg"}> : () -> ()
    %cst_160 = arith.constant dense<0.000000e+00> : vector<2x8x32xf32>
    %358 = tpu.matmul %357, %321, %cst_160 {dimension_numbers = #tpu.dot_dimension_numbers<[2], [1], [1], [2], [0, 0, 0, 1, 1, 2], [0], [0]>} : vector<2x8x32xf32>, vector<2x32x32xf32>, vector<2x8x32xf32> -> vector<2x8x32xf32>
    "tpu.trace_stop"() : () -> ()
    %359 = vector.broadcast %324 : vector<2x1x32xf32> to vector<2x8x32xf32>
    %360 = arith.addf %358, %359 : vector<2x8x32xf32>
    %cst_161 = arith.constant 0.000000e+00 : f32
    %361 = vector.broadcast %cst_161 : f32 to vector<2x8x32xf32>
    %362 = arith.maximumf %360, %361 : vector<2x8x32xf32>
    "tpu.trace_start"() <{level = 10 : i32, message = "tsg,tgo->tso"}> : () -> ()
    %cst_162 = arith.constant dense<0.000000e+00> : vector<2x8x1xf32>
    %363 = tpu.matmul %362, %327, %cst_162 {dimension_numbers = #tpu.dot_dimension_numbers<[2], [1], [1], [2], [0, 0, 0, 1, 1, 2], [0], [0]>} : vector<2x8x32xf32>, vector<2x32x1xf32>, vector<2x8x1xf32> -> vector<2x8x1xf32>
    "tpu.trace_stop"() : () -> ()
    %364 = vector.broadcast %330 : vector<2x1x1xf32> to vector<2x8x1xf32>
    %365 = arith.addf %363, %364 : vector<2x8x1xf32>
    %366 = arith.subf %365, %1 : vector<2x8x1xf32>
    %cst_163 = arith.constant 2.500000e-01 : f32
    %367 = vector.broadcast %cst_163 : f32 to vector<2x8x1xf32>
    %368 = arith.mulf %367, %366 : vector<2x8x1xf32>
    "tpu.trace_start"() <{level = 10 : i32, message = "tso,tgo->tsg"}> : () -> ()
    %cst_164 = arith.constant dense<0.000000e+00> : vector<2x8x32xf32>
    %369 = tpu.matmul %368, %327, %cst_164 {dimension_numbers = #tpu.dot_dimension_numbers<[2], [2], [1], [1], [0, 0, 0, 1, 1, 1], [0], [0]>} : vector<2x8x1xf32>, vector<2x32x1xf32>, vector<2x8x32xf32> -> vector<2x8x32xf32>
    %cst_165 = arith.constant 0.000000e+00 : f32
    "tpu.trace_stop"() : () -> ()
    %370 = vector.broadcast %cst_165 : f32 to vector<2x8x32xf32>
    %371 = arith.cmpf ogt, %360, %370 : vector<2x8x32xf32>
    %cst_166 = arith.constant 0.000000e+00 : f32
    %372 = vector.broadcast %cst_166 : f32 to vector<2x8x32xf32>
    %373 = arith.select %371, %369, %372 : vector<2x8x32xi1>, vector<2x8x32xf32>
    "tpu.trace_start"() <{level = 10 : i32, message = "tsg,thg->tsh"}> : () -> ()
    %cst_167 = arith.constant dense<0.000000e+00> : vector<2x8x32xf32>
    %374 = tpu.matmul %373, %321, %cst_167 {dimension_numbers = #tpu.dot_dimension_numbers<[2], [2], [1], [1], [0, 0, 0, 1, 1, 1], [0], [0]>} : vector<2x8x32xf32>, vector<2x32x32xf32>, vector<2x8x32xf32> -> vector<2x8x32xf32>
    %cst_168 = arith.constant 0.000000e+00 : f32
    "tpu.trace_stop"() : () -> ()
    %375 = vector.broadcast %cst_168 : f32 to vector<2x8x32xf32>
    %376 = arith.cmpf ogt, %355, %375 : vector<2x8x32xf32>
    %cst_169 = arith.constant 0.000000e+00 : f32
    %377 = vector.broadcast %cst_169 : f32 to vector<2x8x32xf32>
    %378 = arith.select %376, %374, %377 : vector<2x8x32xi1>, vector<2x8x32xf32>
    "tpu.trace_start"() <{level = 10 : i32, message = "tsg,tso->tgo"}> : () -> ()
    %cst_170 = arith.constant dense<0.000000e+00> : vector<2x32x1xf32>
    %379 = tpu.matmul %362, %368, %cst_170 {dimension_numbers = #tpu.dot_dimension_numbers<[1], [1], [2], [2], [0, 0, 0, 2, 1, 2], [0], [0]>} : vector<2x8x32xf32>, vector<2x8x1xf32>, vector<2x32x1xf32> -> vector<2x32x1xf32>
    "tpu.trace_stop"() : () -> ()
    %cst_171 = arith.constant dense<0.000000e+00> : vector<2x1xf32>
    %380 = vector.multi_reduction <add>, %368, %cst_171 [1] : vector<2x8x1xf32> to vector<2x1xf32>
    %381 = vector.shape_cast %380 : vector<2x1xf32> to vector<2x1x1xf32>
    "tpu.trace_start"() <{level = 10 : i32, message = "tsh,tsg->thg"}> : () -> ()
    %cst_172 = arith.constant dense<0.000000e+00> : vector<2x32x32xf32>
    %382 = tpu.matmul %357, %373, %cst_172 {dimension_numbers = #tpu.dot_dimension_numbers<[1], [1], [2], [2], [0, 0, 0, 2, 1, 2], [0], [0]>} : vector<2x8x32xf32>, vector<2x8x32xf32>, vector<2x32x32xf32> -> vector<2x32x32xf32>
    "tpu.trace_stop"() : () -> ()
    %cst_173 = arith.constant dense<0.000000e+00> : vector<2x32xf32>
    %383 = vector.multi_reduction <add>, %373, %cst_173 [1] : vector<2x8x32xf32> to vector<2x32xf32>
    %384 = vector.shape_cast %383 : vector<2x32xf32> to vector<2x1x32xf32>
    "tpu.trace_start"() <{level = 10 : i32, message = "tsi,tsh->tih"}> : () -> ()
    %cst_174 = arith.constant dense<0.000000e+00> : vector<2x4x32xf32>
    %385 = tpu.matmul %0, %378, %cst_174 {dimension_numbers = #tpu.dot_dimension_numbers<[1], [1], [2], [2], [0, 0, 0, 2, 1, 2], [0], [0]>} : vector<2x8x4xf32>, vector<2x8x32xf32>, vector<2x4x32xf32> -> vector<2x4x32xf32>
    "tpu.trace_stop"() : () -> ()
    %cst_175 = arith.constant dense<0.000000e+00> : vector<2x32xf32>
    %386 = vector.multi_reduction <add>, %378, %cst_175 [1] : vector<2x8x32xf32> to vector<2x32xf32>
    %387 = vector.shape_cast %386 : vector<2x32xf32> to vector<2x1x32xf32>
    %cst_176 = arith.constant 0.00999999977 : f32
    %388 = vector.broadcast %cst_176 : f32 to vector<2x4x32xf32>
    %389 = arith.mulf %388, %385 : vector<2x4x32xf32>
    %390 = arith.subf %315, %389 : vector<2x4x32xf32>
    %cst_177 = arith.constant 0.00999999977 : f32
    %391 = vector.broadcast %cst_177 : f32 to vector<2x1x32xf32>
    %392 = arith.mulf %391, %387 : vector<2x1x32xf32>
    %393 = arith.subf %318, %392 : vector<2x1x32xf32>
    %cst_178 = arith.constant 0.00999999977 : f32
    %394 = vector.broadcast %cst_178 : f32 to vector<2x32x32xf32>
    %395 = arith.mulf %394, %382 : vector<2x32x32xf32>
    %396 = arith.subf %321, %395 : vector<2x32x32xf32>
    %cst_179 = arith.constant 0.00999999977 : f32
    %397 = vector.broadcast %cst_179 : f32 to vector<2x1x32xf32>
    %398 = arith.mulf %397, %384 : vector<2x1x32xf32>
    %399 = arith.subf %324, %398 : vector<2x1x32xf32>
    %cst_180 = arith.constant 0.00999999977 : f32
    %400 = vector.broadcast %cst_180 : f32 to vector<2x32x1xf32>
    %401 = arith.mulf %400, %379 : vector<2x32x1xf32>
    %402 = arith.subf %327, %401 : vector<2x32x1xf32>
    %cst_181 = arith.constant 0.00999999977 : f32
    %403 = vector.broadcast %cst_181 : f32 to vector<2x1x1xf32>
    %404 = arith.mulf %403, %381 : vector<2x1x1xf32>
    %405 = arith.subf %330, %404 : vector<2x1x1xf32>
    "tpu.trace_start"() <{level = 10 : i32, message = "tsi,tih->tsh"}> : () -> ()
    %cst_182 = arith.constant dense<0.000000e+00> : vector<2x8x32xf32>
    %406 = tpu.matmul %2, %390, %cst_182 {dimension_numbers = #tpu.dot_dimension_numbers<[2], [1], [1], [2], [0, 0, 0, 1, 1, 2], [0], [0]>} : vector<2x8x4xf32>, vector<2x4x32xf32>, vector<2x8x32xf32> -> vector<2x8x32xf32>
    "tpu.trace_stop"() : () -> ()
    %407 = vector.broadcast %393 : vector<2x1x32xf32> to vector<2x8x32xf32>
    %408 = arith.addf %406, %407 : vector<2x8x32xf32>
    %cst_183 = arith.constant 0.000000e+00 : f32
    %409 = vector.broadcast %cst_183 : f32 to vector<2x8x32xf32>
    %410 = arith.maximumf %408, %409 : vector<2x8x32xf32>
    "tpu.trace_start"() <{level = 10 : i32, message = "tsh,thg->tsg"}> : () -> ()
    %cst_184 = arith.constant dense<0.000000e+00> : vector<2x8x32xf32>
    %411 = tpu.matmul %410, %396, %cst_184 {dimension_numbers = #tpu.dot_dimension_numbers<[2], [1], [1], [2], [0, 0, 0, 1, 1, 2], [0], [0]>} : vector<2x8x32xf32>, vector<2x32x32xf32>, vector<2x8x32xf32> -> vector<2x8x32xf32>
    "tpu.trace_stop"() : () -> ()
    %412 = vector.broadcast %399 : vector<2x1x32xf32> to vector<2x8x32xf32>
    %413 = arith.addf %411, %412 : vector<2x8x32xf32>
    %cst_185 = arith.constant 0.000000e+00 : f32
    %414 = vector.broadcast %cst_185 : f32 to vector<2x8x32xf32>
    %415 = arith.maximumf %413, %414 : vector<2x8x32xf32>
    "tpu.trace_start"() <{level = 10 : i32, message = "tsg,tgo->tso"}> : () -> ()
    %cst_186 = arith.constant dense<0.000000e+00> : vector<2x8x1xf32>
    %416 = tpu.matmul %415, %402, %cst_186 {dimension_numbers = #tpu.dot_dimension_numbers<[2], [1], [1], [2], [0, 0, 0, 1, 1, 2], [0], [0]>} : vector<2x8x32xf32>, vector<2x32x1xf32>, vector<2x8x1xf32> -> vector<2x8x1xf32>
    "tpu.trace_stop"() : () -> ()
    %417 = vector.broadcast %405 : vector<2x1x1xf32> to vector<2x8x1xf32>
    %418 = arith.addf %416, %417 : vector<2x8x1xf32>
    %419 = arith.subf %418, %3 : vector<2x8x1xf32>
    %420 = arith.mulf %419, %419 : vector<2x8x1xf32>
    %cst_187 = arith.constant dense<0.000000e+00> : vector<2x8xf32>
    %421 = vector.multi_reduction <add>, %420, %cst_187 [2] : vector<2x8x1xf32> to vector<2x8xf32>
    %422 = vector.shape_cast %421 : vector<2x8xf32> to vector<2x8x1xf32>
    %cst_188 = arith.constant dense<0.000000e+00> : vector<2x1xf32>
    %423 = vector.multi_reduction <add>, %422, %cst_188 [1] : vector<2x8x1xf32> to vector<2x1xf32>
    %424 = vector.shape_cast %423 : vector<2x1xf32> to vector<2x1x1xf32>
    %425 = vector.shape_cast %424 : vector<2x1x1xf32> to vector<2x1xf32>
    %cst_189 = arith.constant 1.250000e-01 : f32
    %426 = vector.broadcast %cst_189 : f32 to vector<2x1xf32>
    %427 = arith.mulf %425, %426 : vector<2x1xf32>
    %cst_190 = arith.constant 0.000000e+00 : f32
    %428 = vector.broadcast %cst_190 : f32 to vector<2x2xf32>
    %429 = tpu.concatenate %33, %127, %202, %277, %352, %427, %428 in 1 : vector<2x1xf32>, vector<2x1xf32>, vector<2x1xf32>, vector<2x1xf32>, vector<2x1xf32>, vector<2x1xf32>, vector<2x2xf32> -> vector<2x8xf32>
    %c0_191 = arith.constant 0 : index
    %c0_192 = arith.constant 0 : index
    %430 = vector.load %arg11[%c0_191, %c0_192] : memref<2x8xf32, #tpu.memory_space<vmem>>, vector<2x8xf32>
    tpu.vector_store %arg11[%c0_191, %c0_192], %429 {strides = array<i32>} : memref<2x8xf32, #tpu.memory_space<vmem>>, vector<2x8xf32>,
    return
  }
  func.func @transform_0(%arg0: i32) -> (i32, i32, i32) {
    %c0_i32 = arith.constant 0 : i32
    %c0_i32_0 = arith.constant 0 : i32
    %c0_i32_1 = arith.constant 0 : i32
    return %arg0, %c0_i32, %c0_i32_0 : i32, i32, i32
  }
  func.func @transform_1(%arg0: i32) -> (i32, i32, i32) {
    %c0_i32 = arith.constant 0 : i32
    %c0_i32_0 = arith.constant 0 : i32
    %c0_i32_1 = arith.constant 0 : i32
    return %arg0, %c0_i32, %c0_i32_0 : i32, i32, i32
  }
  func.func @transform_2(%arg0: i32) -> (i32, i32, i32) {
    %c0_i32 = arith.constant 0 : i32
    %c0_i32_0 = arith.constant 0 : i32
    %c0_i32_1 = arith.constant 0 : i32
    return %arg0, %c0_i32, %c0_i32_0 : i32, i32, i32
  }
  func.func @transform_3(%arg0: i32) -> (i32, i32, i32) {
    %c0_i32 = arith.constant 0 : i32
    %c0_i32_0 = arith.constant 0 : i32
    %c0_i32_1 = arith.constant 0 : i32
    return %arg0, %c0_i32, %c0_i32_0 : i32, i32, i32
  }
  func.func @transform_4(%arg0: i32) -> (i32, i32) {
    %c0_i32 = arith.constant 0 : i32
    %c0_i32_0 = arith.constant 0 : i32
    %c0_i32_1 = arith.constant 0 : i32
    return %c0_i32, %c0_i32_0 : i32, i32
  }
  func.func @transform_5(%arg0: i32) -> (i32, i32) {
    %c0_i32 = arith.constant 0 : i32
    %c0_i32_0 = arith.constant 0 : i32
    %c0_i32_1 = arith.constant 0 : i32
    return %c0_i32, %c0_i32_0 : i32, i32
  }
  func.func @transform_6(%arg0: i32) -> (i32, i32) {
    %c0_i32 = arith.constant 0 : i32
    %c0_i32_0 = arith.constant 0 : i32
    %c0_i32_1 = arith.constant 0 : i32
    return %c0_i32, %c0_i32_0 : i32, i32
  }
  func.func @transform_7(%arg0: i32) -> (i32, i32) {
    %c0_i32 = arith.constant 0 : i32
    %c0_i32_0 = arith.constant 0 : i32
    %c0_i32_1 = arith.constant 0 : i32
    return %c0_i32, %c0_i32_0 : i32, i32
  }
  func.func @transform_8(%arg0: i32) -> (i32, i32) {
    %c0_i32 = arith.constant 0 : i32
    %c0_i32_0 = arith.constant 0 : i32
    %c0_i32_1 = arith.constant 0 : i32
    return %c0_i32, %c0_i32_0 : i32, i32
  }
  func.func @transform_9(%arg0: i32) -> (i32, i32) {
    %c0_i32 = arith.constant 0 : i32
    %c0_i32_0 = arith.constant 0 : i32
    %c0_i32_1 = arith.constant 0 : i32
    return %c0_i32, %c0_i32_0 : i32, i32
  }
  func.func @transform_10(%arg0: i32) -> (i32, i32) {
    %c0_i32 = arith.constant 0 : i32
    %c0_i32_0 = arith.constant 0 : i32
    return %arg0, %c0_i32 : i32, i32
  }
}

</mosaic_0001>

<bundles_post_ra>
// kernel: tpu_custom_call.1
= control target key start
LH: loop header
LB: loop body
LE: loop exit
PB: predicated region body
PF: predicated region fallthrough
CT: control target
= control target key end

     0   :  { %s14512_s0 = inlined_call_operand.vmem [shape: f32[2,8,4], index: 0, kind: input, shape index: {}]   ;;  %s14513_s1 = inlined_call_operand.vmem [shape: f32[2,8,1], index: 1, kind: input, shape index: {}]   ;;  %s14514_s2 = inlined_call_operand.vmem [shape: f32[2,8,4], index: 2, kind: input, shape index: {}]   ;;  %s14515_s3 = inlined_call_operand.vmem [shape: f32[2,8,1], index: 3, kind: input, shape index: {}]   ;;  %s14516_s4 = inlined_call_operand.vmem [shape: f32[4,32], index: 4, kind: input, shape index: {}]   ;;  %s14517_s5 = inlined_call_operand.vmem [shape: f32[1,32], index: 5, kind: input, shape index: {}]   ;;  %s14518_s6 = inlined_call_operand.vmem [shape: f32[32,32], index: 6, kind: input, shape index: {}]   ;;  %s14519_s7 = inlined_call_operand.vmem [shape: f32[1,32], index: 7, kind: input, shape index: {}]   ;;  %s14520_s8 = inlined_call_operand.vmem [shape: f32[32,1], index: 8, kind: input, shape index: {}]   ;;  %s14521_s9 = inlined_call_operand.<no memory space> [shape: f32[1,1], index: 9, kind: input, shape index: {}]   ;;  %s14522_s10 = inlined_call_operand.hbm [shape: f32[2,8], index: 10, kind: output, shape index: {}]  }
   0x1   :  { %v15_v0 = vstv %s14521_s9 }
   0x2   :  { %16 = vst [vmem:[#allocation2] sm:$0x1] %v15_v0 }
   0x3   :  { %v12524_v1 = vld [vmem:[%s14516_s4] sm:$0xf]  ;;  %vm71_vm0 = vcmask 1043456   ;;  %vm64_vm1 = vcmask 31744   ;;  %v12534_v3 = vld [vmem:[%s14514_s2 + $0x8] sm:$0xff] }
   0x4   :  { %v12529_v2 = vld [vmem:[%s14514_s2] sm:$0xff]  ;;  %11057 = vmatprep.subr.msk.mxu0 %vm71_vm0, %v12524_v1  ;;  %v12548_v5 = vld [vmem:[%s14518_s6 + $0x8] sm:$0xff] }
   0x5   :  { %11059 = vmatprep.mubr.msk.f32.mxu0 %vm64_vm1, %v12529_v2  ;;  %v12543_v4 = vld [vmem:[%s14518_s6] sm:$0xff]  ;;  %11058 = vmatpush3.msk.msra.mxu0 %vm71_vm0, %v12524_v1 }
   0x6   :  { %v12554_v6 = vpack.c.bf16 %v12548_v5, %v12543_v4 }
   0x7   :  { %17 = vsyncpa [#allocation4], 0  ;;  %11060 = vmatmul.mubr.msk.f32.vlgmr.msra.gmra.mrb[0].mxu0 %vm64_vm1, %v12534_v3  ;;  %v12563_v7 = vld [vmem:[%s14518_s6 + $0x10] sm:$0xff]  ;;  %v12568_v8 = vld [vmem:[%s14518_s6 + $0x18] sm:$0xff]  ;;  %v59_v13 = vlaneseq  ;;  %vm158_vm2 = vcmask 261120   ;;  %vm335_vm3 = vcmask 7168  }
   0x8   :  { %12006 = vmatprep.subr.bf16.mxu1 %v12554_v6  ;;  %v12572_v9 = vpack.c.bf16 %v12568_v8, %v12563_v7  ;;  %v12581_v10 = vld [vmem:[%s14520_s8] sm:$0xff]  ;;  %v12586_v11 = vld [vmem:[%s14520_s8 + $0x8] sm:$0xff]  ;;  %v12620_v26 = vld [vmem:[%s14520_s8 + $0x10] sm:$0xff]  ;;  %v14546_v43 = vmov 0  ;;  %v14549_v44 = vmov 0  ;;  %vm10252_vm6 = vcmask 1041409  }
   0x9   :  { %12008 = vmatpush3.bf16.msra.mxu1 %v12554_v6  ;;  %v12013_v12 = vpack.c.bf16 %v12586_v11, %v12581_v10  ;;  %v60_v14 = vshrl.u32 %v59_v13, 7  ;;  %v12595_v16 = vld [vmem:[%s14517_s5] sm:$0x1]  ;;  %v12613_v25 = vld [vmem:[%s14512_s0 + $0x8] sm:$0xff]  ;;  %v12625_v27 = vld [vmem:[%s14520_s8 + $0x18] sm:$0xff]  ;;  %vm829_vm7 = vcmask 64512  }
   0xa   :  { %12010 = vmatprep.subr.bf16.mxu1 %v12572_v9  ;;  %v12602_v24 = vld [vmem:[%s14512_s0] sm:$0xff]  ;;  %v12017_v28 = vpack.c.bf16 %v12625_v27, %v12620_v26  ;;  %vm12653_vm4 = vmpackc.low %vm335_vm3, %vm335_vm3  ;;  %v12681_v47 = vld [vmem:[%s14515_s3 + $0x8] sm:$0xff]  ;;  %vm12455_vm10 = vmmov 0   ;;  %s12458_s25 = smov 3   ;;  %s12459_s26 = smov 4  }
   0xb   :  { %12014 = vmatprep.subr.bf16.mxu0 %v12013_v12  ;;  %v12590_v15 = vsub.s32 0, %v60_v14  ;;  %v12633_v29 = vld [vmem:[%s14519_s7] sm:$0x1]  ;;  %v14547_v43 = vsel %vm12653_vm4, 4294967295, %v14546_v43  ;;  %vm12661_vm5 = vmpackc.low %vm158_vm2, %vm158_vm2  ;;  %s12460_s27 = smov 1   ;;  %s12462_s11 = smov [#allocation3]  }
   0xc   :  { %12016 = vmatpush3.bf16.msra.mxu0 %v12013_v12  ;;  %14548 = vst [vmem:[#allocation6_spill] sm:$0xff] %v14547_v43  ;;  %v14550_v44 = vsel %vm12661_vm5, 4294967295, %v14549_v44  ;;  %v12674_v45 = vld [vmem:[#allocation2] sm:$0x1]  ;;  %s10303_s12 = sshll.u32 %s12462_s11, 4  ;;  %s10304_s12 = int_to_ptr.vmem [resolvable:$true] %s10303_s12 }
   0xd   :  { %12012 = vmatpush3.bf16.msra.mxu1 %v12572_v9  ;;  %v62_v17 = vrot.slane %v12595_v16, %v12590_v15  ;;  %12018 = vmatprep.subr.bf16.mxu0 %v12017_v28  ;;  %v156_v30 = vrot.slane %v12633_v29, %v12590_v15  ;;  %14551 = vst [vmem:[#allocation7_spill] sm:$0xff] %v14550_v44  ;;  %v12686_v50 = vld [vmem:[%s14515_s3] sm:$0xff]  ;;  %s12430_s13 = scalar_lea.vmem %s10304_s12, 32  ;;  %p12435_p1 = scmp.lt.s32.totalorder %s10304_s12, %s10304_s12 }
   0xe   :  { %11084 = vmatprep.subr.msk.mxu1 %vm71_vm0, %v12524_v1  ;;  %v246_v46 = vrot.slane %v12674_v45, %v12590_v15  ;;  %p12431_p0 = scmp.ne.s32.totalorder %s10304_s12, %s12430_s13  ;;  %p12436_p2 = scmp.lt.s32.totalorder %s12430_s13, %s12430_s13 }
  0x10   :  { %12020 = vmatpush3.bf16.msra.mxu0 %v12017_v28  ;;  %p12437_p3 = por %p12436_p2, %p12435_p1 }
  0x11   :  { %12022 = vmatprep.subr.bf16.mxu0 %v12554_v6 }
  0x12   :  { %p12438_p4 = pnand %p12437_p3, %p12431_p0 }
  0xda   :  { %v11061_v18 = vpop.f32.mrb[0].mxu0 }
  0xdb   :  { %v147_v19 = vadd.f32 %v11061_v18, %v62_v17  ;;  %v141_v20 = vpop.f32.mrb[1].mxu0 }
  0xdc   :  { %v142_v21 = vadd.f32 %v141_v20, %v62_v17 }
  0xdd   :  { %v151_v23 = vmax.f32 %v147_v19, 0.0 }
  0xde   :  { %v150_v22 = vmax.f32 %v142_v21, 0.0 }
  0xe0   :  { %11070 = vmatprep.mubr.msk.f32.mxu1 %vm158_vm2, %v150_v22 }
  0xe1   :  { %11071 = vmatmul.mubr.msk.f32.vlgmr.msra.gmra.mrb[0].mxu1 %vm158_vm2, %v151_v23 }
  0xe2   :  { %11085 = vmatpush3.msk.msra.mxu1 %vm71_vm0, %v12524_v1  ;;  %11086 = vmatprep.mubr.msk.f32.mxu1 %vm64_vm1, %v12602_v24 }
  0xe3   :  { %12030 = vmatprep.subr.bf16.mxu1 %v12013_v12 }
  0xe5   :  { %11087 = vmatmul.mubr.msk.f32.vlgmr.msra.gmra.mrb[2].mxu1 %vm64_vm1, %v12613_v25 }
  0xe6   :  { %12032 = vmatpush3.bf16.msra.mxu1 %v12013_v12 }
  0xe7   :  { %12034 = vmatprep.subr.bf16.mxu1 %v12017_v28 }
  0xea   :  { %12036 = vmatpush3.bf16.msra.mxu1 %v12017_v28 }
  0xeb   :  { %12051 = vmatprep.subr.msk.bf16.mxu1 %vm12661_vm5, %v12554_v6 }
 0x1b4   :  { %v11072_v31 = vpop.f32.mrb[0].mxu1 }
 0x1b5   :  { %v237_v32 = vadd.f32 %v11072_v31, %v156_v30  ;;  %v231_v33 = vpop.f32.mrb[1].mxu1 }
 0x1b6   :  { %v232_v34 = vadd.f32 %v231_v33, %v156_v30 }
 0x1b7   :  { %v241_v37 = vmax.f32 %v237_v32, 0.0 }
 0x1b8   :  { %v240_v35 = vmax.f32 %v232_v34, 0.0  ;;  %v11088_v36 = vpop.f32.mrb[2].mxu1 }
 0x1b9   :  { %v424_v38 = vpop.f32.mrb[3].mxu1  ;;  %v12643_v41 = vadd.f32 %v11088_v36, %v62_v17  ;;  %v12721_v36 = vld [vmem:[%s14513_s1] sm:$0xff] }
 0x1ba   :  { %v12637_v39 = vadd.f32 %v424_v38, %v62_v17  ;;  %11081 = vmatprep.mubr.msk.f32.mxu0 %vm158_vm2, %v240_v35 }
 0x1bb   :  { %11082 = vmatmul.mubr.msk.f32.vlgmr.msra.gmra.mrb[2].mxu0 %vm158_vm2, %v241_v37  ;;  %v434_v42 = vmax.f32 %v12643_v41, 0.0  ;;  %vm794_vm11 = vcmp.gt.f32.partialorder %v12643_v41, 0.0 }
 0x1bc   :  { %12024 = vmatpush3.bf16.msra.mxu0 %v12554_v6  ;;  %v433_v40 = vmax.f32 %v12637_v39, 0.0  ;;  %vm793_vm12 = vcmp.gt.f32.partialorder %v12637_v39, 0.0 }
 0x1bd   :  { %12026 = vmatprep.subr.bf16.mxu0 %v12572_v9 }
 0x1be   :  { %1070 = vxpose.xlu1.b32.start.end [1/1] (short) (narrow) %v433_v40, 32  ;;  %11097 = vmatprep.mubr.msk.f32.mxu0 %vm158_vm2, %v433_v40 }
 0x1c0   :  { %12028 = vmatpush3.bf16.msra.mxu0 %v12572_v9 }
 0x1c1   :  { %12039 = vmatprep.subr.msk.bf16.mxu0 %vm12653_vm4, %v12013_v12 }
 0x1c3   :  { %11098 = vmatmul.mubr.msk.f32.vlgmr.msra.gmra.mrb[4].mxu0 %vm158_vm2, %v434_v42 }
 0x1c9   :  { %12042 = vmatpush3.bf16.xpose.msk.msra.mxu0 %vm12653_vm4, %v12013_v12 }
 0x1ca   :  { %12045 = vmatprep.subr.msk.bf16.mxu0 %vm12653_vm4, %v12017_v28 }
 0x1cb   :  { %1199 = vxpose.xlu1.b32.start.end [1/1] (short) (narrow) %v434_v42, 32 }
 0x1d1   :  { %12048 = vmatpush3.bf16.xpose.msk.msra.mxu0 %vm12653_vm4, %v12017_v28 }
 0x1d8   :  { %1447 = vxpose.xlu1.b32.start.end [1/1] (short) (narrow) %v12613_v25, 8 }
 0x28e   :  { %v11083_v48 = vpop.f32.mrb[2].mxu0 }
 0x28f   :  { %v326_v49 = vadd.f32 %v11083_v48, %v246_v46  ;;  %v320_v51 = vpop.f32.mrb[3].mxu0 }
 0x290   :  { %v321_v52 = vadd.f32 %v320_v51, %v246_v46 }
 0x291   :  { %v330_v53 = vsub.f32 %v326_v49, %v12681_v47 }
 0x292   :  { %v329_v54 = vsub.f32 %v321_v52, %v12686_v50 }
 0x293   :  { %v332_v55 = vmul.f32 %v330_v53, %v330_v53  ;;  %v1086_v53 = vpop.trf.xlu1 }
 0x294   :  { %v331_v56 = vmul.f32 %v329_v54, %v329_v54 }
 0x295   :  { %v343_v57 = vsel %vm335_vm3, %v332_v55, 0.0 }
 0x296   :  { %v344_v58 = vrot.slane %v343_v57, 4  ;;  %v336_v59 = vsel %vm335_vm3, %v331_v56, 0.0  ;;  %v11099_v60 = vpop.f32.mrb[4].mxu0 }
 0x297   :  { %v337_v61 = vrot.slane %v336_v59, 4  ;;  %v12692_v62 = vadd.f32 %v11099_v60, %v156_v30  ;;  %v507_v63 = vpop.f32.mrb[5].mxu0  ;;  %v1087_v54 = vpop.trf.xlu1 }
 0x298   :  { %v345_v0 = vadd.f32 %v344_v58, %v343_v57  ;;  %v12694_v12 = vadd.f32 %v507_v63, %v156_v30 }
 0x299   :  { %v338_v13 = vadd.f32 %v337_v61, %v336_v59  ;;  %v517_v19 = vmax.f32 %v12692_v62, 0.0  ;;  %vm697_vm8 = vcmp.gt.f32.partialorder %v12692_v62, 0.0 }
 0x29a   :  { %v346_v14 = vrot.slane %v345_v0, 2  ;;  %v516_v17 = vmax.f32 %v12694_v12, 0.0  ;;  %vm696_vm9 = vcmp.gt.f32.partialorder %v12694_v12, 0.0 }
 0x29b   :  { %v339_v18 = vrot.slane %v338_v13, 2  ;;  %v1088_v55 = vpop.trf.xlu1 }
 0x29c   :  { %v347_v20 = vadd.f32 %v346_v14, %v345_v0  ;;  %797 = vxpose.xlu0.b32.start.end [1/1] (short) (narrow) %v516_v17, 32  ;;  %11108 = vmatprep.mubr.msk.f32.mxu1 %vm158_vm2, %v516_v17 }
 0x29d   :  { %v340_v21 = vadd.f32 %v339_v18, %v338_v13  ;;  %11109 = vmatmul.mubr.msk.f32.vlgmr.msra.gmra.mrb[4].mxu1 %vm158_vm2, %v517_v19 }
 0x29e   :  { %v348_v22 = vrot.slane %v347_v20, 1  ;;  %12054 = vmatpush3.bf16.xpose.msk.msra.mxu1 %vm12661_vm5, %v12554_v6  ;;  %v12716_v6 = vld [vmem:[%s14513_s1 + $0x8] sm:$0xff] }
 0x29f   :  { %v341_v23 = vrot.slane %v340_v21, 1  ;;  %12057 = vmatprep.subr.msk.bf16.mxu1 %vm12661_vm5, %v12572_v9  ;;  %v1089_v57 = vpop.trf.xlu1 }
 0x2a0   :  { %v349_v28 = vadd.f32 %v348_v22, %v347_v20 }
 0x2a1   :  { %v342_v30 = vadd.f32 %v341_v23, %v340_v21 }
 0x2a2   :  { %v351_v31 = vmul.f32 0.125, %v349_v28 }
 0x2a3   :  { %v350_v32 = vmul.f32 0.125, %v342_v30  ;;  %v1215_v59 = vpop.trf.xlu1 }
 0x2a5   :  { %v12707_v33 = vsel %vm10252_vm6, %v351_v31, %v350_v32 }
 0x2a6   :  { %14552 = vst [vmem:[#allocation8_spill] sm:$0xff] %v12707_v33  ;;  %12060 = vmatpush3.bf16.xpose.msk.msra.mxu1 %vm12661_vm5, %v12572_v9 }
 0x2a7   :  { %v1216_v12 = vpop.trf.xlu1 }
 0x2a9   :  { %927 = vxpose.xlu0.b32.start.end [1/1] (short) (narrow) %v517_v19, 32  ;;  %v14523_v19 = vmov 0.0  }
 0x2ab   :  { %v1217_v17 = vpop.trf.xlu1 }
 0x2af   :  { %v1218_v18 = vpop.trf.xlu1 }
 0x2b3   :  { %v12783_v23 = vpop.trf.xlu1 }
 0x2b4   :  { %14553 = vst [vmem:[#allocation9_spill] sm:$0xff] %v12783_v23 }
 0x2b6   :  { %1342 = vxpose.xlu0.b32.start.end [1/1] (short) (narrow) %v12602_v24, 8 }
 0x370   :  { %v11110_v34 = vpop.f32.mrb[4].mxu1 }
 0x371   :  { %v596_v35 = vadd.f32 %v11110_v34, %v246_v46  ;;  %v590_v37 = vpop.f32.mrb[5].mxu1 }
 0x372   :  { %v591_v38 = vadd.f32 %v590_v37, %v246_v46  ;;  %v813_v46 = vpop.trf.xlu0 }
 0x373   :  { %v600_v40 = vsub.f32 %v596_v35, %v12716_v6 }
 0x374   :  { %v599_v9 = vsub.f32 %v591_v38, %v12721_v36 }
 0x375   :  { %v12725_v42 = vmul.f32 0.25, %v600_v40 }
 0x376   :  { %v12727_v48 = vmul.f32 0.25, %v599_v9  ;;  %v814_v49 = vpop.trf.xlu0 }
 0x377   :  { %11141 = vmatprep.subr.mxu1 %v12725_v42 }
 0x378   :  { %11119 = vmatprep.mubr.msk.f32.mxu0 %vm335_vm3, %v12727_v48  ;;  %11133 = vmatprep.subr.mxu0 %v12727_v48 }
 0x379   :  { %11120 = vmatmul.mubr.msk.f32.vlgmr.msra.gmra.mrb[6].mxu0 %vm335_vm3, %v12725_v42 }
 0x37a   :  { %11134 = vmatpush3.msra.mxu0 %v12727_v48  ;;  %v815_v51 = vpop.trf.xlu0  ;;  %11135 = vmatprep.mubr.msk.f32.mxu0 %vm829_vm7, %v813_v46 }
 0x37d   :  { %11136 = vmatmul.mubr.msk.f32.vlgmr.msra.gmra.mrb[8].mxu0 %vm829_vm7, %v814_v49 }
 0x37e   :  { %11138 = vmatprep.mubr.msk.f32.mxu0 %vm829_vm7, %v815_v51  ;;  %v816_v52 = vpop.trf.xlu0 }
 0x381   :  { %11139 = vmatmul.mubr.msk.f32.gmra.mrb[10].mxu0 %vm829_vm7, %v816_v52 }
 0x382   :  { %11151 = vmatprep.mubr.msk.f32.mxu0 %vm829_vm7, %v1086_v53  ;;  %v943_v56 = vpop.trf.xlu0 }
 0x386   :  { %v944_v58 = vpop.trf.xlu0 }
 0x38a   :  { %v945_v13 = vpop.trf.xlu0 }
 0x38e   :  { %v946_v14 = vpop.trf.xlu0 }
 0x392   :  { %v12785_v28 = vpop.trf.xlu0 }
 0x393   :  { %14554 = vst [vmem:[#allocation10_spill] sm:$0xff] %v12785_v28 }
 0x44c   :  { %v11121_v60 = vpop.f32.mrb[6].mxu0 }
 0x44d   :  { %v12745_v61 = vsel %vm697_vm8, %v11121_v60, 0.0  ;;  %v687_v63 = vpop.f32.mrb[7].mxu0 }
 0x44e   :  { %11149 = vmatprep.subr.msk.mxu0 %vm696_vm9, %v687_v63  ;;  %v12747_v0 = vsel %vm696_vm9, %v687_v63, 0.0 }
 0x44f   :  { %11130 = vmatprep.mubr.msk.f32.mxu1 %vm158_vm2, %v12747_v0  ;;  %11150 = vmatpush3.msk.msra.mxu0 %vm696_vm9, %v687_v63 }
 0x450   :  { %11131 = vmatmul.mubr.msk.f32.vlgmr.msra.gmra.mrb[6].mxu1 %vm158_vm2, %v12745_v61  ;;  %11152 = vmatmul.mubr.msk.f32.vlgmr.msra.gmra.mrb[12].mxu0 %vm829_vm7, %v1087_v54  ;;  %v12775_v62 = vpop.f32.mrb[8].mxu0 }
 0x451   :  { %11142 = vmatpush3.msra.mxu1 %v12725_v42  ;;  %11143 = vmatprep.mubr.msk.f32.mxu1 %vm829_vm7, %v943_v56  ;;  %v12777_v20 = vpop.f32.mrb[9].mxu0 }
 0x452   :  { %11157 = vmatprep.subr.msk.mxu1 %vm697_vm8, %v11121_v60  ;;  %11154 = vmatprep.mubr.msk.f32.mxu0 %vm829_vm7, %v1088_v55 }
 0x453   :  { %11165 = vmatprep.subr.mxu0 %v14523_v19 }
 0x454   :  { %11144 = vmatmul.mubr.msk.f32.vlgmr.msra.gmra.mrb[8].mxu1 %vm829_vm7, %v944_v58  ;;  %11155 = vmatmul.mubr.msk.f32.gmra.mrb[14].mxu0 %vm829_vm7, %v1089_v57  ;;  %v12779_v21 = vpop.f32.mrb[10].mxu0 }
 0x455   :  { %11158 = vmatpush3.msk.msra.mxu1 %vm697_vm8, %v11121_v60  ;;  %11146 = vmatprep.mubr.msk.f32.mxu1 %vm829_vm7, %v945_v13  ;;  %v12781_v22 = vpop.f32.mrb[11].mxu0 }
 0x456   :  { %11170 = vmatprep.subr.mxu1 %v14523_v19  ;;  %11167 = vmatprep.mubr.msk.f32.mxu0 %vm12455_vm10, %v14523_v19 }
 0x458   :  { %11147 = vmatmul.mubr.msk.f32.gmra.mrb[10].mxu1 %vm829_vm7, %v946_v14 }
 0x459   :  { %11159 = vmatprep.mubr.msk.f32.mxu1 %vm829_vm7, %v1215_v59 }
 0x45c   :  { %11160 = vmatmul.mubr.msk.f32.vlgmr.msra.gmra.mrb[12].mxu1 %vm829_vm7, %v1216_v12 }
 0x45d   :  { %11162 = vmatprep.mubr.msk.f32.mxu1 %vm829_vm7, %v1217_v17 }
 0x460   :  { %11163 = vmatmul.mubr.msk.f32.gmra.mrb[14].mxu1 %vm829_vm7, %v1218_v18 }
 0x461   :  { %11172 = vmatprep.mubr.msk.f32.mxu1 %vm12455_vm10, %v14523_v19 }
 0x523   :  { %v11132_v30 = vpop.f32.mrb[6].mxu1  ;;  %v11153_v31 = vpop.f32.mrb[12].mxu0 }
 0x524   :  { %v12789_v32 = vsel %vm794_vm11, %v11132_v30, 0.0  ;;  %v784_v34 = vpop.f32.mrb[7].mxu1  ;;  %11171 = vmatpush3.msk.msra.mxu1 %vm794_vm11, %v11132_v30  ;;  %v1180_v35 = vpop.f32.mrb[13].mxu0  ;;  %v1575_v54 = vmul.f32 0.01, %v11153_v31 }
 0x525   :  { %v12791_v37 = vsel %vm793_vm12, %v784_v34, 0.0  ;;  %11166 = vmatpush3.msk.msra.mxu0 %vm793_vm12, %v784_v34  ;;  %11173 = vmatmul.mubr.msk.f32.vlgmr.msra.gmra.mrb[16].mxu1 %vm829_vm7, %v12783_v23  ;;  %v1574_v57 = vmul.f32 0.01, %v1180_v35 }
 0x526   :  { %11168 = vmatmul.mubr.msk.f32.vlgmr.msra.gmra.mrb[16].mxu0 %vm829_vm7, %v12785_v28  ;;  %11180 = vmatprep.subr.mxu1 %v14523_v19  ;;  %v12812_v59 = vsub.f32 %v12548_v5, %v1575_v54  ;;  %v14525_v54 = vmov 0.0|0.0  }
 0x527   :  { %v12798_v41 = vpop.f32.mrb[8].mxu1  ;;  %v11156_v38 = vpop.f32.mrb[14].mxu0  ;;  %11175 = vmatprep.subr.mxu0 %v14523_v19  ;;  %11182 = vmatprep.mubr.msk.f32.mxu1 %vm12455_vm10, %v14523_v19  ;;  %v12821_v34 = vsub.f32 %v12543_v4, %v1574_v57 }
 0x528   :  { %v12803_v39 = vpop.f32.mrb[9].mxu1  ;;  %v1190_v40 = vpop.f32.mrb[15].mxu0  ;;  %11177 = vmatprep.mubr.msk.f32.mxu0 %vm12455_vm10, %v14523_v19  ;;  %v1577_v35 = vmul.f32 0.01, %v11156_v38 }
 0x52a   :  { %v12850_v38 = vsub.f32 %v12568_v8, %v1577_v35 }
 0x52b   :  { %v12807_v9 = vpop.f32.mrb[10].mxu1 }
 0x52c   :  { %v12809_v46 = vpop.f32.mrb[11].mxu1 }
 0x52f   :  { %v11161_v49 = vpop.f32.mrb[12].mxu1 }
 0x530   :  { %v1309_v51 = vpop.f32.mrb[13].mxu1  ;;  %v1579_v55 = vmul.f32 0.01, %v11161_v49  ;;  %v1576_v49 = vmul.f32 0.01, %v1190_v40 }
 0x531   :  { %v1578_v56 = vmul.f32 0.01, %v1309_v51 }
 0x532   :  { %v12815_v14 = vsub.f32 %v12548_v5, %v1579_v55  ;;  %v12853_v40 = vsub.f32 %v12563_v7, %v1576_v49 }
 0x533   :  { %v11164_v52 = vpop.f32.mrb[14].mxu1  ;;  %v12818_v17 = vsub.f32 %v12543_v4, %v1578_v56 }
 0x534   :  { %v1319_v53 = vpop.f32.mrb[15].mxu1  ;;  %v1581_v60 = vmul.f32 0.01, %v11164_v52 }
 0x535   :  { %v1580_v18 = vmul.f32 0.01, %v1319_v53  ;;  %v12833_v5 = vpack.c.bf16 %v12815_v14, %v12818_v17 }
 0x536   :  { %v12836_v53 = vsub.f32 %v12568_v8, %v1581_v60  ;;  %v1552_v8 = vsel %vm158_vm2, %v12791_v37, 0.0 }
 0x537   :  { %v12839_v4 = vsub.f32 %v12563_v7, %v1580_v18  ;;  %v1559_v7 = vsel %vm158_vm2, %v12789_v32, 0.0  ;;  %v1553_v56 = vrot.slane %v1552_v8, 4  ;;  %v1599_v32 = vmul.f32 0.01, %v12798_v41 }
 0x538   :  { %v1560_v55 = vrot.slane %v1559_v7, 4 }
 0x53a   :  { %v1561_v57 = vadd.f32 %v1560_v55, %v1559_v7  ;;  %v1598_v7 = vmul.f32 0.01, %v12803_v39  ;;  %v1594_v55 = vmul.f32 0.01, %v12777_v20  ;;  %v1601_v39 = vmul.f32 0.01, %v12807_v9 }
 0x53c   :  { %v1562_v60 = vrot.slane %v1561_v57, 2  ;;  %v12904_v41 = vsub.f32 %v12581_v10, %v1598_v7  ;;  %v1335_v7 = vsel %vm158_vm2, %v12745_v61, 0.0 }
 0x5f8   :  { %v1548_v58 = vpop.f32.mrb[16].mxu1 }
 0x5f9   :  { %v1567_v63 = vmul.f32 0.01, %v1548_v58  ;;  %v1443_v13 = vpop.f32.mrb[16].mxu0  ;;  %v11174_v12 = vpop.f32.mrb[17].mxu1  ;;  %v1554_v58 = vadd.f32 %v1553_v56, %v1552_v8 }
 0x5fa   :  { %v1566_v30 = vmul.f32 0.01, %v1443_v13  ;;  %v11169_v31 = vpop.f32.mrb[17].mxu0  ;;  %v1563_v13 = vadd.f32 %v1562_v60, %v1561_v57  ;;  %v12897_v57 = vsub.f32 %v12586_v11, %v1599_v32 }
 0x5fb   :  { %v12824_v51 = vsub.f32 %v12524_v1, %v1567_v63  ;;  %v1555_v63 = vrot.slane %v1554_v58, 2 }
 0x5fc   :  { %v12827_v52 = vsub.f32 %v12524_v1, %v1566_v30  ;;  %v12847_v1 = vpack.c.bf16 %v12812_v59, %v12821_v34  ;;  %v1564_v18 = vrot.slane %v1563_v13, 1 }
 0x5fd   :  { %11181 = vmatpush3.msk.msra.mxu1 %vm71_vm0, %v12824_v51  ;;  %v1556_v12 = vadd.f32 %v1555_v63, %v1554_v58  ;;  %v1596_v58 = vmul.f32 0.01, %v12781_v22 }
 0x5fe   :  { %11176 = vmatpush3.msk.msra.mxu0 %vm71_vm0, %v12827_v52  ;;  %11183 = vmatmul.mubr.msk.f32.vlgmr.msra.gmra.mrb[18].mxu1 %vm64_vm1, %v12534_v3  ;;  %v12864_v3 = vpack.c.bf16 %v12836_v53, %v12839_v4  ;;  %v1565_v31 = vadd.f32 %v1564_v18, %v1563_v13  ;;  %v12921_v18 = vpack.c.bf16 %v12897_v57, %v12904_v41 }
 0x5ff   :  { %12067 = vmatprep.subr.bf16.mxu1 %v14525_v54  ;;  %11178 = vmatmul.mubr.msk.f32.vlgmr.msra.gmra.mrb[18].mxu0 %vm64_vm1, %v12529_v2  ;;  %v12871_v2 = vpack.c.bf16 %v12850_v38, %v12853_v40  ;;  %v1557_v30 = vrot.slane %v1556_v12, 1 }
 0x600   :  { %12061 = vmatprep.subr.bf16.mxu0 %v14525_v54  ;;  %12069 = vmatpush3.bf16.msra.mxu1 %v12833_v5  ;;  %v1571_v49 = vmul.f32 0.01, %v1565_v31 }
 0x601   :  { %12063 = vmatpush3.bf16.msra.mxu0 %v12847_v1  ;;  %12070 = vmatprep.subr.bf16.mxu1 %v14525_v54  ;;  %v1558_v35 = vadd.f32 %v1557_v30, %v1556_v12  ;;  %v12924_v30 = vsub.f32 %v12625_v27, %v1601_v39  ;;  %v1336_v39 = vrot.slane %v1335_v7, 4 }
 0x602   :  { %12064 = vmatprep.subr.bf16.mxu0 %v14525_v54  ;;  %11204 = vmatprep.mubr.msk.f32.mxu1 %vm12455_vm10, %v14523_v19  ;;  %v12886_v37 = vsub.f32 %v12595_v16, %v1571_v49  ;;  %v14557_v49 = vmov 0.0|0.0  }
 0x603   :  { %11193 = vmatprep.mubr.msk.f32.mxu0 %vm12455_vm10, %v14523_v19  ;;  %v1570_v19 = vmul.f32 0.01, %v1558_v35  ;;  %v12937_v35 = vsub.f32 %v12620_v26, %v1596_v58 }
 0x604   :  { %12072 = vmatpush3.bf16.msra.mxu1 %v12864_v3 }
 0x605   :  { %12066 = vmatpush3.bf16.msra.mxu0 %v12871_v2  ;;  %12079 = vmatprep.subr.bf16.mxu1 %v14525_v54  ;;  %v12890_v8 = vsub.f32 %v12595_v16, %v1570_v19  ;;  %v1600_v16 = vmul.f32 0.01, %v12809_v46  ;;  %14556 = vst [vmem:[#allocation12_spill] sm:$0xff] %v12937_v35 }
 0x606   :  { %12073 = vmatprep.subr.bf16.mxu0 %v14525_v54  ;;  %v1595_v54 = vmul.f32 0.01, %v12775_v62  ;;  %v12901_v62 = vrot.slane %v12886_v37, %v12590_v15 }
 0x607   :  { %v12910_v20 = vrot.slane %v12890_v8, %v12590_v15 }
 0x608   :  { %v12894_v56 = vsub.f32 %v12586_v11, %v1595_v54  ;;  %v12913_v54 = vsub.f32 %v12581_v10, %v1594_v55  ;;  %v1597_v11 = vmul.f32 0.01, %v12779_v21  ;;  %v12927_v10 = vsub.f32 %v12620_v26, %v1600_v16 }
 0x609   :  { %v1328_v55 = vsel %vm158_vm2, %v12747_v0, 0.0 }
 0x60a   :  { %v12931_v22 = vpack.c.bf16 %v12894_v56, %v12913_v54  ;;  %v12934_v31 = vsub.f32 %v12625_v27, %v1597_v11  ;;  %v12946_v32 = vpack.c.bf16 %v12924_v30, %v12927_v10  ;;  %v14558_v27 = vmov 0.0  }
 0x60b   :  { %v1329_v16 = vrot.slane %v1328_v55, 4 }
 0x60c   :  { %14555 = vst [vmem:[#allocation11_spill] sm:$0xff] %v12934_v31  ;;  %v12953_v26 = vpack.c.bf16 %v12934_v31, %v12937_v35 }
 0x60d   :  { %v1330_v11 = vadd.f32 %v1329_v16, %v1328_v55 }
 0x6d1   :  { %v1768_v19 = vpop.f32.mrb[18].mxu1 }
 0x6d2   :  { %v1769_v60 = vadd.f32 %v1768_v19, %v12901_v62  ;;  %v1695_v63 = vpop.f32.mrb[18].mxu0  ;;  %v11184_v13 = vpop.f32.mrb[19].mxu1  ;;  %v1337_v19 = vadd.f32 %v1336_v39, %v1335_v7 }
 0x6d3   :  { %v1696_v9 = vadd.f32 %v1695_v63, %v12910_v20  ;;  %v11179_v12 = vpop.f32.mrb[19].mxu0 }
 0x6d4   :  { %v1773_v46 = vmax.f32 %v1769_v60, 0.0  ;;  %v1338_v58 = vrot.slane %v1337_v19, 2  ;;  %v1331_v60 = vrot.slane %v1330_v11, 2 }
 0x6d5   :  { %v1772_v21 = vmax.f32 %v1696_v9, 0.0 }
 0x6d6   :  { %11205 = vmatmul.mubr.msk.f32.vlgmr.msra.gmra.mrb[20].mxu1 %vm158_vm2, %v1773_v46  ;;  %v1339_v63 = vadd.f32 %v1338_v58, %v1337_v19  ;;  %v1332_v13 = vadd.f32 %v1331_v60, %v1330_v11 }
 0x6d7   :  { %12081 = vmatpush3.bf16.msra.mxu1 %v12921_v18  ;;  %11194 = vmatmul.mubr.msk.f32.vlgmr.msra.gmra.mrb[20].mxu0 %vm158_vm2, %v1772_v21 }
 0x6d8   :  { %12075 = vmatpush3.bf16.msra.mxu0 %v12931_v22  ;;  %12082 = vmatprep.subr.bf16.mxu1 %v14557_v49  ;;  %v1340_v9 = vrot.slane %v1339_v63, 1  ;;  %v1333_v12 = vrot.slane %v1332_v13, 1 }
 0x6d9   :  { %12076 = vmatprep.subr.bf16.mxu0 %v14557_v49  ;;  %11226 = vmatprep.mubr.msk.f32.mxu1 %vm12455_vm10, %v14558_v27 }
 0x6da   :  { %11215 = vmatprep.mubr.msk.f32.mxu0 %vm12455_vm10, %v14558_v27  ;;  %v1341_v46 = vadd.f32 %v1340_v9, %v1339_v63  ;;  %v1334_v21 = vadd.f32 %v1333_v12, %v1332_v13 }
 0x6db   :  { %12084 = vmatpush3.bf16.msra.mxu1 %v12946_v32 }
 0x6dc   :  { %12078 = vmatpush3.bf16.msra.mxu0 %v12953_v26  ;;  %11234 = vmatprep.subr.mxu1 %v14558_v27  ;;  %v1591_v33 = vmul.f32 0.01, %v1341_v46  ;;  %v1590_v35 = vmul.f32 0.01, %v1334_v21 }
 0x6dd   :  { %11229 = vmatprep.subr.mxu0 %v14558_v27 }
 0x6de   :  { %v12966_v31 = vsub.f32 %v12633_v29, %v1591_v33  ;;  %v12969_v61 = vsub.f32 %v12633_v29, %v1590_v35 }
 0x6e0   :  { %v12973_v0 = vrot.slane %v12966_v31, %v12590_v15  ;;  %v12977_v55 = vrot.slane %v12969_v61, %v12590_v15 }
 0x7a9   :  { %v1928_v7 = vpop.f32.mrb[20].mxu1 }
 0x7aa   :  { %v1929_v39 = vadd.f32 %v1928_v7, %v12973_v0  ;;  %v1855_v16 = vpop.f32.mrb[20].mxu0  ;;  %v11206_v19 = vpop.f32.mrb[21].mxu1 }
 0x7ab   :  { %v1856_v11 = vadd.f32 %v1855_v16, %v12977_v55  ;;  %v11195_v33 = vpop.f32.mrb[21].mxu0 }
 0x7ac   :  { %v1933_v58 = vmax.f32 %v1929_v39, 0.0 }
 0x7ad   :  { %v1932_v60 = vmax.f32 %v1856_v11, 0.0 }
 0x7ae   :  { %11227 = vmatmul.mubr.msk.f32.vlgmr.msra.gmra.mrb[22].mxu1 %vm158_vm2, %v1933_v58 }
 0x7af   :  { %11235 = vmatpush3.msk.msra.mxu1 %vm71_vm0, %v12824_v51  ;;  %11216 = vmatmul.mubr.msk.f32.vlgmr.msra.gmra.mrb[22].mxu0 %vm158_vm2, %v1932_v60 }
 0x7b0   :  { %11230 = vmatpush3.msk.msra.mxu0 %vm71_vm0, %v12827_v52  ;;  %11236 = vmatprep.mubr.msk.f32.mxu1 %vm12455_vm10, %v14558_v27 }
 0x7b1   :  { %12091 = vmatprep.subr.bf16.mxu1 %v14557_v49  ;;  %11231 = vmatprep.mubr.msk.f32.mxu0 %vm12455_vm10, %v14558_v27 }
 0x7b2   :  { %11237 = vmatmul.mubr.msk.f32.vlgmr.msra.gmra.mrb[24].mxu1 %vm64_vm1, %v12613_v25  ;;  %12085 = vmatprep.subr.bf16.mxu0 %v14557_v49  ;;  %v1056_v25 = vsel %vm335_vm3, %v12727_v48, 0.0 }
 0x7b3   :  { %12093 = vmatpush3.bf16.msra.mxu1 %v12833_v5  ;;  %11232 = vmatmul.mubr.msk.f32.vlgmr.msra.gmra.mrb[24].mxu0 %vm64_vm1, %v12602_v24  ;;  %v1063_v24 = vsel %vm335_vm3, %v12725_v42, 0.0  ;;  %v1057_v35 = vrot.slane %v1056_v25, 4 }
 0x7b4   :  { %12087 = vmatpush3.bf16.msra.mxu0 %v12847_v1  ;;  %12094 = vmatprep.subr.bf16.mxu1 %v14557_v49  ;;  %v1064_v29 = vrot.slane %v1063_v24, 4 }
 0x7b5   :  { %12088 = vmatprep.subr.bf16.mxu0 %v14557_v49  ;;  %11258 = vmatprep.mubr.msk.f32.mxu1 %vm12455_vm10, %v14558_v27  ;;  %v1058_v13 = vadd.f32 %v1057_v35, %v1056_v25 }
 0x7b6   :  { %11247 = vmatprep.mubr.msk.f32.mxu0 %vm12455_vm10, %v14558_v27  ;;  %v1065_v63 = vadd.f32 %v1064_v29, %v1063_v24 }
 0x7b7   :  { %12096 = vmatpush3.bf16.msra.mxu1 %v12864_v3  ;;  %v1059_v12 = vrot.slane %v1058_v13, 2 }
 0x7b8   :  { %12090 = vmatpush3.bf16.msra.mxu0 %v12871_v2  ;;  %12103 = vmatprep.subr.bf16.mxu1 %v14557_v49  ;;  %v1066_v9 = vrot.slane %v1065_v63, 2 }
 0x7b9   :  { %12097 = vmatprep.subr.bf16.mxu0 %v14557_v49  ;;  %v1060_v21 = vadd.f32 %v1059_v12, %v1058_v13 }
 0x7ba   :  { %v1067_v46 = vadd.f32 %v1066_v9, %v1065_v63 }
 0x7bb   :  { %v1061_v39 = vrot.slane %v1060_v21, 1 }
 0x7bc   :  { %v1068_v7 = vrot.slane %v1067_v46, 1 }
 0x7bd   :  { %v1062_v19 = vadd.f32 %v1061_v39, %v1060_v21 }
 0x7be   :  { %v1069_v16 = vadd.f32 %v1068_v7, %v1067_v46 }
 0x7bf   :  { %v1610_v33 = vmul.f32 0.01, %v1062_v19 }
 0x7c0   :  { %v1611_v11 = vmul.f32 0.01, %v1069_v16 }
 0x7c1   :  { %v13017_v42 = vsub.f32 %v12674_v45, %v1610_v33 }
 0x7c2   :  { %v13014_v58 = vsub.f32 %v12674_v45, %v1611_v11 }
 0x7c3   :  { %v13025_v24 = vrot.slane %v13017_v42, %v12590_v15 }
 0x7c4   :  { %v13021_v48 = vrot.slane %v13014_v58, %v12590_v15 }
 0x881   :  { %v2088_v60 = vpop.f32.mrb[22].mxu1 }
 0x882   :  { %v2089_v25 = vadd.f32 %v2088_v60, %v13021_v48  ;;  %v2015_v29 = vpop.f32.mrb[22].mxu0  ;;  %v11228_v35 = vpop.f32.mrb[23].mxu1 }
 0x883   :  { %v2016_v63 = vadd.f32 %v2015_v29, %v13025_v24  ;;  %v11217_v13 = vpop.f32.mrb[23].mxu0 }
 0x884   :  { %v2093_v9 = vsub.f32 %v2089_v25, %v12681_v47 }
 0x885   :  { %v2092_v45 = vsub.f32 %v2016_v63, %v12686_v50  ;;  %v2250_v12 = vpop.f32.mrb[24].mxu1 }
 0x886   :  { %v2095_v46 = vmul.f32 %v2093_v9, %v2093_v9  ;;  %v13032_v21 = vadd.f32 %v2250_v12, %v12901_v62  ;;  %v2180_v7 = vpop.f32.mrb[24].mxu0  ;;  %v11238_v39 = vpop.f32.mrb[25].mxu1 }
 0x887   :  { %v2094_v16 = vmul.f32 %v2092_v45, %v2092_v45  ;;  %v13035_v19 = vadd.f32 %v2180_v7, %v12910_v20  ;;  %v11233_v11 = vpop.f32.mrb[25].mxu0 }
 0x888   :  { %v2105_v33 = vsel %vm335_vm3, %v2095_v46, 0.0  ;;  %v2255_v60 = vmax.f32 %v13032_v21, 0.0  ;;  %vm2899_vm15 = vcmp.gt.f32.partialorder %v13032_v21, 0.0 }
 0x889   :  { %v2106_v29 = vrot.slane %v2105_v33, 4  ;;  %v2098_v47 = vsel %vm335_vm3, %v2094_v16, 0.0  ;;  %v2254_v50 = vmax.f32 %v13035_v19, 0.0  ;;  %vm2898_vm8 = vcmp.gt.f32.partialorder %v13035_v19, 0.0 }
 0x88a   :  { %v2099_v25 = vrot.slane %v2098_v47, 4  ;;  %11259 = vmatmul.mubr.msk.f32.vlgmr.msra.gmra.mrb[26].mxu1 %vm158_vm2, %v2255_v60 }
 0x88b   :  { %v2107_v62 = vadd.f32 %v2106_v29, %v2105_v33  ;;  %12105 = vmatpush3.bf16.msra.mxu1 %v12921_v18  ;;  %11248 = vmatmul.mubr.msk.f32.vlgmr.msra.gmra.mrb[26].mxu0 %vm158_vm2, %v2254_v50 }
 0x88c   :  { %v2100_v20 = vadd.f32 %v2099_v25, %v2098_v47  ;;  %12099 = vmatpush3.bf16.msra.mxu0 %v12931_v22  ;;  %12106 = vmatprep.subr.bf16.mxu1 %v14557_v49 }
 0x88d   :  { %v2108_v35 = vrot.slane %v2107_v62, 2  ;;  %12100 = vmatprep.subr.bf16.mxu0 %v14557_v49  ;;  %11280 = vmatprep.mubr.msk.f32.mxu1 %vm12455_vm10, %v14558_v27 }
 0x88e   :  { %v2101_v63 = vrot.slane %v2100_v20, 2  ;;  %11269 = vmatprep.mubr.msk.f32.mxu0 %vm12455_vm10, %v14558_v27 }
 0x88f   :  { %v2109_v13 = vadd.f32 %v2108_v35, %v2107_v62  ;;  %12108 = vmatpush3.bf16.msra.mxu1 %v12946_v32 }
 0x890   :  { %v2102_v9 = vadd.f32 %v2101_v63, %v2100_v20  ;;  %12102 = vmatpush3.bf16.msra.mxu0 %v12953_v26  ;;  %12117 = vmatprep.subr.bf16.mxu1 %v14557_v49 }
 0x891   :  { %12109 = vmatprep.subr.bf16.mxu0 %v14557_v49  ;;  %v2110_v45 = vrot.slane %v2109_v13, 1 }
 0x892   :  { %v2103_v12 = vrot.slane %v2102_v9, 1 }
 0x893   :  { %v2111_v46 = vadd.f32 %v2110_v45, %v2109_v13 }
 0x894   :  { %v2104_v7 = vadd.f32 %v2103_v12, %v2102_v9 }
 0x895   :  { %v2113_v39 = vmul.f32 0.125, %v2111_v46 }
 0x896   :  { %v2112_v16 = vmul.f32 0.125, %v2104_v7 }
 0x898   :  { %v13056_v11 = vsel %vm10252_vm6, %v2113_v39, %v2112_v16 }
 0x899   :  { %14559 = vst [vmem:[#allocation13_spill] sm:$0xff] %v13056_v11 }
 0x95d   :  { %v2398_v33 = vpop.f32.mrb[26].mxu1 }
 0x95e   :  { %v13059_v29 = vadd.f32 %v2398_v33, %v12973_v0  ;;  %v2325_v47 = vpop.f32.mrb[26].mxu0  ;;  %v11260_v25 = vpop.f32.mrb[27].mxu1 }
 0x95f   :  { %v13062_v62 = vadd.f32 %v2325_v47, %v12977_v55  ;;  %v11249_v20 = vpop.f32.mrb[27].mxu0 }
 0x960   :  { %v2403_v35 = vmax.f32 %v13059_v29, 0.0  ;;  %vm2725_vm13 = vcmp.gt.f32.partialorder %v13059_v29, 0.0 }
 0x961   :  { %v2402_v63 = vmax.f32 %v13062_v62, 0.0  ;;  %vm2724_vm14 = vcmp.gt.f32.partialorder %v13062_v62, 0.0 }
 0x962   :  { %3031 = vxpose.xlu1.b32.start.end [1/1] (short) (narrow) %v2403_v35, 32  ;;  %11281 = vmatmul.mubr.msk.f32.vlgmr.msra.gmra.mrb[28].mxu1 %vm158_vm2, %v2403_v35 }
 0x963   :  { %12120 = vmatpush3.bf16.xpose.msk.msra.mxu1 %vm12653_vm4, %v12921_v18  ;;  %2902 = vxpose.xlu0.b32.start.end [1/1] (short) (narrow) %v2402_v63, 32 }
 0x964   :  { %11270 = vmatmul.mubr.msk.f32.vlgmr.msra.gmra.mrb[28].mxu0 %vm158_vm2, %v2402_v63  ;;  %12121 = vmatprep.subr.bf16.mxu1 %v14557_v49 }
 0x965   :  { %12112 = vmatpush3.bf16.xpose.msk.msra.mxu0 %vm12653_vm4, %v12931_v22  ;;  %11302 = vmatprep.mubr.msk.f32.mxu1 %vm12455_vm10, %v14558_v27 }
 0x966   :  { %12113 = vmatprep.subr.bf16.mxu0 %v14557_v49  ;;  %11291 = vmatprep.mubr.msk.f32.mxu0 %vm12455_vm10, %v14558_v27 }
 0x96b   :  { %12124 = vmatpush3.bf16.xpose.msk.msra.mxu1 %vm12653_vm4, %v12946_v32 }
 0x96c   :  { %12133 = vmatprep.subr.bf16.mxu1 %v14557_v49 }
 0x96d   :  { %12116 = vmatpush3.bf16.xpose.msk.msra.mxu0 %vm12653_vm4, %v12953_v26 }
 0x96e   :  { %12125 = vmatprep.subr.bf16.mxu0 %v14557_v49 }
 0x96f   :  { %3303 = vxpose.xlu1.b32.start.end [1/1] (short) (narrow) %v2255_v60, 32 }
 0x970   :  { %3174 = vxpose.xlu0.b32.start.end [1/1] (short) (narrow) %v2254_v50, 32 }
 0xa35   :  { %v2546_v18 = vpop.f32.mrb[28].mxu1 }
 0xa36   :  { %v2547_v22 = vadd.f32 %v2546_v18, %v13021_v48  ;;  %v11282_v0 = vpop.f32.mrb[29].mxu1 }
 0xa37   :  { %v2473_v55 = vpop.f32.mrb[28].mxu0 }
 0xa38   :  { %v2551_v13 = vsub.f32 %v2547_v22, %v12716_v6  ;;  %v2474_v9 = vadd.f32 %v2473_v55, %v13025_v24  ;;  %v11271_v32 = vpop.f32.mrb[29].mxu0  ;;  %v3047_v6 = vpop.trf.xlu1 }
 0xa3a   :  { %v13091_v45 = vmul.f32 0.25, %v2551_v13  ;;  %v2550_v12 = vsub.f32 %v2474_v9, %v12721_v36  ;;  %v2918_v36 = vpop.trf.xlu0 }
 0xa3c   :  { %v13094_v46 = vmul.f32 0.25, %v2550_v12  ;;  %11303 = vmatmul.mubr.msk.f32.vlgmr.msra.gmra.mrb[30].mxu1 %vm335_vm3, %v13091_v45 }
 0xa3d   :  { %12136 = vmatpush3.bf16.xpose.msk.msra.mxu1 %vm12661_vm5, %v12833_v5  ;;  %11324 = vmatprep.mubr.msk.f32.mxu1 %vm12455_vm10, %v14558_v27  ;;  %v3048_v5 = vpop.trf.xlu1 }
 0xa3e   :  { %11292 = vmatmul.mubr.msk.f32.vlgmr.msra.gmra.mrb[30].mxu0 %vm335_vm3, %v13094_v46  ;;  %12137 = vmatprep.subr.bf16.mxu1 %v14557_v49 }
 0xa3f   :  { %12128 = vmatpush3.bf16.xpose.msk.msra.mxu0 %vm12661_vm5, %v12847_v1  ;;  %11313 = vmatprep.mubr.msk.f32.mxu0 %vm12455_vm10, %v14558_v27  ;;  %v2919_v1 = vpop.trf.xlu0 }
 0xa40   :  { %12129 = vmatprep.subr.bf16.mxu0 %v14557_v49 }
 0xa41   :  { %v3049_v26 = vpop.trf.xlu1 }
 0xa43   :  { %v2920_v48 = vpop.trf.xlu0 }
 0xa45   :  { %12140 = vmatpush3.bf16.xpose.msk.msra.mxu1 %vm12661_vm5, %v12864_v3  ;;  %v3050_v24 = vpop.trf.xlu1 }
 0xa46   :  { %11335 = vmatprep.subr.mxu1 %v13091_v45 }
 0xa47   :  { %12132 = vmatpush3.bf16.xpose.msk.msra.mxu0 %vm12661_vm5, %v12871_v2  ;;  %v2921_v60 = vpop.trf.xlu0 }
 0xa48   :  { %11327 = vmatprep.subr.mxu0 %v13094_v46 }
 0xa49   :  { %v3319_v50 = vpop.trf.xlu1 }
 0xa4b   :  { %v3190_v7 = vpop.trf.xlu0 }
 0xa4d   :  { %v3320_v25 = vpop.trf.xlu1 }
 0xa4f   :  { %v3191_v20 = vpop.trf.xlu0 }
 0xa51   :  { %v3321_v35 = vpop.trf.xlu1 }
 0xa53   :  { %v3192_v29 = vpop.trf.xlu0 }
 0xa55   :  { %v3322_v63 = vpop.trf.xlu1 }
 0xa57   :  { %v3193_v62 = vpop.trf.xlu0 }
 0xb0f   :  { %v2720_v3 = vpop.f32.mrb[30].mxu1 }
 0xb10   :  { %v13123_v39 = vsel %vm2725_vm13, %v2720_v3, 0.0  ;;  %v11304_v2 = vpop.f32.mrb[31].mxu1 }
 0xb11   :  { %v2635_v16 = vpop.f32.mrb[30].mxu0  ;;  %11325 = vmatmul.mubr.msk.f32.vlgmr.msra.gmra.mrb[32].mxu1 %vm158_vm2, %v13123_v39 }
 0xb12   :  { %v13130_v33 = vsel %vm2724_vm14, %v2635_v16, 0.0  ;;  %11336 = vmatpush3.msra.mxu1 %v13091_v45  ;;  %v11293_v47 = vpop.f32.mrb[31].mxu0  ;;  %11337 = vmatprep.mubr.msk.f32.mxu1 %vm829_vm7, %v3047_v6 }
 0xb13   :  { %11314 = vmatmul.mubr.msk.f32.vlgmr.msra.gmra.mrb[32].mxu0 %vm158_vm2, %v13130_v33  ;;  %11351 = vmatprep.subr.msk.mxu1 %vm2725_vm13, %v2720_v3 }
 0xb14   :  { %11328 = vmatpush3.msra.mxu0 %v13094_v46  ;;  %11329 = vmatprep.mubr.msk.f32.mxu0 %vm829_vm7, %v2918_v36 }
 0xb15   :  { %11343 = vmatprep.subr.msk.mxu0 %vm2724_vm14, %v2635_v16  ;;  %11338 = vmatmul.mubr.msk.f32.vlgmr.msra.gmra.mrb[34].mxu1 %vm829_vm7, %v3048_v5 }
 0xb16   :  { %11352 = vmatpush3.msk.msra.mxu1 %vm2725_vm13, %v2720_v3  ;;  %11340 = vmatprep.mubr.msk.f32.mxu1 %vm829_vm7, %v3049_v26 }
 0xb17   :  { %11330 = vmatmul.mubr.msk.f32.vlgmr.msra.gmra.mrb[34].mxu0 %vm829_vm7, %v2919_v1  ;;  %11364 = vmatprep.subr.mxu1 %v14558_v27 }
 0xb18   :  { %11344 = vmatpush3.msk.msra.mxu0 %vm2724_vm14, %v2635_v16  ;;  %11332 = vmatprep.mubr.msk.f32.mxu0 %vm829_vm7, %v2920_v48 }
 0xb19   :  { %11341 = vmatmul.mubr.msk.f32.gmra.mrb[36].mxu1 %vm829_vm7, %v3050_v24  ;;  %11359 = vmatprep.subr.mxu0 %v14558_v27 }
 0xb1a   :  { %11353 = vmatprep.mubr.msk.f32.mxu1 %vm829_vm7, %v3319_v50 }
 0xb1b   :  { %11333 = vmatmul.mubr.msk.f32.gmra.mrb[36].mxu0 %vm829_vm7, %v2921_v60 }
 0xb1c   :  { %11345 = vmatprep.mubr.msk.f32.mxu0 %vm829_vm7, %v3190_v7 }
 0xb1d   :  { %11354 = vmatmul.mubr.msk.f32.vlgmr.msra.gmra.mrb[38].mxu1 %vm829_vm7, %v3320_v25 }
 0xb1e   :  { %11356 = vmatprep.mubr.msk.f32.mxu1 %vm829_vm7, %v3321_v35 }
 0xb1f   :  { %11346 = vmatmul.mubr.msk.f32.vlgmr.msra.gmra.mrb[38].mxu0 %vm829_vm7, %v3191_v20 }
 0xb20   :  { %11348 = vmatprep.mubr.msk.f32.mxu0 %vm829_vm7, %v3192_v29 }
 0xb21   :  { %11357 = vmatmul.mubr.msk.f32.gmra.mrb[40].mxu1 %vm829_vm7, %v3322_v63 }
 0xb22   :  { %11366 = vmatprep.mubr.msk.f32.mxu1 %vm12455_vm10, %v14558_v27 }
 0xb23   :  { %11349 = vmatmul.mubr.msk.f32.gmra.mrb[40].mxu0 %vm829_vm7, %v3193_v62 }
 0xb24   :  { %11361 = vmatprep.mubr.msk.f32.mxu0 %vm12455_vm10, %v14558_v27 }
 0xbe4   :  { %v2894_v18 = vpop.f32.mrb[32].mxu1 }
 0xbe5   :  { %v13167_v22 = vsel %vm2899_vm15, %v2894_v18, 0.0  ;;  %v11326_v0 = vpop.f32.mrb[33].mxu1  ;;  %11365 = vmatpush3.msk.msra.mxu1 %vm2899_vm15, %v2894_v18 }
 0xbe6   :  { %v2809_v55 = vpop.f32.mrb[32].mxu0  ;;  %11367 = vmatmul.mubr.msk.f32.vlgmr.msra.gmra.mrb[42].mxu1 %vm829_vm7, %v12783_v23  ;;  %11374 = vmatprep.subr.mxu1 %v14558_v27 }
 0xbe7   :  { %v13173_v13 = vsel %vm2898_vm8, %v2809_v55, 0.0  ;;  %v11315_v9 = vpop.f32.mrb[33].mxu0  ;;  %11360 = vmatpush3.msk.msra.mxu0 %vm2898_vm8, %v2809_v55  ;;  %11376 = vmatprep.mubr.msk.f32.mxu1 %vm12455_vm10, %v14558_v27 }
 0xbe8   :  { %11362 = vmatmul.mubr.msk.f32.vlgmr.msra.gmra.mrb[42].mxu0 %vm829_vm7, %v12785_v28  ;;  %v13179_v21 = vpop.f32.mrb[34].mxu1  ;;  %11369 = vmatprep.subr.mxu0 %v14558_v27 }
 0xbe9   :  { %v13182_v19 = vpop.f32.mrb[35].mxu1  ;;  %11371 = vmatprep.mubr.msk.f32.mxu0 %vm12455_vm10, %v14558_v27 }
 0xbea   :  { %v13186_v32 = vpop.f32.mrb[34].mxu0 }
 0xbeb   :  { %v13188_v12 = vpop.f32.mrb[35].mxu0 }
 0xbec   :  { %v13190_v6 = vpop.f32.mrb[36].mxu1 }
 0xbed   :  { %v13192_v36 = vpop.f32.mrb[37].mxu1 }
 0xbee   :  { %v13194_v5 = vpop.f32.mrb[36].mxu0 }
 0xbef   :  { %v13196_v1 = vpop.f32.mrb[37].mxu0 }
 0xbf0   :  { %v11355_v26 = vpop.f32.mrb[38].mxu1 }
 0xbf1   :  { %v3413_v48 = vpop.f32.mrb[39].mxu1  ;;  %v3613_v16 = vmul.f32 0.01, %v11355_v26 }
 0xbf2   :  { %v11347_v24 = vpop.f32.mrb[38].mxu0  ;;  %v3612_v47 = vmul.f32 0.01, %v3413_v48 }
 0xbf3   :  { %v3284_v60 = vpop.f32.mrb[39].mxu0  ;;  %v3609_v25 = vmul.f32 0.01, %v11347_v24  ;;  %v13199_v63 = vsub.f32 %v12815_v14, %v3613_v16 }
 0xbf4   :  { %v11358_v50 = vpop.f32.mrb[40].mxu1  ;;  %v3608_v20 = vmul.f32 0.01, %v3284_v60  ;;  %v13202_v62 = vsub.f32 %v12818_v17, %v3612_v47 }
 0xbf5   :  { %v3423_v7 = vpop.f32.mrb[41].mxu1  ;;  %v3615_v35 = vmul.f32 0.01, %v11358_v50  ;;  %v13205_v9 = vsub.f32 %v12812_v59, %v3609_v25 }
 0xbf6   :  { %v11350_v3 = vpop.f32.mrb[40].mxu0  ;;  %v3614_v18 = vmul.f32 0.01, %v3423_v7  ;;  %v13208_v26 = vsub.f32 %v12821_v34, %v3608_v20  ;;  %v13215_v17 = vpack.c.bf16 %v13199_v63, %v13202_v62 }
 0xbf7   :  { %v3294_v2 = vpop.f32.mrb[41].mxu0  ;;  %v3611_v11 = vmul.f32 0.01, %v11350_v3  ;;  %v13218_v50 = vsub.f32 %v12836_v53, %v3615_v35  ;;  %v13252_v53 = vld [vmem:[%s14514_s2] sm:$0xff] }
 0xbf8   :  { %v3610_v48 = vmul.f32 0.01, %v3294_v2  ;;  %v13221_v59 = vsub.f32 %v12839_v4, %v3614_v18  ;;  %v13238_v34 = vpack.c.bf16 %v13205_v9, %v13208_v26  ;;  %14560 = vst [vmem:[#allocation14_spill] sm:$0xff] %v13252_v53 }
 0xbfa   :  { %v13259_v4 = vpack.c.bf16 %v13218_v50, %v13221_v59 }
 0xcb9   :  { %v3582_v29 = vpop.f32.mrb[42].mxu1 }
 0xcba   :  { %v3601_v0 = vmul.f32 0.01, %v3582_v29  ;;  %v11368_v55 = vpop.f32.mrb[43].mxu1 }
 0xcbb   :  { %v3512_v28 = vpop.f32.mrb[42].mxu0 }
 0xcbc   :  { %v13211_v24 = vsub.f32 %v12824_v51, %v3601_v0  ;;  %v3600_v14 = vmul.f32 0.01, %v3512_v28  ;;  %v11363_v60 = vpop.f32.mrb[43].mxu0  ;;  %v13231_v28 = vld [vmem:[%s14514_s2 + $0x8] sm:$0xff]  ;;  %v13241_v51 = vsub.f32 %v12850_v38, %v3611_v11  ;;  %v3586_v11 = vsel %vm158_vm2, %v13173_v13, 0.0 }
 0xcbd   :  { %v3587_v2 = vrot.slane %v3586_v11, 4  ;;  %v3632_v13 = vmul.f32 0.01, %v13182_v19  ;;  %v3634_v19 = vmul.f32 0.01, %v13192_v36 }
 0xcbe   :  { %v13224_v7 = vsub.f32 %v12827_v52, %v3600_v14  ;;  %11375 = vmatpush3.msk.msra.mxu1 %vm71_vm0, %v13211_v24  ;;  %v13244_v52 = vsub.f32 %v12853_v40, %v3610_v48  ;;  %v3593_v40 = vsel %vm158_vm2, %v13167_v22, 0.0  ;;  %v3633_v22 = vmul.f32 0.01, %v13179_v21 }
 0xcbf   :  { %11377 = vmatmul.mubr.msk.f32.vlgmr.msra.gmra.mrb[44].mxu1 %vm64_vm1, %v13231_v28  ;;  %12147 = vmatprep.subr.bf16.mxu1 %v14557_v49  ;;  %v3594_v3 = vrot.slane %v3593_v40, 4  ;;  %v3588_v47 = vadd.f32 %v3587_v2, %v3586_v11  ;;  %v3629_v11 = vmul.f32 0.01, %v13186_v32  ;;  %v3635_v21 = vmul.f32 0.01, %v13190_v6 }
 0xcc0   :  { %11370 = vmatpush3.msk.msra.mxu0 %vm71_vm0, %v13224_v7  ;;  %12149 = vmatpush3.bf16.msra.mxu1 %v13215_v17  ;;  %v13268_v38 = vpack.c.bf16 %v13241_v51, %v13244_v52  ;;  %v3630_v6 = vmul.f32 0.01, %v13196_v1  ;;  %v14561_v1 = vld [vmem:[#allocation11_spill] sm:$0xff] }
 0xcc1   :  { %11372 = vmatmul.mubr.msk.f32.vlgmr.msra.gmra.mrb[44].mxu0 %vm64_vm1, %v13252_v53  ;;  %12141 = vmatprep.subr.bf16.mxu0 %v14557_v49  ;;  %v3595_v16 = vadd.f32 %v3594_v3, %v3593_v40  ;;  %v3589_v20 = vrot.slane %v3588_v47, 2  ;;  %v3628_v3 = vmul.f32 0.01, %v13188_v12 }
 0xcc2   :  { %12143 = vmatpush3.bf16.msra.mxu0 %v13238_v34  ;;  %12150 = vmatprep.subr.bf16.mxu1 %v14557_v49 }
 0xcc3   :  { %12144 = vmatprep.subr.bf16.mxu0 %v14557_v49  ;;  %11398 = vmatprep.mubr.msk.f32.mxu1 %vm12455_vm10, %v14558_v27  ;;  %v3596_v25 = vrot.slane %v3595_v16, 2  ;;  %v3590_v29 = vadd.f32 %v3589_v20, %v3588_v47 }
 0xcc4   :  { %12152 = vmatpush3.bf16.msra.mxu1 %v13259_v4  ;;  %11387 = vmatprep.mubr.msk.f32.mxu0 %vm12455_vm10, %v14558_v27 }
 0xcc5   :  { %12159 = vmatprep.subr.bf16.mxu1 %v14557_v49  ;;  %v3597_v35 = vadd.f32 %v3596_v25, %v3595_v16  ;;  %v3591_v0 = vrot.slane %v3590_v29, 1  ;;  %v13295_v16 = vsub.f32 %v12897_v57, %v3633_v22  ;;  %v13308_v25 = vsub.f32 %v12894_v56, %v3629_v11 }
 0xcc6   :  { %12146 = vmatpush3.bf16.msra.mxu0 %v13268_v38  ;;  %v13311_v57 = vsub.f32 %v12913_v54, %v3628_v3  ;;  %v13324_v56 = vsub.f32 %v12927_v10, %v3634_v19  ;;  %v3432_v22 = vsel %vm158_vm2, %v13130_v33, 0.0 }
 0xcc7   :  { %12153 = vmatprep.subr.bf16.mxu0 %v14557_v49  ;;  %v3598_v18 = vrot.slane %v3597_v35, 1  ;;  %v3592_v48 = vadd.f32 %v3591_v0, %v3590_v29  ;;  %v13321_v0 = vsub.f32 %v12924_v30, %v3635_v21  ;;  %v3433_v11 = vrot.slane %v3432_v22, 4 }
 0xcc9   :  { %v3599_v55 = vadd.f32 %v3598_v18, %v3597_v35  ;;  %v3604_v60 = vmul.f32 0.01, %v3592_v48  ;;  %v14562_v48 = vld [vmem:[#allocation12_spill] sm:$0xff]  ;;  %v13344_v30 = vpack.c.bf16 %v13321_v0, %v13324_v56  ;;  %v3434_v21 = vadd.f32 %v3433_v11, %v3432_v22 }
 0xccb   :  { %v3605_v14 = vmul.f32 0.01, %v3599_v55  ;;  %v13286_v40 = vsub.f32 %v12890_v8, %v3604_v60  ;;  %v3439_v60 = vsel %vm158_vm2, %v13123_v39, 0.0 }
 0xccd   :  { %v13281_v53 = vsub.f32 %v12886_v37, %v3605_v14  ;;  %v13298_v37 = vsub.f32 %v12904_v41, %v3632_v13  ;;  %v13305_v32 = vrot.slane %v13286_v40, %v12590_v15  ;;  %v3631_v41 = vmul.f32 0.01, %v13194_v5 }
 0xcce   :  { %v13329_v5 = vpack.c.bf16 %v13308_v25, %v13311_v57  ;;  %v13335_v14 = vsub.f32 %v14562_v48, %v3630_v6  ;;  %v3440_v13 = vrot.slane %v3439_v60, 4 }
 0xccf   :  { %v13292_v2 = vrot.slane %v13281_v53, %v12590_v15  ;;  %v13318_v18 = vpack.c.bf16 %v13295_v16, %v13298_v37  ;;  %v13332_v55 = vsub.f32 %v14561_v1, %v3631_v41 }
 0xcd0   :  { %v3441_v3 = vadd.f32 %v3440_v13, %v3439_v60 }
 0xcd1   :  { %v13352_v10 = vpack.c.bf16 %v13332_v55, %v13335_v14 }
 0xcd2   :  { %v3442_v19 = vrot.slane %v3441_v3, 2 }
 0xd92   :  { %v3802_v8 = vpop.f32.mrb[44].mxu1 }
 0xd93   :  { %v3803_v47 = vadd.f32 %v3802_v8, %v13292_v2  ;;  %v11378_v12 = vpop.f32.mrb[45].mxu1  ;;  %v3435_v8 = vrot.slane %v3434_v21, 2 }
 0xd94   :  { %v3729_v20 = vpop.f32.mrb[44].mxu0 }
 0xd95   :  { %v3807_v36 = vmax.f32 %v3803_v47, 0.0  ;;  %v3730_v35 = vadd.f32 %v3729_v20, %v13305_v32  ;;  %v11373_v29 = vpop.f32.mrb[45].mxu0  ;;  %v3443_v47 = vadd.f32 %v3442_v19, %v3441_v3  ;;  %v3436_v12 = vadd.f32 %v3435_v8, %v3434_v21  ;;  %v13403_v19 = vld [vmem:[%s14512_s0] sm:$0xff] }
 0xd96   :  { %v3167_v8 = vsel %vm335_vm3, %v13091_v45, 0.0 }
 0xd97   :  { %v3806_v54 = vmax.f32 %v3730_v35, 0.0  ;;  %11399 = vmatmul.mubr.msk.f32.vlgmr.msra.gmra.mrb[46].mxu1 %vm158_vm2, %v3807_v36  ;;  %v3444_v41 = vrot.slane %v3443_v47, 1  ;;  %v3437_v6 = vrot.slane %v3436_v12, 1 }
 0xd98   :  { %12161 = vmatpush3.bf16.msra.mxu1 %v13318_v18  ;;  %11420 = vmatprep.mubr.msk.f32.mxu1 %vm12455_vm10, %v14558_v27 }
 0xd99   :  { %11388 = vmatmul.mubr.msk.f32.vlgmr.msra.gmra.mrb[46].mxu0 %vm158_vm2, %v3806_v54  ;;  %12162 = vmatprep.subr.bf16.mxu1 %v14557_v49  ;;  %v3445_v20 = vadd.f32 %v3444_v41, %v3443_v47  ;;  %v3438_v36 = vadd.f32 %v3437_v6, %v3436_v12  ;;  %v3160_v47 = vsel %vm335_vm3, %v13094_v46, 0.0  ;;  %v3168_v12 = vrot.slane %v3167_v8, 4 }
 0xd9a   :  { %12155 = vmatpush3.bf16.msra.mxu0 %v13329_v5  ;;  %11409 = vmatprep.mubr.msk.f32.mxu0 %vm12455_vm10, %v14558_v27  ;;  %v3161_v41 = vrot.slane %v3160_v47, 4 }
 0xd9b   :  { %12156 = vmatprep.subr.bf16.mxu0 %v14557_v49  ;;  %v3625_v35 = vmul.f32 0.01, %v3445_v20  ;;  %v3624_v29 = vmul.f32 0.01, %v3438_v36  ;;  %v3169_v6 = vadd.f32 %v3168_v12, %v3167_v8 }
 0xd9c   :  { %12164 = vmatpush3.bf16.msra.mxu1 %v13344_v30  ;;  %v3162_v20 = vadd.f32 %v3161_v41, %v3160_v47 }
 0xd9d   :  { %11428 = vmatprep.subr.mxu1 %v14558_v27  ;;  %v13363_v54 = vsub.f32 %v12966_v31, %v3625_v35  ;;  %v13366_v39 = vsub.f32 %v12969_v61, %v3624_v29  ;;  %v13392_v61 = vld [vmem:[%s14512_s0 + $0x8] sm:$0xff]  ;;  %v3170_v36 = vrot.slane %v3169_v6, 2 }
 0xd9e   :  { %12158 = vmatpush3.bf16.msra.mxu0 %v13352_v10  ;;  %v3163_v35 = vrot.slane %v3162_v20, 2 }
 0xd9f   :  { %11423 = vmatprep.subr.mxu0 %v14558_v27  ;;  %v13370_v33 = vrot.slane %v13363_v54, %v12590_v15  ;;  %v13375_v60 = vrot.slane %v13366_v39, %v12590_v15  ;;  %v3171_v29 = vadd.f32 %v3170_v36, %v3169_v6 }
 0xe6a   :  { %v3962_v1 = vpop.f32.mrb[46].mxu1 }
 0xe6b   :  { %v3963_v48 = vadd.f32 %v3962_v1, %v13370_v33  ;;  %v11400_v22 = vpop.f32.mrb[47].mxu1  ;;  %v3164_v1 = vadd.f32 %v3163_v35, %v3162_v20 }
 0xe6c   :  { %v3889_v13 = vpop.f32.mrb[46].mxu0 }
 0xe6d   :  { %v3967_v11 = vmax.f32 %v3963_v48, 0.0  ;;  %v3890_v31 = vadd.f32 %v3889_v13, %v13375_v60  ;;  %v11389_v3 = vpop.f32.mrb[47].mxu0  ;;  %v3172_v48 = vrot.slane %v3171_v29, 1  ;;  %v3165_v22 = vrot.slane %v3164_v1, 1 }
 0xe6f   :  { %v3966_v21 = vmax.f32 %v3890_v31, 0.0  ;;  %11421 = vmatmul.mubr.msk.f32.vlgmr.msra.gmra.mrb[48].mxu1 %vm158_vm2, %v3967_v11  ;;  %v3173_v13 = vadd.f32 %v3172_v48, %v3171_v29  ;;  %v3166_v11 = vadd.f32 %v3165_v22, %v3164_v1  ;;  %v13445_v1 = vld [vmem:[%s14515_s3] sm:$0xff] }
 0xe70   :  { %11429 = vmatpush3.msk.msra.mxu1 %vm71_vm0, %v13211_v24  ;;  %11430 = vmatprep.mubr.msk.f32.mxu1 %vm12455_vm10, %v14558_v27  ;;  %14566 = vst [vmem:[#allocation16_spill] sm:$0xff] %v13445_v1 }
 0xe71   :  { %11410 = vmatmul.mubr.msk.f32.vlgmr.msra.gmra.mrb[48].mxu0 %vm158_vm2, %v3966_v21  ;;  %12171 = vmatprep.subr.bf16.mxu1 %v14557_v49  ;;  %v3645_v31 = vmul.f32 0.01, %v3173_v13  ;;  %v3644_v3 = vmul.f32 0.01, %v3166_v11 }
 0xe72   :  { %11424 = vmatpush3.msk.msra.mxu0 %vm71_vm0, %v13224_v7  ;;  %11425 = vmatprep.mubr.msk.f32.mxu0 %vm12455_vm10, %v14558_v27 }
 0xe73   :  { %11431 = vmatmul.mubr.msk.f32.vlgmr.msra.gmra.mrb[50].mxu1 %vm64_vm1, %v13392_v61  ;;  %12165 = vmatprep.subr.bf16.mxu0 %v14557_v49  ;;  %v13421_v21 = vsub.f32 %v13014_v58, %v3645_v31  ;;  %v13424_v45 = vsub.f32 %v13017_v42, %v3644_v3  ;;  %v13438_v58 = vld [vmem:[%s14515_s3 + $0x8] sm:$0xff] }
 0xe74   :  { %12173 = vmatpush3.bf16.msra.mxu1 %v13215_v17  ;;  %11452 = vmatprep.mubr.msk.f32.mxu1 %vm12455_vm10, %v14558_v27  ;;  %14565 = vst [vmem:[#allocation15_spill] sm:$0xff] %v13438_v58 }
 0xe75   :  { %11426 = vmatmul.mubr.msk.f32.vlgmr.msra.gmra.mrb[50].mxu0 %vm64_vm1, %v13403_v19  ;;  %12174 = vmatprep.subr.bf16.mxu1 %v14557_v49  ;;  %14563 = vst [vmem:[#allocation11_spill] sm:$0xff] %v13421_v21  ;;  %14564 = vst [vmem:[#allocation12_spill] sm:$0xff] %v13424_v45  ;;  %v13428_v46 = vrot.slane %v13421_v21, %v12590_v15  ;;  %v13433_v12 = vrot.slane %v13424_v45, %v12590_v15 }
 0xe76   :  { %12167 = vmatpush3.bf16.msra.mxu0 %v13238_v34  ;;  %11441 = vmatprep.mubr.msk.f32.mxu0 %vm12455_vm10, %v14558_v27 }
 0xe77   :  { %12168 = vmatprep.subr.bf16.mxu0 %v14557_v49 }
 0xe78   :  { %12176 = vmatpush3.bf16.msra.mxu1 %v13259_v4 }
 0xe79   :  { %12183 = vmatprep.subr.bf16.mxu1 %v14557_v49 }
 0xe7a   :  { %12170 = vmatpush3.bf16.msra.mxu0 %v13268_v38 }
 0xe7b   :  { %12177 = vmatprep.subr.bf16.mxu0 %v14557_v49 }
 0xf42   :  { %v4122_v8 = vpop.f32.mrb[48].mxu1 }
 0xf43   :  { %v4123_v47 = vadd.f32 %v4122_v8, %v13428_v46  ;;  %v11422_v41 = vpop.f32.mrb[49].mxu1 }
 0xf44   :  { %v4049_v6 = vpop.f32.mrb[48].mxu0 }
 0xf45   :  { %v4127_v42 = vsub.f32 %v4123_v47, %v13438_v58  ;;  %v4050_v20 = vadd.f32 %v4049_v6, %v13433_v12  ;;  %v11411_v36 = vpop.f32.mrb[49].mxu0 }
 0xf46   :  { %v4284_v35 = vpop.f32.mrb[50].mxu1 }
 0xf47   :  { %v4129_v29 = vmul.f32 %v4127_v42, %v4127_v42  ;;  %v4126_v48 = vsub.f32 %v4050_v20, %v13445_v1  ;;  %v13449_v22 = vadd.f32 %v4284_v35, %v13292_v2  ;;  %v11432_v13 = vpop.f32.mrb[51].mxu1 }
 0xf48   :  { %v4214_v11 = vpop.f32.mrb[50].mxu0 }
 0xf49   :  { %v4139_v31 = vsel %vm335_vm3, %v4129_v29, 0.0  ;;  %v4128_v3 = vmul.f32 %v4126_v48, %v4126_v48  ;;  %v4289_v8 = vmax.f32 %v13449_v22, 0.0  ;;  %v11427_v47 = vpop.f32.mrb[51].mxu0  ;;  %v13454_v6 = vadd.f32 %v4214_v11, %v13305_v32 }
 0xf4a   :  { %v4140_v41 = vrot.slane %v4139_v31, 4  ;;  %vm4933_vm12 = vcmp.gt.f32.partialorder %v13449_v22, 0.0 }
 0xf4b   :  { %v4132_v42 = vsel %vm335_vm3, %v4128_v3, 0.0  ;;  %11453 = vmatmul.mubr.msk.f32.vlgmr.msra.gmra.mrb[52].mxu1 %vm158_vm2, %v4289_v8  ;;  %v4288_v2 = vmax.f32 %v13454_v6, 0.0  ;;  %vm4932_vm13 = vcmp.gt.f32.partialorder %v13454_v6, 0.0 }
 0xf4c   :  { %v4141_v20 = vadd.f32 %v4140_v41, %v4139_v31  ;;  %v4133_v36 = vrot.slane %v4132_v42, 4  ;;  %12185 = vmatpush3.bf16.msra.mxu1 %v13318_v18  ;;  %11474 = vmatprep.mubr.msk.f32.mxu1 %vm12455_vm10, %v14558_v27 }
 0xf4d   :  { %12186 = vmatprep.subr.bf16.mxu1 %v14557_v49  ;;  %11442 = vmatmul.mubr.msk.f32.vlgmr.msra.gmra.mrb[52].mxu0 %vm158_vm2, %v4288_v2 }
 0xf4e   :  { %v4142_v35 = vrot.slane %v4141_v20, 2  ;;  %v4134_v29 = vadd.f32 %v4133_v36, %v4132_v42  ;;  %12179 = vmatpush3.bf16.msra.mxu0 %v13329_v5  ;;  %11463 = vmatprep.mubr.msk.f32.mxu0 %vm12455_vm10, %v14558_v27 }
 0xf4f   :  { %12180 = vmatprep.subr.bf16.mxu0 %v14557_v49 }
 0xf50   :  { %v4143_v32 = vadd.f32 %v4142_v35, %v4141_v20  ;;  %v4135_v48 = vrot.slane %v4134_v29, 2  ;;  %12188 = vmatpush3.bf16.msra.mxu1 %v13344_v30 }
 0xf51   :  { %12197 = vmatprep.subr.bf16.mxu1 %v14557_v49 }
 0xf52   :  { %v4136_v13 = vadd.f32 %v4135_v48, %v4134_v29  ;;  %v4144_v11 = vrot.slane %v4143_v32, 1  ;;  %12182 = vmatpush3.bf16.msra.mxu0 %v13352_v10 }
 0xf53   :  { %12189 = vmatprep.subr.bf16.mxu0 %v14557_v49 }
 0xf54   :  { %v4137_v31 = vrot.slane %v4136_v13, 1  ;;  %v4145_v3 = vadd.f32 %v4144_v11, %v4143_v32 }
 0xf56   :  { %v4138_v47 = vadd.f32 %v4137_v31, %v4136_v13  ;;  %v4147_v41 = vmul.f32 0.125, %v4145_v3 }
 0xf58   :  { %v4146_v42 = vmul.f32 0.125, %v4138_v47 }
 0xf5a   :  { %v13473_v20 = vsel %vm10252_vm6, %v4147_v41, %v4146_v42 }
 0xf5b   :  { %14567 = vst [vmem:[#allocation17_spill] sm:$0xff] %v13473_v20 }
0x101e   :  { %v4432_v36 = vpop.f32.mrb[52].mxu1 }
0x101f   :  { %v13476_v35 = vadd.f32 %v4432_v36, %v13370_v33  ;;  %v11454_v1 = vpop.f32.mrb[53].mxu1 }
0x1020   :  { %v4359_v58 = vpop.f32.mrb[52].mxu0 }
0x1021   :  { %v4437_v29 = vmax.f32 %v13476_v35, 0.0  ;;  %v13480_v48 = vadd.f32 %v4359_v58, %v13375_v60  ;;  %v11443_v45 = vpop.f32.mrb[53].mxu0  ;;  %v13509_v60 = vld [vmem:[%s14513_s1 + $0x8] sm:$0xff]  ;;  %vm4759_vm9 = vcmp.gt.f32.partialorder %v13476_v35, 0.0 }
0x1022   :  { %14568 = vst [vmem:[#allocation18_spill] sm:$0xff] %v13509_v60 }
0x1023   :  { %5065 = vxpose.xlu1.b32.start.end [1/1] (short) (narrow) %v4437_v29, 32  ;;  %11475 = vmatmul.mubr.msk.f32.vlgmr.msra.gmra.mrb[54].mxu1 %vm158_vm2, %v4437_v29  ;;  %v4436_v32 = vmax.f32 %v13480_v48, 0.0  ;;  %vm4758_vm11 = vcmp.gt.f32.partialorder %v13480_v48, 0.0 }
0x1024   :  { %12200 = vmatpush3.bf16.xpose.msk.msra.mxu1 %vm12653_vm4, %v13318_v18  ;;  %11496 = vmatprep.mubr.msk.f32.mxu1 %vm12455_vm10, %v14558_v27 }
0x1025   :  { %12201 = vmatprep.subr.bf16.mxu1 %v14557_v49  ;;  %4936 = vxpose.xlu0.b32.start.end [1/1] (short) (narrow) %v4436_v32, 32 }
0x1026   :  { %11464 = vmatmul.mubr.msk.f32.vlgmr.msra.gmra.mrb[54].mxu0 %vm158_vm2, %v4436_v32 }
0x1027   :  { %12192 = vmatpush3.bf16.xpose.msk.msra.mxu0 %vm12653_vm4, %v13329_v5  ;;  %11485 = vmatprep.mubr.msk.f32.mxu0 %vm12455_vm10, %v14558_v27 }
0x1028   :  { %12193 = vmatprep.subr.bf16.mxu0 %v14557_v49 }
0x102c   :  { %12204 = vmatpush3.bf16.xpose.msk.msra.mxu1 %vm12653_vm4, %v13344_v30 }
0x102d   :  { %12213 = vmatprep.subr.bf16.mxu1 %v14557_v49 }
0x102f   :  { %12196 = vmatpush3.bf16.xpose.msk.msra.mxu0 %vm12653_vm4, %v13352_v10 }
0x1030   :  { %5337 = vxpose.xlu1.b32.start.end [1/1] (short) (narrow) %v4289_v8, 32  ;;  %12205 = vmatprep.subr.bf16.mxu0 %v14557_v49  ;;  %v13518_v8 = vld [vmem:[%s14513_s1] sm:$0xff] }
0x1031   :  { %14569 = vst [vmem:[#allocation19_spill] sm:$0xff] %v13518_v8 }
0x1032   :  { %5208 = vxpose.xlu0.b32.start.end [1/1] (short) (narrow) %v4288_v2, 32 }
0x10f6   :  { %v4580_v18 = vpop.f32.mrb[54].mxu1 }
0x10f7   :  { %v4581_v5 = vadd.f32 %v4580_v18, %v13428_v46  ;;  %v11476_v33 = vpop.f32.mrb[55].mxu1 }
0x10f9   :  { %v4585_v30 = vsub.f32 %v4581_v5, %v13509_v60  ;;  %v4507_v45 = vpop.f32.mrb[54].mxu0 }
0x10fa   :  { %v4508_v58 = vadd.f32 %v4507_v45, %v13433_v12  ;;  %v11465_v1 = vpop.f32.mrb[55].mxu0  ;;  %v4952_v12 = vpop.trf.xlu0 }
0x10fb   :  { %v13513_v10 = vmul.f32 0.25, %v4585_v30 }
0x10fc   :  { %v4584_v46 = vsub.f32 %v4508_v58, %v13518_v8 }
0x10fd   :  { %11497 = vmatmul.mubr.msk.f32.vlgmr.msra.gmra.mrb[56].mxu1 %vm335_vm3, %v13513_v10 }
0x10fe   :  { %v13523_v2 = vmul.f32 0.25, %v4584_v46  ;;  %12216 = vmatpush3.bf16.xpose.msk.msra.mxu1 %vm12661_vm5, %v13215_v17  ;;  %11518 = vmatprep.mubr.msk.f32.mxu1 %vm12455_vm10, %v14558_v27  ;;  %v5081_v17 = vpop.trf.xlu1  ;;  %v4953_v13 = vpop.trf.xlu0 }
0x10ff   :  { %12217 = vmatprep.subr.bf16.mxu1 %v14557_v49 }
0x1100   :  { %11486 = vmatmul.mubr.msk.f32.vlgmr.msra.gmra.mrb[56].mxu0 %vm335_vm3, %v13523_v2 }
0x1101   :  { %12208 = vmatpush3.bf16.xpose.msk.msra.mxu0 %vm12661_vm5, %v13238_v34  ;;  %11507 = vmatprep.mubr.msk.f32.mxu0 %vm12455_vm10, %v14558_v27 }
0x1102   :  { %12209 = vmatprep.subr.bf16.mxu0 %v14557_v49  ;;  %v5082_v34 = vpop.trf.xlu1  ;;  %v4954_v31 = vpop.trf.xlu0 }
0x1106   :  { %12220 = vmatpush3.bf16.xpose.msk.msra.mxu1 %vm12661_vm5, %v13259_v4  ;;  %v5083_v11 = vpop.trf.xlu1  ;;  %v4955_v47 = vpop.trf.xlu0 }
0x1107   :  { %11529 = vmatprep.subr.mxu1 %v13513_v10 }
0x1109   :  { %12212 = vmatpush3.bf16.xpose.msk.msra.mxu0 %vm12661_vm5, %v13268_v38 }
0x110a   :  { %11521 = vmatprep.subr.mxu0 %v13523_v2  ;;  %v5084_v3 = vpop.trf.xlu1  ;;  %v5224_v42 = vpop.trf.xlu0 }
0x110e   :  { %v5353_v41 = vpop.trf.xlu1  ;;  %v5225_v33 = vpop.trf.xlu0 }
0x1112   :  { %v5354_v32 = vpop.trf.xlu1  ;;  %v5226_v35 = vpop.trf.xlu0 }
0x1116   :  { %v5355_v30 = vpop.trf.xlu1  ;;  %v5227_v48 = vpop.trf.xlu0 }
0x111a   :  { %v5356_v45 = vpop.trf.xlu1 }
0x11d0   :  { %v4754_v4 = vpop.f32.mrb[56].mxu1 }
0x11d1   :  { %v13550_v36 = vsel %vm4759_vm9, %v4754_v4, 0.0  ;;  %v11498_v38 = vpop.f32.mrb[57].mxu1 }
0x11d2   :  { %11519 = vmatmul.mubr.msk.f32.vlgmr.msra.gmra.mrb[58].mxu1 %vm158_vm2, %v13550_v36 }
0x11d3   :  { %v4669_v29 = vpop.f32.mrb[56].mxu0  ;;  %11530 = vmatpush3.msra.mxu1 %v13513_v10  ;;  %11531 = vmatprep.mubr.msk.f32.mxu1 %vm829_vm7, %v5081_v17 }
0x11d4   :  { %v13559_v18 = vsel %vm4758_vm11, %v4669_v29, 0.0  ;;  %v11487_v5 = vpop.f32.mrb[57].mxu0  ;;  %11545 = vmatprep.subr.msk.mxu1 %vm4759_vm9, %v4754_v4 }
0x11d5   :  { %11508 = vmatmul.mubr.msk.f32.vlgmr.msra.gmra.mrb[58].mxu0 %vm158_vm2, %v13559_v18 }
0x11d6   :  { %11522 = vmatpush3.msra.mxu0 %v13523_v2  ;;  %11532 = vmatmul.mubr.msk.f32.vlgmr.msra.gmra.mrb[60].mxu1 %vm829_vm7, %v5082_v34 }
0x11d7   :  { %11537 = vmatprep.subr.msk.mxu0 %vm4758_vm11, %v4669_v29  ;;  %11546 = vmatpush3.msk.msra.mxu1 %vm4759_vm9, %v4754_v4 }
0x11d8   :  { %11523 = vmatprep.mubr.msk.f32.mxu0 %vm829_vm7, %v4952_v12  ;;  %11534 = vmatprep.mubr.msk.f32.mxu1 %vm829_vm7, %v5083_v11 }
0x11d9   :  { %11524 = vmatmul.mubr.msk.f32.vlgmr.msra.gmra.mrb[60].mxu0 %vm829_vm7, %v4953_v13  ;;  %11558 = vmatprep.subr.mxu1 %v14558_v27  ;;  %v14570_v13 = vld [vmem:[#allocation10_spill] sm:$0xff] }
0x11da   :  { %11538 = vmatpush3.msk.msra.mxu0 %vm4758_vm11, %v4669_v29  ;;  %11535 = vmatmul.mubr.msk.f32.gmra.mrb[62].mxu1 %vm829_vm7, %v5084_v3 }
0x11db   :  { %11526 = vmatprep.mubr.msk.f32.mxu0 %vm829_vm7, %v4954_v31  ;;  %11547 = vmatprep.mubr.msk.f32.mxu1 %vm829_vm7, %v5353_v41 }
0x11dc   :  { %11553 = vmatprep.subr.mxu0 %v14558_v27 }
0x11dd   :  { %11527 = vmatmul.mubr.msk.f32.gmra.mrb[62].mxu0 %vm829_vm7, %v4955_v47 }
0x11de   :  { %11548 = vmatmul.mubr.msk.f32.vlgmr.msra.gmra.mrb[64].mxu1 %vm829_vm7, %v5354_v32  ;;  %11539 = vmatprep.mubr.msk.f32.mxu0 %vm829_vm7, %v5224_v42 }
0x11df   :  { %11550 = vmatprep.mubr.msk.f32.mxu1 %vm829_vm7, %v5355_v30 }
0x11e1   :  { %11540 = vmatmul.mubr.msk.f32.vlgmr.msra.gmra.mrb[64].mxu0 %vm829_vm7, %v5225_v33 }
0x11e2   :  { %11551 = vmatmul.mubr.msk.f32.gmra.mrb[66].mxu1 %vm829_vm7, %v5356_v45  ;;  %11542 = vmatprep.mubr.msk.f32.mxu0 %vm829_vm7, %v5226_v35 }
0x11e3   :  { %11560 = vmatprep.mubr.msk.f32.mxu1 %vm12455_vm10, %v14558_v27 }
0x11e5   :  { %11543 = vmatmul.mubr.msk.f32.gmra.mrb[66].mxu0 %vm829_vm7, %v5227_v48 }
0x11e6   :  { %11555 = vmatprep.mubr.msk.f32.mxu0 %vm12455_vm10, %v14558_v27 }
0x12a5   :  { %v4928_v58 = vpop.f32.mrb[58].mxu1 }
0x12a6   :  { %v13594_v1 = vsel %vm4933_vm12, %v4928_v58, 0.0  ;;  %v11520_v46 = vpop.f32.mrb[59].mxu1  ;;  %11559 = vmatpush3.msk.msra.mxu1 %vm4933_vm12, %v4928_v58 }
0x12a7   :  { %11561 = vmatmul.mubr.msk.f32.vlgmr.msra.gmra.mrb[68].mxu1 %vm829_vm7, %v12783_v23  ;;  %11568 = vmatprep.subr.mxu1 %v14558_v27 }
0x12a8   :  { %v4843_v17 = vpop.f32.mrb[58].mxu0  ;;  %11570 = vmatprep.mubr.msk.f32.mxu1 %vm12455_vm10, %v14558_v27 }
0x12a9   :  { %v13602_v12 = vsel %vm4932_vm13, %v4843_v17, 0.0  ;;  %v11509_v34 = vpop.f32.mrb[59].mxu0  ;;  %11554 = vmatpush3.msk.msra.mxu0 %vm4932_vm13, %v4843_v17  ;;  %v13604_v22 = vpop.f32.mrb[60].mxu1 }
0x12aa   :  { %11556 = vmatmul.mubr.msk.f32.vlgmr.msra.gmra.mrb[68].mxu0 %vm829_vm7, %v14570_v13  ;;  %v13608_v11 = vpop.f32.mrb[61].mxu1  ;;  %11563 = vmatprep.subr.mxu0 %v14558_v27 }
0x12ab   :  { %11565 = vmatprep.mubr.msk.f32.mxu0 %vm12455_vm10, %v14558_v27 }
0x12ac   :  { %v13613_v6 = vpop.f32.mrb[60].mxu0 }
0x12ad   :  { %v13615_v31 = vpop.f32.mrb[61].mxu0  ;;  %v13617_v3 = vpop.f32.mrb[62].mxu1 }
0x12ae   :  { %v13619_v47 = vpop.f32.mrb[63].mxu1 }
0x12b0   :  { %v13621_v41 = vpop.f32.mrb[62].mxu0 }
0x12b1   :  { %v13623_v4 = vpop.f32.mrb[63].mxu0  ;;  %v11549_v42 = vpop.f32.mrb[64].mxu1 }
0x12b2   :  { %v5447_v38 = vpop.f32.mrb[65].mxu1  ;;  %v5647_v45 = vmul.f32 0.01, %v11549_v42 }
0x12b3   :  { %v5646_v48 = vmul.f32 0.01, %v5447_v38 }
0x12b4   :  { %v11541_v29 = vpop.f32.mrb[64].mxu0  ;;  %v13626_v20 = vsub.f32 %v13199_v63, %v5647_v45 }
0x12b5   :  { %v5318_v32 = vpop.f32.mrb[65].mxu0  ;;  %v11552_v5 = vpop.f32.mrb[66].mxu1  ;;  %v5643_v58 = vmul.f32 0.01, %v11541_v29  ;;  %v13629_v13 = vsub.f32 %v13202_v62, %v5646_v48 }
0x12b6   :  { %v5457_v33 = vpop.f32.mrb[67].mxu1  ;;  %v5642_v46 = vmul.f32 0.01, %v5318_v32  ;;  %v5649_v17 = vmul.f32 0.01, %v11552_v5 }
0x12b7   :  { %v5648_v23 = vmul.f32 0.01, %v5457_v33  ;;  %v13635_v42 = vsub.f32 %v13205_v9, %v5643_v58  ;;  %v13642_v62 = vpack.c.bf16 %v13626_v20, %v13629_v13 }
0x12b8   :  { %v11544_v30 = vpop.f32.mrb[66].mxu0  ;;  %v13638_v38 = vsub.f32 %v13208_v26, %v5642_v46 }
0x12b9   :  { %v5328_v35 = vpop.f32.mrb[67].mxu0  ;;  %v5645_v60 = vmul.f32 0.01, %v11544_v30 }
0x12ba   :  { %v5644_v29 = vmul.f32 0.01, %v5328_v35 }
0x12bb   :  { %v13666_v26 = vsub.f32 %v13241_v51, %v5645_v60 }
0x137a   :  { %v5616_v34 = vpop.f32.mrb[68].mxu1 }
0x137b   :  { %v5635_v44 = vmul.f32 0.01, %v5616_v34  ;;  %v11562_v8 = vpop.f32.mrb[69].mxu1 }
0x137c   :  { %v13645_v8 = vsub.f32 %v13218_v50, %v5649_v17 }
0x137d   :  { %v13632_v43 = vsub.f32 %v13211_v24, %v5635_v44  ;;  %v5546_v21 = vpop.f32.mrb[68].mxu0  ;;  %v13648_v44 = vsub.f32 %v13221_v59, %v5648_v23  ;;  %v13663_v23 = vpack.c.bf16 %v13635_v42, %v13638_v38  ;;  %v13669_v24 = vsub.f32 %v13244_v52, %v5644_v29  ;;  %v14571_v59 = vld [vmem:[#allocation14_spill] sm:$0xff] }
0x137e   :  { %v5634_v63 = vmul.f32 0.01, %v5546_v21  ;;  %v11557_v32 = vpop.f32.mrb[69].mxu0  ;;  %v5620_v52 = vsel %vm158_vm2, %v13602_v12, 0.0  ;;  %v5666_v12 = vmul.f32 0.01, %v13608_v11 }
0x137f   :  { %11569 = vmatpush3.msk.msra.mxu1 %vm71_vm0, %v13632_v43  ;;  %v13676_v50 = vpack.c.bf16 %v13645_v8, %v13648_v44  ;;  %v5621_v21 = vrot.slane %v5620_v52, 4  ;;  %v5663_v32 = vmul.f32 0.01, %v13613_v6  ;;  %v5668_v11 = vmul.f32 0.01, %v13619_v47 }
0x1380   :  { %v13653_v9 = vsub.f32 %v13224_v7, %v5634_v63  ;;  %11571 = vmatmul.mubr.msk.f32.vlgmr.msra.gmra.mrb[70].mxu1 %vm64_vm1, %v13231_v28  ;;  %12227 = vmatprep.subr.bf16.mxu1 %v14557_v49  ;;  %v13688_v7 = vpack.c.bf16 %v13666_v26, %v13669_v24  ;;  %v5627_v28 = vsel %vm158_vm2, %v13594_v1, 0.0  ;;  %v5667_v1 = vmul.f32 0.01, %v13604_v22 }
0x1381   :  { %12229 = vmatpush3.bf16.msra.mxu1 %v13642_v62  ;;  %11592 = vmatprep.mubr.msk.f32.mxu1 %vm12455_vm10, %v14558_v27  ;;  %v5628_v51 = vrot.slane %v5627_v28, 4  ;;  %v5622_v5 = vadd.f32 %v5621_v21, %v5620_v52  ;;  %v5669_v22 = vmul.f32 0.01, %v13617_v3  ;;  %v5664_v3 = vmul.f32 0.01, %v13623_v4 }
0x1382   :  { %11564 = vmatpush3.msk.msra.mxu0 %vm71_vm0, %v13653_v9  ;;  %12230 = vmatprep.subr.bf16.mxu1 %v14557_v49  ;;  %v13712_v52 = vsub.f32 %v13295_v16, %v5667_v1 }
0x1383   :  { %11566 = vmatmul.mubr.msk.f32.vlgmr.msra.gmra.mrb[70].mxu0 %vm64_vm1, %v14571_v59  ;;  %12221 = vmatprep.subr.bf16.mxu0 %v14557_v49  ;;  %v5629_v60 = vadd.f32 %v5628_v51, %v5627_v28  ;;  %v5623_v30 = vrot.slane %v5622_v5, 2  ;;  %v5662_v28 = vmul.f32 0.01, %v13615_v31  ;;  %v13721_v31 = vsub.f32 %v13308_v25, %v5663_v32 }
0x1384   :  { %12223 = vmatpush3.bf16.msra.mxu0 %v13663_v23  ;;  %11581 = vmatprep.mubr.msk.f32.mxu0 %vm12455_vm10, %v14558_v27  ;;  %v13737_v25 = vsub.f32 %v13321_v0, %v5669_v22 }
0x1385   :  { %12224 = vmatprep.subr.bf16.mxu0 %v14557_v49  ;;  %12232 = vmatpush3.bf16.msra.mxu1 %v13676_v50  ;;  %v5630_v33 = vrot.slane %v5629_v60, 2  ;;  %v5624_v45 = vadd.f32 %v5623_v30, %v5622_v5  ;;  %v13728_v16 = vsub.f32 %v13311_v57, %v5662_v28  ;;  %v13740_v30 = vsub.f32 %v13324_v56, %v5668_v11 }
0x1386   :  { %12239 = vmatprep.subr.bf16.mxu1 %v14557_v49  ;;  %v13755_v56 = vsub.f32 %v13335_v14, %v5664_v3  ;;  %v5473_v14 = vsel %vm158_vm2, %v13550_v36, 0.0 }
0x1387   :  { %v5631_v35 = vadd.f32 %v5630_v33, %v5629_v60  ;;  %v5625_v58 = vrot.slane %v5624_v45, 1  ;;  %v13749_v4 = vpack.c.bf16 %v13721_v31, %v13728_v16 }
0x1388   :  { %12226 = vmatpush3.bf16.msra.mxu0 %v13688_v7 }
0x1389   :  { %12233 = vmatprep.subr.bf16.mxu0 %v14557_v49  ;;  %v5632_v48 = vrot.slane %v5631_v35, 1  ;;  %v5626_v17 = vadd.f32 %v5625_v58, %v5624_v45  ;;  %v13760_v45 = vpack.c.bf16 %v13737_v25, %v13740_v30  ;;  %v5466_v58 = vsel %vm158_vm2, %v13559_v18, 0.0 }
0x138b   :  { %v5633_v46 = vadd.f32 %v5632_v48, %v5631_v35  ;;  %v5638_v29 = vmul.f32 0.01, %v5626_v17  ;;  %v5474_v48 = vrot.slane %v5473_v14, 4 }
0x138d   :  { %v5639_v34 = vmul.f32 0.01, %v5633_v46  ;;  %v13704_v59 = vsub.f32 %v13286_v40, %v5638_v29  ;;  %v5467_v46 = vrot.slane %v5466_v58, 4  ;;  %v5475_v17 = vadd.f32 %v5474_v48, %v5473_v14 }
0x138e   :  { %v5194_v48 = vsel %vm335_vm3, %v13523_v2, 0.0 }
0x138f   :  { %v13698_v63 = vsub.f32 %v13281_v53, %v5639_v34  ;;  %v13715_v53 = vsub.f32 %v13298_v37, %v5666_v12  ;;  %v13725_v60 = vrot.slane %v13704_v59, %v12590_v15  ;;  %v5665_v37 = vmul.f32 0.01, %v13621_v41 }
0x1390   :  { %v5468_v34 = vadd.f32 %v5467_v46, %v5466_v58  ;;  %v5476_v29 = vrot.slane %v5475_v17, 2  ;;  %v5195_v58 = vrot.slane %v5194_v48, 4 }
0x1391   :  { %v13709_v51 = vrot.slane %v13698_v63, %v12590_v15  ;;  %v13734_v33 = vpack.c.bf16 %v13712_v52, %v13715_v53  ;;  %v13752_v0 = vsub.f32 %v13332_v55, %v5665_v37 }
0x1392   :  { %v5469_v1 = vrot.slane %v5468_v34, 2  ;;  %v5477_v12 = vadd.f32 %v5476_v29, %v5475_v17  ;;  %v5196_v17 = vadd.f32 %v5195_v58, %v5194_v48 }
0x1393   :  { %v13770_v55 = vpack.c.bf16 %v13752_v0, %v13755_v56 }
0x1394   :  { %v5470_v32 = vadd.f32 %v5469_v1, %v5468_v34  ;;  %v5478_v28 = vrot.slane %v5477_v12, 1  ;;  %v5197_v29 = vrot.slane %v5196_v17, 2 }
0x1396   :  { %v5471_v22 = vrot.slane %v5470_v32, 1  ;;  %v5479_v11 = vadd.f32 %v5478_v28, %v5477_v12  ;;  %v5198_v12 = vadd.f32 %v5197_v29, %v5196_v17  ;;  %v14575_v17 = vld [vmem:[#allocation16_spill] sm:$0xff] }
0x1398   :  { %v5199_v28 = vrot.slane %v5198_v12, 1 }
0x1453   :  { %v5836_v6 = vpop.f32.mrb[70].mxu1 }
0x1454   :  { %v5837_v40 = vadd.f32 %v5836_v6, %v13709_v51  ;;  %v11572_v21 = vpop.f32.mrb[71].mxu1  ;;  %v5472_v6 = vadd.f32 %v5471_v22, %v5470_v32 }
0x1456   :  { %v5841_v5 = vmax.f32 %v5837_v40, 0.0  ;;  %v5763_v47 = vpop.f32.mrb[70].mxu0  ;;  %v5659_v40 = vmul.f32 0.01, %v5479_v11  ;;  %v5658_v21 = vmul.f32 0.01, %v5472_v6  ;;  %v5200_v11 = vadd.f32 %v5199_v28, %v5198_v12 }
0x1457   :  { %v5764_v35 = vadd.f32 %v5763_v47, %v13725_v60  ;;  %v11567_v57 = vpop.f32.mrb[71].mxu0 }
0x1458   :  { %11593 = vmatmul.mubr.msk.f32.vlgmr.msra.gmra.mrb[72].mxu1 %vm158_vm2, %v5841_v5  ;;  %v13780_v37 = vsub.f32 %v13363_v54, %v5659_v40  ;;  %v13783_v36 = vsub.f32 %v13366_v39, %v5658_v21  ;;  %v5678_v40 = vmul.f32 0.01, %v5200_v11  ;;  %v14572_v21 = vld [vmem:[#allocation11_spill] sm:$0xff] }
0x1459   :  { %v5840_v41 = vmax.f32 %v5764_v35, 0.0  ;;  %12241 = vmatpush3.bf16.msra.mxu1 %v13734_v33  ;;  %11614 = vmatprep.mubr.msk.f32.mxu1 %vm12455_vm10, %v14558_v27 }
0x145a   :  { %12242 = vmatprep.subr.bf16.mxu1 %v14557_v49  ;;  %v13787_v18 = vrot.slane %v13780_v37, %v12590_v15  ;;  %v13792_v35 = vrot.slane %v13783_v36, %v12590_v15 }
0x145b   :  { %11582 = vmatmul.mubr.msk.f32.vlgmr.msra.gmra.mrb[72].mxu0 %vm158_vm2, %v5840_v41 }
0x145c   :  { %12235 = vmatpush3.bf16.msra.mxu0 %v13749_v4  ;;  %11603 = vmatprep.mubr.msk.f32.mxu0 %vm12455_vm10, %v14558_v27 }
0x145d   :  { %12236 = vmatprep.subr.bf16.mxu0 %v14557_v49  ;;  %12244 = vmatpush3.bf16.msra.mxu1 %v13760_v45 }
0x145e   :  { %11622 = vmatprep.subr.mxu1 %v14558_v27 }
0x1460   :  { %12238 = vmatpush3.bf16.msra.mxu0 %v13770_v55 }
0x1461   :  { %11617 = vmatprep.subr.mxu0 %v14558_v27 }
0x152b   :  { %v5996_v3 = vpop.f32.mrb[72].mxu1 }
0x152c   :  { %v5997_v5 = vadd.f32 %v5996_v3, %v13787_v18  ;;  %v11594_v47 = vpop.f32.mrb[73].mxu1 }
0x152e   :  { %v6001_v57 = vmax.f32 %v5997_v5, 0.0  ;;  %v5923_v41 = vpop.f32.mrb[72].mxu0 }
0x152f   :  { %v5924_v54 = vadd.f32 %v5923_v41, %v13792_v35  ;;  %v11583_v14 = vpop.f32.mrb[73].mxu0 }
0x1530   :  { %11615 = vmatmul.mubr.msk.f32.vlgmr.msra.gmra.mrb[74].mxu1 %vm158_vm2, %v6001_v57  ;;  %v14574_v14 = vld [vmem:[#allocation15_spill] sm:$0xff] }
0x1531   :  { %v6000_v39 = vmax.f32 %v5924_v54, 0.0  ;;  %11623 = vmatpush3.msk.msra.mxu1 %vm71_vm0, %v13632_v43  ;;  %11624 = vmatprep.mubr.msk.f32.mxu1 %vm12455_vm10, %v14558_v27 }
0x1532   :  { %12251 = vmatprep.subr.bf16.mxu1 %v14557_v49 }
0x1533   :  { %11604 = vmatmul.mubr.msk.f32.vlgmr.msra.gmra.mrb[74].mxu0 %vm158_vm2, %v6000_v39 }
0x1534   :  { %11618 = vmatpush3.msk.msra.mxu0 %vm71_vm0, %v13653_v9  ;;  %11619 = vmatprep.mubr.msk.f32.mxu0 %vm12455_vm10, %v14558_v27 }
0x1535   :  { %11625 = vmatmul.mubr.msk.f32.vlgmr.msra.gmra.mrb[76].mxu1 %vm64_vm1, %v13392_v61  ;;  %12245 = vmatprep.subr.bf16.mxu0 %v14557_v49  ;;  %v5201_v61 = vsel %vm335_vm3, %v13513_v10, 0.0  ;;  %v14573_v10 = vld [vmem:[#allocation12_spill] sm:$0xff] }
0x1536   :  { %12253 = vmatpush3.bf16.msra.mxu1 %v13642_v62  ;;  %11646 = vmatprep.mubr.msk.f32.mxu1 %vm12455_vm10, %v14558_v27  ;;  %v13831_v5 = vsub.f32 %v14573_v10, %v5678_v40 }
0x1537   :  { %11620 = vmatmul.mubr.msk.f32.vlgmr.msra.gmra.mrb[76].mxu0 %vm64_vm1, %v13403_v19  ;;  %12254 = vmatprep.subr.bf16.mxu1 %v14557_v49  ;;  %v5202_v19 = vrot.slane %v5201_v61, 4 }
0x1538   :  { %12247 = vmatpush3.bf16.msra.mxu0 %v13663_v23  ;;  %11635 = vmatprep.mubr.msk.f32.mxu0 %vm12455_vm10, %v14558_v27  ;;  %v13840_v54 = vrot.slane %v13831_v5, %v12590_v15 }
0x1539   :  { %12248 = vmatprep.subr.bf16.mxu0 %v14557_v49  ;;  %v5203_v46 = vadd.f32 %v5202_v19, %v5201_v61 }
0x153a   :  { %12256 = vmatpush3.bf16.msra.mxu1 %v13676_v50 }
0x153b   :  { %12263 = vmatprep.subr.bf16.mxu1 %v14557_v49  ;;  %v5204_v34 = vrot.slane %v5203_v46, 2 }
0x153c   :  { %12250 = vmatpush3.bf16.msra.mxu0 %v13688_v7 }
0x153d   :  { %12257 = vmatprep.subr.bf16.mxu0 %v14557_v49  ;;  %v5205_v1 = vadd.f32 %v5204_v34, %v5203_v46 }
0x153f   :  { %v5206_v32 = vrot.slane %v5205_v1, 1 }
0x1541   :  { %v5207_v22 = vadd.f32 %v5206_v32, %v5205_v1 }
0x1543   :  { %v5679_v6 = vmul.f32 0.01, %v5207_v22 }
0x1545   :  { %v13828_v3 = vsub.f32 %v14572_v21, %v5679_v6 }
0x1547   :  { %v13835_v2 = vrot.slane %v13828_v3, %v12590_v15 }
0x1603   :  { %v6156_v47 = vpop.f32.mrb[74].mxu1 }
0x1604   :  { %v6157_v57 = vadd.f32 %v6156_v47, %v13835_v2  ;;  %v11616_v41 = vpop.f32.mrb[75].mxu1 }
0x1606   :  { %v6161_v39 = vsub.f32 %v6157_v57, %v14574_v14  ;;  %v6083_v61 = vpop.f32.mrb[74].mxu0 }
0x1607   :  { %v6084_v19 = vadd.f32 %v6083_v61, %v13840_v54  ;;  %v11605_v48 = vpop.f32.mrb[75].mxu0 }
0x1608   :  { %v6163_v58 = vmul.f32 %v6161_v39, %v6161_v39  ;;  %v6318_v46 = vpop.f32.mrb[76].mxu1 }
0x1609   :  { %v6160_v34 = vsub.f32 %v6084_v19, %v14575_v17  ;;  %v13846_v29 = vadd.f32 %v6318_v46, %v13709_v51  ;;  %v11626_v1 = vpop.f32.mrb[77].mxu1 }
0x160a   :  { %v6173_v12 = vsel %vm335_vm3, %v6163_v58, 0.0  ;;  %v6248_v32 = vpop.f32.mrb[76].mxu0 }
0x160b   :  { %v6174_v28 = vrot.slane %v6173_v12, 4  ;;  %v6162_v22 = vmul.f32 %v6160_v34, %v6160_v34  ;;  %v6323_v11 = vmax.f32 %v13846_v29, 0.0  ;;  %v11621_v6 = vpop.f32.mrb[77].mxu0  ;;  %v13851_v40 = vadd.f32 %v6248_v32, %v13725_v60 }
0x160c   :  { %vm6967_vm8 = vcmp.gt.f32.partialorder %v13846_v29, 0.0 }
0x160d   :  { %v6175_v21 = vadd.f32 %v6174_v28, %v6173_v12  ;;  %v6166_v10 = vsel %vm335_vm3, %v6162_v22, 0.0  ;;  %11647 = vmatmul.mubr.msk.f32.vlgmr.msra.gmra.mrb[78].mxu1 %vm158_vm2, %v6323_v11  ;;  %v6322_v51 = vmax.f32 %v13851_v40, 0.0  ;;  %vm6966_vm9 = vcmp.gt.f32.partialorder %v13851_v40, 0.0 }
0x160e   :  { %v6167_v47 = vrot.slane %v6166_v10, 4  ;;  %12265 = vmatpush3.bf16.msra.mxu1 %v13734_v33  ;;  %11668 = vmatprep.mubr.msk.f32.mxu1 %vm12455_vm10, %v14558_v27 }
0x160f   :  { %v6176_v57 = vrot.slane %v6175_v21, 2  ;;  %12266 = vmatprep.subr.bf16.mxu1 %v14557_v49  ;;  %11636 = vmatmul.mubr.msk.f32.vlgmr.msra.gmra.mrb[78].mxu0 %vm158_vm2, %v6322_v51 }
0x1610   :  { %v6168_v41 = vadd.f32 %v6167_v47, %v6166_v10  ;;  %12259 = vmatpush3.bf16.msra.mxu0 %v13749_v4  ;;  %11657 = vmatprep.mubr.msk.f32.mxu0 %vm12455_vm10, %v14558_v27 }
0x1611   :  { %v6177_v60 = vadd.f32 %v6176_v57, %v6175_v21  ;;  %12260 = vmatprep.subr.bf16.mxu0 %v14557_v49 }
0x1612   :  { %v6169_v14 = vrot.slane %v6168_v41, 2  ;;  %12268 = vmatpush3.bf16.msra.mxu1 %v13760_v45 }
0x1613   :  { %12277 = vmatprep.subr.bf16.mxu1 %v14557_v49  ;;  %v6178_v39 = vrot.slane %v6177_v60, 1 }
0x1614   :  { %v6170_v61 = vadd.f32 %v6169_v14, %v6168_v41  ;;  %12262 = vmatpush3.bf16.msra.mxu0 %v13770_v55 }
0x1615   :  { %v6179_v19 = vadd.f32 %v6178_v39, %v6177_v60  ;;  %12269 = vmatprep.subr.bf16.mxu0 %v14557_v49  ;;  %v14579_v39 = vld [vmem:[#allocation19_spill] sm:$0xff] }
0x1616   :  { %v6171_v48 = vrot.slane %v6170_v61, 1 }
0x1617   :  { %v6181_v46 = vmul.f32 0.125, %v6179_v19 }
0x1618   :  { %v6172_v58 = vadd.f32 %v6171_v48, %v6170_v61 }
0x161a   :  { %v6180_v17 = vmul.f32 0.125, %v6172_v58 }
0x161c   :  { %v13870_v34 = vsel %vm10252_vm6, %v6181_v46, %v6180_v17 }
0x161d   :  { %14576 = vst [vmem:[#allocation14_spill] sm:$0xff] %v13870_v34 }
0x16e0   :  { %v6466_v1 = vpop.f32.mrb[78].mxu1 }
0x16e1   :  { %v13873_v12 = vadd.f32 %v6466_v1, %v13787_v18  ;;  %v11648_v32 = vpop.f32.mrb[79].mxu1 }
0x16e2   :  { %v6393_v28 = vpop.f32.mrb[78].mxu0 }
0x16e3   :  { %v6471_v22 = vmax.f32 %v13873_v12, 0.0  ;;  %v13877_v6 = vadd.f32 %v6393_v28, %v13792_v35  ;;  %v11637_v21 = vpop.f32.mrb[79].mxu0  ;;  %v14578_v35 = vld [vmem:[#allocation18_spill] sm:$0xff]  ;;  %vm6793_vm14 = vcmp.gt.f32.partialorder %v13873_v12, 0.0 }
0x16e5   :  { %7099 = vxpose.xlu1.b32.start.end [1/1] (short) (narrow) %v6471_v22, 32  ;;  %11669 = vmatmul.mubr.msk.f32.vlgmr.msra.gmra.mrb[80].mxu1 %vm158_vm2, %v6471_v22  ;;  %v6470_v47 = vmax.f32 %v13877_v6, 0.0  ;;  %vm6792_vm15 = vcmp.gt.f32.partialorder %v13877_v6, 0.0 }
0x16e6   :  { %12280 = vmatpush3.bf16.xpose.msk.msra.mxu1 %vm12653_vm4, %v13734_v33  ;;  %11690 = vmatprep.mubr.msk.f32.mxu1 %vm12455_vm10, %v14558_v27 }
0x16e7   :  { %12281 = vmatprep.subr.bf16.mxu1 %v14557_v49  ;;  %6970 = vxpose.xlu0.b32.start.end [1/1] (short) (narrow) %v6470_v47, 32 }
0x16e8   :  { %11658 = vmatmul.mubr.msk.f32.vlgmr.msra.gmra.mrb[80].mxu0 %vm158_vm2, %v6470_v47 }
0x16e9   :  { %12272 = vmatpush3.bf16.xpose.msk.msra.mxu0 %vm12653_vm4, %v13749_v4  ;;  %11679 = vmatprep.mubr.msk.f32.mxu0 %vm12455_vm10, %v14558_v27 }
0x16ea   :  { %12273 = vmatprep.subr.bf16.mxu0 %v14557_v49 }
0x16ee   :  { %12284 = vmatpush3.bf16.xpose.msk.msra.mxu1 %vm12653_vm4, %v13760_v45 }
0x16ef   :  { %12293 = vmatprep.subr.bf16.mxu1 %v14557_v49 }
0x16f1   :  { %12276 = vmatpush3.bf16.xpose.msk.msra.mxu0 %vm12653_vm4, %v13770_v55 }
0x16f2   :  { %7371 = vxpose.xlu1.b32.start.end [1/1] (short) (narrow) %v6323_v11, 32  ;;  %12285 = vmatprep.subr.bf16.mxu0 %v14557_v49 }
0x16f4   :  { %7242 = vxpose.xlu0.b32.start.end [1/1] (short) (narrow) %v6322_v51, 32 }
0x17b8   :  { %v6614_v33 = vpop.f32.mrb[80].mxu1 }
0x17b9   :  { %v6615_v4 = vadd.f32 %v6614_v33, %v13835_v2  ;;  %v11670_v18 = vpop.f32.mrb[81].mxu1  ;;  %v6986_v2 = vpop.trf.xlu0 }
0x17bb   :  { %v6619_v57 = vsub.f32 %v6615_v4, %v14578_v35  ;;  %v6541_v41 = vpop.f32.mrb[80].mxu0 }
0x17bc   :  { %v6542_v60 = vadd.f32 %v6541_v41, %v13840_v54  ;;  %v11659_v45 = vpop.f32.mrb[81].mxu0  ;;  %v14581_v41 = vld [vmem:[#allocation9_spill] sm:$0xff] }
0x17bd   :  { %v13905_v14 = vmul.f32 0.25, %v6619_v57  ;;  %v6987_v54 = vpop.trf.xlu0 }
0x17be   :  { %v6618_v61 = vsub.f32 %v6542_v60, %v14579_v39 }
0x17bf   :  { %11691 = vmatmul.mubr.msk.f32.vlgmr.msra.gmra.mrb[82].mxu1 %vm335_vm3, %v13905_v14 }
0x17c0   :  { %v13910_v55 = vmul.f32 0.25, %v6618_v61  ;;  %12296 = vmatpush3.bf16.xpose.msk.msra.mxu1 %vm12661_vm5, %v13642_v62  ;;  %11712 = vmatprep.mubr.msk.f32.mxu1 %vm12455_vm10, %v14558_v27  ;;  %v7115_v62 = vpop.trf.xlu1  ;;  %v14582_v61 = vld [vmem:[#allocation10_spill] sm:$0xff] }
0x17c1   :  { %12297 = vmatprep.subr.bf16.mxu1 %v14557_v49  ;;  %v6988_v19 = vpop.trf.xlu0 }
0x17c2   :  { %11680 = vmatmul.mubr.msk.f32.vlgmr.msra.gmra.mrb[82].mxu0 %vm335_vm3, %v13910_v55 }
0x17c3   :  { %12288 = vmatpush3.bf16.xpose.msk.msra.mxu0 %vm12661_vm5, %v13663_v23  ;;  %11701 = vmatprep.mubr.msk.f32.mxu0 %vm12455_vm10, %v14558_v27 }
0x17c4   :  { %12289 = vmatprep.subr.bf16.mxu0 %v14557_v49  ;;  %v7116_v23 = vpop.trf.xlu1 }
0x17c5   :  { %v6989_v58 = vpop.trf.xlu0 }
0x17c8   :  { %12300 = vmatpush3.bf16.xpose.msk.msra.mxu1 %vm12661_vm5, %v13676_v50  ;;  %v7117_v51 = vpop.trf.xlu1 }
0x17c9   :  { %11723 = vmatprep.subr.mxu1 %v13905_v14  ;;  %v7258_v17 = vpop.trf.xlu0 }
0x17cb   :  { %12292 = vmatpush3.bf16.xpose.msk.msra.mxu0 %vm12661_vm5, %v13688_v7 }
0x17cc   :  { %11715 = vmatprep.subr.mxu0 %v13910_v55  ;;  %v7118_v48 = vpop.trf.xlu1 }
0x17cd   :  { %v7259_v47 = vpop.trf.xlu0 }
0x17d0   :  { %v7387_v46 = vpop.trf.xlu1 }
0x17d1   :  { %v7260_v12 = vpop.trf.xlu0 }
0x17d4   :  { %v7388_v28 = vpop.trf.xlu1 }
0x17d5   :  { %v7261_v6 = vpop.trf.xlu0 }
0x17d8   :  { %v7389_v33 = vpop.trf.xlu1 }
0x17dc   :  { %v7390_v4 = vpop.trf.xlu1 }
0x1892   :  { %v6788_v50 = vpop.f32.mrb[82].mxu1 }
0x1893   :  { %v13937_v1 = vsel %vm6793_vm14, %v6788_v50, 0.0  ;;  %v11692_v7 = vpop.f32.mrb[83].mxu1 }
0x1894   :  { %11713 = vmatmul.mubr.msk.f32.vlgmr.msra.gmra.mrb[84].mxu1 %vm158_vm2, %v13937_v1 }
0x1895   :  { %v6703_v32 = vpop.f32.mrb[82].mxu0  ;;  %11724 = vmatpush3.msra.mxu1 %v13905_v14  ;;  %11725 = vmatprep.mubr.msk.f32.mxu1 %vm829_vm7, %v7115_v62 }
0x1896   :  { %v13946_v22 = vsel %vm6792_vm15, %v6703_v32, 0.0  ;;  %v11681_v21 = vpop.f32.mrb[83].mxu0  ;;  %11739 = vmatprep.subr.msk.mxu1 %vm6793_vm14, %v6788_v50 }
0x1897   :  { %11702 = vmatmul.mubr.msk.f32.vlgmr.msra.gmra.mrb[84].mxu0 %vm158_vm2, %v13946_v22 }
0x1898   :  { %11716 = vmatpush3.msra.mxu0 %v13910_v55  ;;  %11726 = vmatmul.mubr.msk.f32.vlgmr.msra.gmra.mrb[86].mxu1 %vm829_vm7, %v7116_v23 }
0x1899   :  { %11731 = vmatprep.subr.msk.mxu0 %vm6792_vm15, %v6703_v32  ;;  %11740 = vmatpush3.msk.msra.mxu1 %vm6793_vm14, %v6788_v50 }
0x189a   :  { %11717 = vmatprep.mubr.msk.f32.mxu0 %vm829_vm7, %v6986_v2  ;;  %11728 = vmatprep.mubr.msk.f32.mxu1 %vm829_vm7, %v7117_v51 }
0x189b   :  { %11718 = vmatmul.mubr.msk.f32.vlgmr.msra.gmra.mrb[86].mxu0 %vm829_vm7, %v6987_v54  ;;  %11752 = vmatprep.subr.mxu1 %v14558_v27 }
0x189c   :  { %11732 = vmatpush3.msk.msra.mxu0 %vm6792_vm15, %v6703_v32  ;;  %11729 = vmatmul.mubr.msk.f32.gmra.mrb[88].mxu1 %vm829_vm7, %v7118_v48 }
0x189d   :  { %11720 = vmatprep.mubr.msk.f32.mxu0 %vm829_vm7, %v6988_v19  ;;  %11741 = vmatprep.mubr.msk.f32.mxu1 %vm829_vm7, %v7387_v46 }
0x189e   :  { %11747 = vmatprep.subr.mxu0 %v14558_v27 }
0x189f   :  { %11721 = vmatmul.mubr.msk.f32.gmra.mrb[88].mxu0 %vm829_vm7, %v6989_v58 }
0x18a0   :  { %11742 = vmatmul.mubr.msk.f32.vlgmr.msra.gmra.mrb[90].mxu1 %vm829_vm7, %v7388_v28  ;;  %11733 = vmatprep.mubr.msk.f32.mxu0 %vm829_vm7, %v7258_v17 }
0x18a1   :  { %11744 = vmatprep.mubr.msk.f32.mxu1 %vm829_vm7, %v7389_v33 }
0x18a3   :  { %11734 = vmatmul.mubr.msk.f32.vlgmr.msra.gmra.mrb[90].mxu0 %vm829_vm7, %v7259_v47 }
0x18a4   :  { %11745 = vmatmul.mubr.msk.f32.gmra.mrb[92].mxu1 %vm829_vm7, %v7390_v4  ;;  %11736 = vmatprep.mubr.msk.f32.mxu0 %vm829_vm7, %v7260_v12 }
0x18a5   :  { %11754 = vmatprep.mubr.msk.f32.mxu1 %vm12455_vm10, %v14558_v27 }
0x18a7   :  { %11737 = vmatmul.mubr.msk.f32.gmra.mrb[92].mxu0 %vm829_vm7, %v7261_v6 }
0x18a8   :  { %11749 = vmatprep.mubr.msk.f32.mxu0 %vm12455_vm10, %v14558_v27 }
0x1967   :  { %v6962_v18 = vpop.f32.mrb[84].mxu1 }
0x1968   :  { %v13981_v35 = vsel %vm6967_vm8, %v6962_v18, 0.0  ;;  %v11714_v57 = vpop.f32.mrb[85].mxu1  ;;  %11753 = vmatpush3.msk.msra.mxu1 %vm6967_vm8, %v6962_v18 }
0x1969   :  { %11755 = vmatmul.mubr.msk.f32.vlgmr.msra.gmra.mrb[94].mxu1 %vm829_vm7, %v14581_v41  ;;  %11762 = vmatprep.subr.mxu1 %v14558_v27 }
0x196a   :  { %v6877_v60 = vpop.f32.mrb[84].mxu0  ;;  %11764 = vmatprep.mubr.msk.f32.mxu1 %vm12455_vm10, %v14558_v27 }
0x196b   :  { %v13989_v45 = vsel %vm6966_vm9, %v6877_v60, 0.0  ;;  %v11703_v39 = vpop.f32.mrb[85].mxu0  ;;  %11748 = vmatpush3.msk.msra.mxu0 %vm6966_vm9, %v6877_v60  ;;  %v13991_v29 = vpop.f32.mrb[86].mxu1 }
0x196c   :  { %11750 = vmatmul.mubr.msk.f32.vlgmr.msra.gmra.mrb[94].mxu0 %vm829_vm7, %v14582_v61  ;;  %v13995_v62 = vpop.f32.mrb[87].mxu1  ;;  %11757 = vmatprep.subr.mxu0 %v14558_v27 }
0x196d   :  { %11759 = vmatprep.mubr.msk.f32.mxu0 %vm12455_vm10, %v14558_v27 }
0x196e   :  { %v14000_v40 = vpop.f32.mrb[86].mxu0 }
0x196f   :  { %v14002_v2 = vpop.f32.mrb[87].mxu0  ;;  %v14004_v23 = vpop.f32.mrb[88].mxu1 }
0x1970   :  { %v14006_v54 = vpop.f32.mrb[89].mxu1 }
0x1972   :  { %v14008_v51 = vpop.f32.mrb[88].mxu0 }
0x1973   :  { %v14010_v19 = vpop.f32.mrb[89].mxu0  ;;  %v11743_v48 = vpop.f32.mrb[90].mxu1 }
0x1974   :  { %v7481_v58 = vpop.f32.mrb[91].mxu1  ;;  %v7681_v21 = vmul.f32 0.01, %v11743_v48 }
0x1975   :  { %v7680_v47 = vmul.f32 0.01, %v7481_v58 }
0x1976   :  { %v11735_v46 = vpop.f32.mrb[90].mxu0  ;;  %v14013_v18 = vsub.f32 %v13626_v20, %v7681_v21 }
0x1977   :  { %v7352_v50 = vpop.f32.mrb[91].mxu0  ;;  %v11746_v17 = vpop.f32.mrb[92].mxu1  ;;  %v7677_v33 = vmul.f32 0.01, %v11735_v46  ;;  %v14016_v57 = vsub.f32 %v13629_v13, %v7680_v47 }
0x1978   :  { %v7491_v7 = vpop.f32.mrb[93].mxu1  ;;  %v7676_v12 = vmul.f32 0.01, %v7352_v50  ;;  %v7683_v4 = vmul.f32 0.01, %v11746_v17  ;;  %v14073_v17 = vld [vmem:[%s14514_s2] sm:$0xff] }
0x1979   :  { %v7682_v60 = vmul.f32 0.01, %v7491_v7  ;;  %v14022_v48 = vsub.f32 %v13635_v42, %v7677_v33  ;;  %v14029_v13 = vpack.c.bf16 %v14013_v18, %v14016_v57  ;;  %14583 = vst [vmem:[#allocation11_spill] sm:$0xff] %v14073_v17  ;;  %v7654_v7 = vsel %vm158_vm2, %v13989_v45, 0.0 }
0x197a   :  { %v11738_v32 = vpop.f32.mrb[92].mxu0  ;;  %v14025_v58 = vsub.f32 %v13638_v38, %v7676_v12  ;;  %v14045_v38 = vld [vmem:[%s14514_s2 + $0x8] sm:$0xff]  ;;  %v7700_v45 = vmul.f32 0.01, %v13995_v62  ;;  %v7702_v62 = vmul.f32 0.01, %v14006_v54 }
0x197b   :  { %v7362_v28 = vpop.f32.mrb[93].mxu0  ;;  %v7679_v41 = vmul.f32 0.01, %v11738_v32  ;;  %v7655_v32 = vrot.slane %v7654_v7, 4 }
0x197c   :  { %v7678_v46 = vmul.f32 0.01, %v7362_v28 }
0x197d   :  { %v7656_v21 = vadd.f32 %v7655_v32, %v7654_v7  ;;  %v7696_v7 = vmul.f32 0.01, %v14002_v2 }
0x197f   :  { %v7657_v33 = vrot.slane %v7656_v21, 2 }
0x1a3c   :  { %v7650_v6 = vpop.f32.mrb[94].mxu1 }
0x1a3d   :  { %v7669_v39 = vmul.f32 0.01, %v7650_v6  ;;  %v11756_v61 = vpop.f32.mrb[95].mxu1 }
0x1a3e   :  { %v14032_v61 = vsub.f32 %v13645_v8, %v7683_v4  ;;  %v14055_v8 = vpack.c.bf16 %v14022_v48, %v14025_v58  ;;  %v7658_v4 = vadd.f32 %v7657_v33, %v7656_v21 }
0x1a3f   :  { %v14019_v11 = vsub.f32 %v13632_v43, %v7669_v39  ;;  %v7580_v34 = vpop.f32.mrb[94].mxu0  ;;  %v14035_v43 = vsub.f32 %v13648_v44, %v7682_v60  ;;  %v14058_v44 = vsub.f32 %v13666_v26, %v7679_v41 }
0x1a40   :  { %v7668_v20 = vmul.f32 0.01, %v7580_v34  ;;  %v11751_v50 = vpop.f32.mrb[95].mxu0  ;;  %v7659_v60 = vrot.slane %v7658_v4, 1 }
0x1a41   :  { %11763 = vmatpush3.msk.msra.mxu1 %vm71_vm0, %v14019_v11  ;;  %v14068_v34 = vpack.c.bf16 %v14032_v61, %v14035_v43 }
0x1a42   :  { %v14040_v42 = vsub.f32 %v13653_v9, %v7668_v20  ;;  %11765 = vmatmul.mubr.msk.f32.vlgmr.msra.gmra.mrb[96].mxu1 %vm64_vm1, %v14045_v38  ;;  %12307 = vmatprep.subr.bf16.mxu1 %v14557_v49  ;;  %v14061_v9 = vsub.f32 %v13669_v24, %v7678_v46  ;;  %v7661_v24 = vsel %vm158_vm2, %v13981_v35, 0.0  ;;  %v7660_v46 = vadd.f32 %v7659_v60, %v7658_v4 }
0x1a43   :  { %12309 = vmatpush3.bf16.msra.mxu1 %v14029_v13  ;;  %11786 = vmatprep.mubr.msk.f32.mxu1 %vm12455_vm10, %v14558_v27  ;;  %v7662_v41 = vrot.slane %v7661_v24, 4  ;;  %v7701_v35 = vmul.f32 0.01, %v13991_v29  ;;  %v7703_v29 = vmul.f32 0.01, %v14004_v23  ;;  %v14137_v4 = vsub.f32 %v13740_v30, %v7702_v62 }
0x1a44   :  { %11758 = vmatpush3.msk.msra.mxu0 %vm71_vm0, %v14040_v42  ;;  %12310 = vmatprep.subr.bf16.mxu1 %v14557_v49  ;;  %v14085_v26 = vpack.c.bf16 %v14058_v44, %v14061_v9  ;;  %v7672_v50 = vmul.f32 0.01, %v7660_v46  ;;  %v7698_v23 = vmul.f32 0.01, %v14010_v19  ;;  %v7500_v46 = vsel %vm158_vm2, %v13946_v22, 0.0 }
0x1a45   :  { %11760 = vmatmul.mubr.msk.f32.vlgmr.msra.gmra.mrb[96].mxu0 %vm64_vm1, %v14073_v17  ;;  %12301 = vmatprep.subr.bf16.mxu0 %v14557_v49  ;;  %v7663_v28 = vadd.f32 %v7662_v41, %v7661_v24  ;;  %v7697_v24 = vmul.f32 0.01, %v14000_v40 }
0x1a46   :  { %12303 = vmatpush3.bf16.msra.mxu0 %v14055_v8  ;;  %11775 = vmatprep.mubr.msk.f32.mxu0 %vm12455_vm10, %v14558_v27  ;;  %v14101_v41 = vsub.f32 %v13704_v59, %v7672_v50  ;;  %v14152_v30 = vsub.f32 %v13755_v56, %v7698_v23  ;;  %v7507_v56 = vsel %vm158_vm2, %v13937_v1, 0.0 }
0x1a47   :  { %12304 = vmatprep.subr.bf16.mxu0 %v14557_v49  ;;  %12312 = vmatpush3.bf16.msra.mxu1 %v14068_v34  ;;  %v7664_v47 = vrot.slane %v7663_v28, 2  ;;  %v14118_v2 = vsub.f32 %v13721_v31, %v7697_v24  ;;  %v14134_v31 = vsub.f32 %v13737_v25, %v7703_v29 }
0x1a48   :  { %12319 = vmatprep.subr.bf16.mxu1 %v14557_v49 }
0x1a49   :  { %v7665_v12 = vadd.f32 %v7664_v47, %v7663_v28  ;;  %v14109_v28 = vsub.f32 %v13712_v52, %v7701_v35  ;;  %v14122_v47 = vrot.slane %v14101_v41, %v12590_v15  ;;  %v14125_v52 = vsub.f32 %v13728_v16, %v7696_v7 }
0x1a4a   :  { %12306 = vmatpush3.bf16.msra.mxu0 %v14085_v26  ;;  %v14157_v60 = vpack.c.bf16 %v14134_v31, %v14137_v4 }
0x1a4b   :  { %12313 = vmatprep.subr.bf16.mxu0 %v14557_v49  ;;  %v7666_v6 = vrot.slane %v7665_v12, 1  ;;  %v14146_v19 = vpack.c.bf16 %v14118_v2, %v14125_v52 }
0x1a4d   :  { %v7667_v39 = vadd.f32 %v7666_v6, %v7665_v12 }
0x1a4f   :  { %v7673_v20 = vmul.f32 0.01, %v7667_v39  ;;  %v7508_v39 = vrot.slane %v7507_v56, 4 }
0x1a51   :  { %v14095_v17 = vsub.f32 %v13698_v63, %v7673_v20  ;;  %v14112_v63 = vsub.f32 %v13715_v53, %v7700_v45  ;;  %v7699_v53 = vmul.f32 0.01, %v14008_v51  ;;  %v7501_v20 = vrot.slane %v7500_v46, 4 }
0x1a52   :  { %v7509_v50 = vadd.f32 %v7508_v39, %v7507_v56 }
0x1a53   :  { %v14106_v32 = vrot.slane %v14095_v17, %v12590_v15  ;;  %v14131_v12 = vpack.c.bf16 %v14109_v28, %v14112_v63  ;;  %v14149_v25 = vsub.f32 %v13752_v0, %v7699_v53  ;;  %v7502_v35 = vadd.f32 %v7501_v20, %v7500_v46  ;;  %v12424_v20 = vld [vmem:[%s14512_s0 + $0x8] sm:$0xff] }
0x1a54   :  { %v7510_v45 = vrot.slane %v7509_v50, 2 }
0x1a55   :  { %v14167_v0 = vpack.c.bf16 %v14149_v25, %v14152_v30  ;;  %v7503_v24 = vrot.slane %v7502_v35, 2 }
0x1a56   :  { %v7511_v7 = vadd.f32 %v7510_v45, %v7509_v50  ;;  %v12425_v50 = vld [vmem:[%s14512_s0] sm:$0xff] }
0x1a57   :  { %v7504_v29 = vadd.f32 %v7503_v24, %v7502_v35  ;;  %v7235_v35 = vsel %vm335_vm3, %v13905_v14, 0.0  ;;  %v7228_v24 = vsel %vm335_vm3, %v13910_v55, 0.0 }
0x1a58   :  { %v7512_v62 = vrot.slane %v7511_v7, 1  ;;  %v7236_v45 = vrot.slane %v7235_v35, 4 }
0x1b15   :  { %v7870_v40 = vpop.f32.mrb[96].mxu1 }
0x1b16   :  { %v7871_v59 = vadd.f32 %v7870_v40, %v14106_v32  ;;  %v11766_v21 = vpop.f32.mrb[97].mxu1  ;;  %v7505_v40 = vrot.slane %v7504_v29, 1 }
0x1b18   :  { %v7875_v33 = vmax.f32 %v7871_v59, 0.0  ;;  %v7797_v54 = vpop.f32.mrb[96].mxu0  ;;  %v7513_v59 = vadd.f32 %v7512_v62, %v7511_v7  ;;  %v7506_v21 = vadd.f32 %v7505_v40, %v7504_v29  ;;  %v7229_v7 = vrot.slane %v7228_v24, 4 }
0x1b19   :  { %v7798_v6 = vadd.f32 %v7797_v54, %v14122_v47  ;;  %v11761_v16 = vpop.f32.mrb[97].mxu0  ;;  %v7237_v29 = vadd.f32 %v7236_v45, %v7235_v35 }
0x1b1a   :  { %11787 = vmatmul.mubr.msk.f32.vlgmr.msra.gmra.mrb[98].mxu1 %vm158_vm2, %v7875_v33  ;;  %v7693_v53 = vmul.f32 0.01, %v7513_v59  ;;  %v7692_v23 = vmul.f32 0.01, %v7506_v21  ;;  %v7230_v62 = vadd.f32 %v7229_v7, %v7228_v24 }
0x1b1b   :  { %v7874_v51 = vmax.f32 %v7798_v6, 0.0  ;;  %12321 = vmatpush3.bf16.msra.mxu1 %v14131_v12  ;;  %11808 = vmatprep.mubr.msk.f32.mxu1 %vm12455_vm10, %v14558_v27  ;;  %v7238_v40 = vrot.slane %v7237_v29, 2 }
0x1b1c   :  { %12322 = vmatprep.subr.bf16.mxu1 %v14557_v49  ;;  %v14177_v33 = vsub.f32 %v13780_v37, %v7693_v53  ;;  %v14180_v1 = vsub.f32 %v13783_v36, %v7692_v23  ;;  %v7231_v59 = vrot.slane %v7230_v62, 2 }
0x1b1d   :  { %11776 = vmatmul.mubr.msk.f32.vlgmr.msra.gmra.mrb[98].mxu0 %vm158_vm2, %v7874_v51  ;;  %v7239_v21 = vadd.f32 %v7238_v40, %v7237_v29 }
0x1b1e   :  { %12315 = vmatpush3.bf16.msra.mxu0 %v14146_v19  ;;  %11797 = vmatprep.mubr.msk.f32.mxu0 %vm12455_vm10, %v14558_v27  ;;  %v14184_v22 = vrot.slane %v14177_v33, %v12590_v15  ;;  %v14189_v51 = vrot.slane %v14180_v1, %v12590_v15  ;;  %v7232_v53 = vadd.f32 %v7231_v59, %v7230_v62  ;;  %v14253_v62 = vld [vmem:[%s14515_s3] sm:$0xff] }
0x1b1f   :  { %12316 = vmatprep.subr.bf16.mxu0 %v14557_v49  ;;  %12324 = vmatpush3.bf16.msra.mxu1 %v14157_v60  ;;  %v7240_v23 = vrot.slane %v7239_v21, 1 }
0x1b20   :  { %11816 = vmatprep.subr.mxu1 %v14558_v27 }
0x1b22   :  { %12318 = vmatpush3.bf16.msra.mxu0 %v14167_v0 }
0x1b23   :  { %11811 = vmatprep.subr.mxu0 %v14558_v27 }
0x1bed   :  { %v8030_v54 = vpop.f32.mrb[98].mxu1 }
0x1bee   :  { %v8031_v6 = vadd.f32 %v8030_v54, %v14184_v22  ;;  %v11788_v16 = vpop.f32.mrb[99].mxu1  ;;  %v7233_v54 = vrot.slane %v7232_v53, 1 }
0x1bf0   :  { %v8035_v56 = vmax.f32 %v8031_v6, 0.0  ;;  %v7957_v39 = vpop.f32.mrb[98].mxu0  ;;  %v7241_v6 = vadd.f32 %v7240_v23, %v7239_v21  ;;  %v7234_v16 = vadd.f32 %v7233_v54, %v7232_v53 }
0x1bf1   :  { %v7958_v37 = vadd.f32 %v7957_v39, %v14189_v51  ;;  %v11777_v46 = vpop.f32.mrb[99].mxu0 }
0x1bf2   :  { %11809 = vmatmul.mubr.msk.f32.vlgmr.msra.gmra.mrb[100].mxu1 %vm158_vm2, %v8035_v56  ;;  %v7713_v56 = vmul.f32 0.01, %v7241_v6  ;;  %v7712_v39 = vmul.f32 0.01, %v7234_v16 }
0x1bf3   :  { %v8034_v36 = vmax.f32 %v7958_v37, 0.0  ;;  %11817 = vmatpush3.msk.msra.mxu1 %vm71_vm0, %v14019_v11  ;;  %11818 = vmatprep.mubr.msk.f32.mxu1 %vm12455_vm10, %v14558_v27 }
0x1bf4   :  { %12331 = vmatprep.subr.bf16.mxu1 %v14557_v49  ;;  %v14229_v37 = vsub.f32 %v13828_v3, %v7713_v56  ;;  %v14232_v14 = vsub.f32 %v13831_v5, %v7712_v39  ;;  %v14246_v3 = vld [vmem:[%s14515_s3 + $0x8] sm:$0xff]  ;;  %s12457_s3 = smov 2  }
0x1bf5   :  { %11798 = vmatmul.mubr.msk.f32.vlgmr.msra.gmra.mrb[100].mxu0 %vm158_vm2, %v8034_v36 }
0x1bf6   :  { %11812 = vmatpush3.msk.msra.mxu0 %vm71_vm0, %v14040_v42  ;;  %11813 = vmatprep.mubr.msk.f32.mxu0 %vm12455_vm10, %v14558_v27  ;;  %v14236_v55 = vrot.slane %v14229_v37, %v12590_v15 }
0x1bf7   :  { %11819 = vmatmul.mubr.msk.f32.vlgmr.msra.gmra.mrb[102].mxu1 %vm64_vm1, %v12424_v20  ;;  %12325 = vmatprep.subr.bf16.mxu0 %v14557_v49 }
0x1bf8   :  { %12333 = vmatpush3.bf16.msra.mxu1 %v14029_v13  ;;  %11840 = vmatprep.mubr.msk.f32.mxu1 %vm12455_vm10, %v14558_v27 }
0x1bf9   :  { %11814 = vmatmul.mubr.msk.f32.vlgmr.msra.gmra.mrb[102].mxu0 %vm64_vm1, %v12425_v50  ;;  %12334 = vmatprep.subr.bf16.mxu1 %v14557_v49  ;;  %v14241_v50 = vrot.slane %v14232_v14, %v12590_v15 }
0x1bfa   :  { %12327 = vmatpush3.bf16.msra.mxu0 %v14055_v8  ;;  %11829 = vmatprep.mubr.msk.f32.mxu0 %vm12455_vm10, %v14558_v27 }
0x1bfb   :  { %12328 = vmatprep.subr.bf16.mxu0 %v14557_v49 }
0x1bfc   :  { %12336 = vmatpush3.bf16.msra.mxu1 %v14068_v34 }
0x1bfd   :  { %12343 = vmatprep.subr.bf16.mxu1 %v14557_v49 }
0x1bfe   :  { %12330 = vmatpush3.bf16.msra.mxu0 %v14085_v26 }
0x1bff   :  { %12337 = vmatprep.subr.bf16.mxu0 %v14557_v49 }
0x1cc5   :  { %v8190_v46 = vpop.f32.mrb[100].mxu1 }
0x1cc6   :  { %v8191_v36 = vadd.f32 %v8190_v46, %v14236_v55  ;;  %v11810_v20 = vpop.f32.mrb[101].mxu1 }
0x1cc8   :  { %v8195_v5 = vsub.f32 %v8191_v36, %v14246_v3  ;;  %v8117_v35 = vpop.f32.mrb[100].mxu0 }
0x1cc9   :  { %v8118_v45 = vadd.f32 %v8117_v35, %v14241_v50  ;;  %v11799_v24 = vpop.f32.mrb[101].mxu0 }
0x1cca   :  { %v8197_v7 = vmul.f32 %v8195_v5, %v8195_v5  ;;  %v8352_v29 = vpop.f32.mrb[102].mxu1 }
0x1ccb   :  { %v8194_v40 = vsub.f32 %v8118_v45, %v14253_v62  ;;  %v14257_v59 = vadd.f32 %v8352_v29, %v14106_v32  ;;  %v11820_v21 = vpop.f32.mrb[103].mxu1 }
0x1ccc   :  { %v8207_v53 = vsel %vm335_vm3, %v8197_v7, 0.0  ;;  %v8282_v23 = vpop.f32.mrb[102].mxu0 }
0x1ccd   :  { %v8208_v54 = vrot.slane %v8207_v53, 4  ;;  %v8196_v6 = vmul.f32 %v8194_v40, %v8194_v40  ;;  %v8357_v16 = vmax.f32 %v14257_v59, 0.0  ;;  %v11815_v56 = vpop.f32.mrb[103].mxu0  ;;  %v14262_v39 = vadd.f32 %v8282_v23, %v14122_v47 }
0x1cce   :  { %vm9001_vm11 = vcmp.gt.f32.partialorder %v14257_v59, 0.0  ;;  %v14589_v59 = vld [vmem:[#allocation10_spill] sm:$0xff] }
0x1ccf   :  { %v8209_v46 = vadd.f32 %v8208_v54, %v8207_v53  ;;  %v8200_v36 = vsel %vm335_vm3, %v8196_v6, 0.0  ;;  %11841 = vmatmul.mubr.msk.f32.vlgmr.msra.gmra.mrb[104].mxu1 %vm158_vm2, %v8357_v16  ;;  %v8356_v32 = vmax.f32 %v14262_v39, 0.0  ;;  %vm9000_vm12 = vcmp.gt.f32.partialorder %v14262_v39, 0.0 }
0x1cd0   :  { %v8201_v20 = vrot.slane %v8200_v36, 4  ;;  %12345 = vmatpush3.bf16.msra.mxu1 %v14131_v12  ;;  %11862 = vmatprep.mubr.msk.f32.mxu1 %vm12455_vm10, %v14558_v27 }
0x1cd1   :  { %v8210_v5 = vrot.slane %v8209_v46, 2  ;;  %12346 = vmatprep.subr.bf16.mxu1 %v14557_v49  ;;  %11830 = vmatmul.mubr.msk.f32.vlgmr.msra.gmra.mrb[104].mxu0 %vm158_vm2, %v8356_v32 }
0x1cd2   :  { %v8202_v35 = vadd.f32 %v8201_v20, %v8200_v36  ;;  %12339 = vmatpush3.bf16.msra.mxu0 %v14146_v19  ;;  %11851 = vmatprep.mubr.msk.f32.mxu0 %vm12455_vm10, %v14558_v27 }
0x1cd3   :  { %v8211_v47 = vadd.f32 %v8210_v5, %v8209_v46  ;;  %12340 = vmatprep.subr.bf16.mxu0 %v14557_v49 }
0x1cd4   :  { %v8203_v45 = vrot.slane %v8202_v35, 2  ;;  %12348 = vmatpush3.bf16.msra.mxu1 %v14157_v60 }
0x1cd5   :  { %12357 = vmatprep.subr.bf16.mxu1 %v14557_v49  ;;  %v8212_v24 = vrot.slane %v8211_v47, 1 }
0x1cd6   :  { %v8204_v7 = vadd.f32 %v8203_v45, %v8202_v35  ;;  %12342 = vmatpush3.bf16.msra.mxu0 %v14167_v0 }
0x1cd7   :  { %v8213_v29 = vadd.f32 %v8212_v24, %v8211_v47  ;;  %12349 = vmatprep.subr.bf16.mxu0 %v14557_v49 }
0x1cd8   :  { %v8205_v40 = vrot.slane %v8204_v7, 1 }
0x1cd9   :  { %v8215_v53 = vmul.f32 0.125, %v8213_v29  ;;  %v12429_v29 = vld [vmem:[%s14513_s1] sm:$0xff] }
0x1cda   :  { %v8206_v21 = vadd.f32 %v8205_v40, %v8204_v7 }
0x1cdc   :  { %v8214_v23 = vmul.f32 0.125, %v8206_v21 }
0x1cde   :  { %v10275_v54 = vsel %vm10252_vm6, %v8215_v53, %v8214_v23 }
0x1da2   :  { %v8500_v6 = vpop.f32.mrb[104].mxu1 }
0x1da3   :  { %v14282_v56 = vadd.f32 %v8500_v6, %v14184_v22  ;;  %v11842_v46 = vpop.f32.mrb[105].mxu1 }
0x1da4   :  { %v8427_v36 = vpop.f32.mrb[104].mxu0 }
0x1da5   :  { %v8505_v20 = vmax.f32 %v14282_v56, 0.0  ;;  %v14286_v5 = vadd.f32 %v8427_v36, %v14189_v51  ;;  %v11831_v35 = vpop.f32.mrb[105].mxu0 }
0x1da7   :  { %9133 = vxpose.xlu1.b32.start.end [1/1] (short) (narrow) %v8505_v20, 32  ;;  %11863 = vmatmul.mubr.msk.f32.vlgmr.msra.gmra.mrb[106].mxu1 %vm158_vm2, %v8505_v20  ;;  %v8504_v47 = vmax.f32 %v14286_v5, 0.0 }
0x1da8   :  { %12360 = vmatpush3.bf16.xpose.msk.msra.mxu1 %vm12653_vm4, %v14131_v12  ;;  %11884 = vmatprep.mubr.msk.f32.mxu1 %vm12455_vm10, %v14558_v27  ;;  %v14584_v12 = vld [vmem:[#allocation17_spill] sm:$0xff] }
0x1da9   :  { %12361 = vmatprep.subr.bf16.mxu1 %v14557_v49  ;;  %9004 = vxpose.xlu0.b32.start.end [1/1] (short) (narrow) %v8504_v47, 32 }
0x1daa   :  { %11852 = vmatmul.mubr.msk.f32.vlgmr.msra.gmra.mrb[106].mxu0 %vm158_vm2, %v8504_v47 }
0x1dab   :  { %12352 = vmatpush3.bf16.xpose.msk.msra.mxu0 %vm12653_vm4, %v14146_v19  ;;  %11873 = vmatprep.mubr.msk.f32.mxu0 %vm12455_vm10, %v14558_v27  ;;  %v14585_v19 = vld [vmem:[#allocation14_spill] sm:$0xff] }
0x1dac   :  { %12353 = vmatprep.subr.bf16.mxu0 %v14557_v49 }
0x1db0   :  { %12364 = vmatpush3.bf16.xpose.msk.msra.mxu1 %vm12653_vm4, %v14157_v60  ;;  %v14586_v60 = vld [vmem:[#allocation13_spill] sm:$0xff] }
0x1db1   :  { %12373 = vmatprep.subr.bf16.mxu1 %v14557_v49 }
0x1db3   :  { %12356 = vmatpush3.bf16.xpose.msk.msra.mxu0 %vm12653_vm4, %v14167_v0  ;;  %v12428_v0 = vld [vmem:[%s14513_s1 + $0x8] sm:$0xff]  ;;  %vm8827_vm4 = vcmp.gt.f32.partialorder %v14282_v56, 0.0  ;;  %s12461_s1 = smov 5  }
0x1db4   :  { %9405 = vxpose.xlu1.b32.start.end [1/1] (short) (narrow) %v8357_v16, 32  ;;  %12365 = vmatprep.subr.bf16.mxu0 %v14557_v49 }
0x1db6   :  { %9276 = vxpose.xlu0.b32.start.end [1/1] (short) (narrow) %v8356_v32, 32 }
0x1dde   :  { %10264 = vrot.lane.b32.xlu1 %v14584_v12, %s12457_s3 }
0x1de2   :  { %10270 = vrot.lane.b32.xlu1 %v14585_v19, %s12458_s25 }
0x1de6   :  { %10276 = vrot.lane.b32.xlu1 %v10275_v54, %s12459_s26 }
0x1deb   :  { %10258 = vrot.lane.b32.xlu0 %v14586_v60, %s12460_s27 }
0x1e7a   :  { %v8648_v22 = vpop.f32.mrb[106].mxu1 }
0x1e7b   :  { %v8649_v51 = vadd.f32 %v8648_v22, %v14236_v55  ;;  %v11864_v10 = vpop.f32.mrb[107].mxu1 }
0x1e7d   :  { %v8653_v16 = vsub.f32 %v8649_v51, %v12428_v0  ;;  %v8575_v32 = vpop.f32.mrb[106].mxu0 }
0x1e7e   :  { %v8576_v45 = vadd.f32 %v8575_v32, %v14241_v50  ;;  %v11853_v24 = vpop.f32.mrb[107].mxu0  ;;  %v9020_v50 = vpop.trf.xlu0 }
0x1e7f   :  { %v14319_v7 = vmul.f32 0.25, %v8653_v16 }
0x1e80   :  { %v8652_v40 = vsub.f32 %v8576_v45, %v12429_v29  ;;  %v14588_v45 = vld [vmem:[#allocation9_spill] sm:$0xff] }
0x1e81   :  { %11885 = vmatmul.mubr.msk.f32.vlgmr.msra.gmra.mrb[108].mxu1 %vm335_vm3, %v14319_v7 }
0x1e82   :  { %v14326_v55 = vmul.f32 0.25, %v8652_v40  ;;  %12376 = vmatpush3.bf16.xpose.msk.msra.mxu1 %vm12661_vm5, %v14029_v13  ;;  %11906 = vmatprep.mubr.msk.f32.mxu1 %vm12455_vm10, %v14558_v27  ;;  %v9149_v13 = vpop.trf.xlu1  ;;  %v9021_v53 = vpop.trf.xlu0 }
0x1e83   :  { %12377 = vmatprep.subr.bf16.mxu1 %v14557_v49 }
0x1e84   :  { %11874 = vmatmul.mubr.msk.f32.vlgmr.msra.gmra.mrb[108].mxu0 %vm335_vm3, %v14326_v55 }
0x1e85   :  { %12368 = vmatpush3.bf16.xpose.msk.msra.mxu0 %vm12661_vm5, %v14055_v8  ;;  %11895 = vmatprep.mubr.msk.f32.mxu0 %vm12455_vm10, %v14558_v27 }
0x1e86   :  { %12369 = vmatprep.subr.bf16.mxu0 %v14557_v49  ;;  %v9150_v8 = vpop.trf.xlu1  ;;  %v9022_v54 = vpop.trf.xlu0 }
0x1e8a   :  { %12380 = vmatpush3.bf16.xpose.msk.msra.mxu1 %vm12661_vm5, %v14068_v34  ;;  %v9151_v23 = vpop.trf.xlu1  ;;  %v9023_v46 = vpop.trf.xlu0 }
0x1e8b   :  { %11917 = vmatprep.subr.mxu1 %v14319_v7 }
0x1e8d   :  { %12372 = vmatpush3.bf16.xpose.msk.msra.mxu0 %vm12661_vm5, %v14085_v26  ;;  %vm8826_vm5 = vcmp.gt.f32.partialorder %v14286_v5, 0.0 }
0x1e8e   :  { %11909 = vmatprep.subr.mxu0 %v14326_v55  ;;  %v9152_v6 = vpop.trf.xlu1  ;;  %v9292_v26 = vpop.trf.xlu0 }
0x1e92   :  { %v9421_v36 = vpop.trf.xlu1  ;;  %v9293_v22 = vpop.trf.xlu0 }
0x1e96   :  { %v9422_v60 = vpop.trf.xlu1  ;;  %v9294_v56 = vpop.trf.xlu0 }
0x1e9a   :  { %v9423_v51 = vpop.trf.xlu1  ;;  %v9295_v10 = vpop.trf.xlu0 }
0x1e9e   :  { %v9424_v5 = vpop.trf.xlu1 }
0x1f54   :  { %v8822_v34 = vpop.f32.mrb[108].mxu1 }
0x1f55   :  { %v14353_v20 = vsel %vm8827_vm4, %v8822_v34, 0.0  ;;  %v11886_v35 = vpop.f32.mrb[109].mxu1 }
0x1f56   :  { %11907 = vmatmul.mubr.msk.f32.vlgmr.msra.gmra.mrb[110].mxu1 %vm158_vm2, %v14353_v20 }
0x1f57   :  { %v8737_v47 = vpop.f32.mrb[108].mxu0  ;;  %11918 = vmatpush3.msra.mxu1 %v14319_v7  ;;  %11919 = vmatprep.mubr.msk.f32.mxu1 %vm829_vm7, %v9149_v13 }
0x1f58   :  { %v14362_v12 = vsel %vm8826_vm5, %v8737_v47, 0.0  ;;  %v11875_v19 = vpop.f32.mrb[109].mxu0  ;;  %11933 = vmatprep.subr.msk.mxu1 %vm8827_vm4, %v8822_v34 }
0x1f59   :  { %11896 = vmatmul.mubr.msk.f32.vlgmr.msra.gmra.mrb[110].mxu0 %vm158_vm2, %v14362_v12 }
0x1f5a   :  { %11910 = vmatpush3.msra.mxu0 %v14326_v55  ;;  %11911 = vmatprep.mubr.msk.f32.mxu0 %vm829_vm7, %v9020_v50 }
0x1f5b   :  { %11925 = vmatprep.subr.msk.mxu0 %vm8826_vm5, %v8737_v47  ;;  %11920 = vmatmul.mubr.msk.f32.vlgmr.msra.gmra.mrb[112].mxu1 %vm829_vm7, %v9150_v8 }
0x1f5c   :  { %11934 = vmatpush3.msk.msra.mxu1 %vm8827_vm4, %v8822_v34  ;;  %11922 = vmatprep.mubr.msk.f32.mxu1 %vm829_vm7, %v9151_v23 }
0x1f5d   :  { %11912 = vmatmul.mubr.msk.f32.vlgmr.msra.gmra.mrb[112].mxu0 %vm829_vm7, %v9021_v53  ;;  %11946 = vmatprep.subr.mxu1 %v14558_v27 }
0x1f5e   :  { %11926 = vmatpush3.msk.msra.mxu0 %vm8826_vm5, %v8737_v47  ;;  %11914 = vmatprep.mubr.msk.f32.mxu0 %vm829_vm7, %v9022_v54 }
0x1f5f   :  { %11923 = vmatmul.mubr.msk.f32.gmra.mrb[114].mxu1 %vm829_vm7, %v9152_v6  ;;  %11941 = vmatprep.subr.mxu0 %v14558_v27 }
0x1f60   :  { %11935 = vmatprep.mubr.msk.f32.mxu1 %vm829_vm7, %v9421_v36 }
0x1f61   :  { %11915 = vmatmul.mubr.msk.f32.gmra.mrb[114].mxu0 %vm829_vm7, %v9023_v46 }
0x1f62   :  { %11927 = vmatprep.mubr.msk.f32.mxu0 %vm829_vm7, %v9292_v26 }
0x1f63   :  { %11936 = vmatmul.mubr.msk.f32.vlgmr.msra.gmra.mrb[116].mxu1 %vm829_vm7, %v9422_v60 }
0x1f64   :  { %11938 = vmatprep.mubr.msk.f32.mxu1 %vm829_vm7, %v9423_v51 }
0x1f65   :  { %11928 = vmatmul.mubr.msk.f32.vlgmr.msra.gmra.mrb[116].mxu0 %vm829_vm7, %v9293_v22 }
0x1f66   :  { %11930 = vmatprep.mubr.msk.f32.mxu0 %vm829_vm7, %v9294_v56 }
0x1f67   :  { %11939 = vmatmul.mubr.msk.f32.gmra.mrb[118].mxu1 %vm829_vm7, %v9424_v5 }
0x1f68   :  { %11948 = vmatprep.mubr.msk.f32.mxu1 %vm12455_vm10, %v14558_v27 }
0x1f69   :  { %11931 = vmatmul.mubr.msk.f32.gmra.mrb[118].mxu0 %vm829_vm7, %v9295_v10 }
0x1f6a   :  { %11943 = vmatprep.mubr.msk.f32.mxu0 %vm12455_vm10, %v14558_v27 }
0x2029   :  { %v8996_v0 = vpop.f32.mrb[110].mxu1 }
0x202a   :  { %v14397_v16 = vsel %vm9001_vm11, %v8996_v0, 0.0  ;;  %v11908_v32 = vpop.f32.mrb[111].mxu1  ;;  %11947 = vmatpush3.msk.msra.mxu1 %vm9001_vm11, %v8996_v0 }
0x202b   :  { %11949 = vmatmul.mubr.msk.f32.vlgmr.msra.gmra.mrb[120].mxu1 %vm829_vm7, %v14588_v45  ;;  %11956 = vmatprep.subr.mxu1 %v14558_v27 }
0x202c   :  { %v8911_v24 = vpop.f32.mrb[110].mxu0  ;;  %11958 = vmatprep.mubr.msk.f32.mxu1 %vm12455_vm10, %v14558_v27 }
0x202d   :  { %v14405_v29 = vsel %vm9000_vm12, %v8911_v24, 0.0  ;;  %v11897_v40 = vpop.f32.mrb[111].mxu0  ;;  %11942 = vmatpush3.msk.msra.mxu0 %vm9000_vm12, %v8911_v24 }
0x202e   :  { %11944 = vmatmul.mubr.msk.f32.vlgmr.msra.gmra.mrb[120].mxu0 %vm829_vm7, %v14589_v59  ;;  %v11921_v21 = vpop.f32.mrb[112].mxu1  ;;  %11951 = vmatprep.subr.mxu0 %v14558_v27  ;;  %vm10291_vm7 = vcmask 39936  }
0x202f   :  { %v9735_v13 = vmul.f32 0.01, %v11921_v21  ;;  %v9243_v50 = vpop.f32.mrb[113].mxu1  ;;  %11953 = vmatprep.mubr.msk.f32.mxu0 %vm12455_vm10, %v14558_v27 }
0x2030   :  { %v11913_v39 = vpop.f32.mrb[112].mxu0  ;;  %v9734_v8 = vmul.f32 0.01, %v9243_v50 }
0x2031   :  { %v9743_v53 = vsub.f32 %v14109_v28, %v9735_v13  ;;  %v9731_v23 = vmul.f32 0.01, %v11913_v39  ;;  %v9114_v54 = vpop.f32.mrb[113].mxu0 }
0x2032   :  { %v9742_v6 = vsub.f32 %v14112_v63, %v9734_v8  ;;  %v9730_v46 = vmul.f32 0.01, %v9114_v54  ;;  %v11924_v36 = vpop.f32.mrb[114].mxu1 }
0x2033   :  { %v9739_v34 = vsub.f32 %v14118_v2, %v9731_v23  ;;  %v9737_v35 = vmul.f32 0.01, %v11924_v36  ;;  %v9253_v26 = vpop.f32.mrb[115].mxu1 }
0x2034   :  { %v14415_v47 = vpack.c.bf16 %v9743_v53, %v9742_v6  ;;  %v9738_v19 = vsub.f32 %v14125_v52, %v9730_v46  ;;  %v11916_v60 = vpop.f32.mrb[114].mxu0  ;;  %v9736_v22 = vmul.f32 0.01, %v9253_v26 }
0x2035   :  { %v9745_v51 = vsub.f32 %v14134_v31, %v9737_v35  ;;  %v9733_v56 = vmul.f32 0.01, %v11916_v60  ;;  %v9124_v28 = vpop.f32.mrb[115].mxu0 }
0x2036   :  { %v14419_v5 = vpack.c.bf16 %v9739_v34, %v9738_v19  ;;  %v9744_v63 = vsub.f32 %v14137_v4, %v9736_v22  ;;  %v9732_v10 = vmul.f32 0.01, %v9124_v28  ;;  %v11937_v0 = vpop.f32.mrb[116].mxu1 }
0x2037   :  { %v9741_v2 = vsub.f32 %v14149_v25, %v9733_v56  ;;  %v9715_v32 = vmul.f32 0.01, %v11937_v0  ;;  %v9515_v45 = vpop.f32.mrb[117].mxu1 }
0x2038   :  { %v14423_v24 = vpack.c.bf16 %v9745_v51, %v9744_v63  ;;  %v9740_v52 = vsub.f32 %v14152_v30, %v9732_v10  ;;  %v11929_v40 = vpop.f32.mrb[116].mxu0  ;;  %v9714_v59 = vmul.f32 0.01, %v9515_v45 }
0x2039   :  { %v9723_v31 = vsub.f32 %v14013_v18, %v9715_v32  ;;  %v9711_v21 = vmul.f32 0.01, %v11929_v40  ;;  %v9386_v13 = vpop.f32.mrb[117].mxu0 }
0x203a   :  { %v14427_v50 = vpack.c.bf16 %v9741_v2, %v9740_v52  ;;  %v9722_v4 = vsub.f32 %v14016_v57, %v9714_v59  ;;  %v9710_v39 = vmul.f32 0.01, %v9386_v13  ;;  %v11940_v8 = vpop.f32.mrb[118].mxu1 }
0x203b   :  { %v9719_v25 = vsub.f32 %v14022_v48, %v9711_v21  ;;  %v9717_v53 = vmul.f32 0.01, %v11940_v8  ;;  %v9525_v23 = vpop.f32.mrb[119].mxu1 }
0x203c   :  { %v12388_v54 = vpack.c.bf16 %v9723_v31, %v9722_v4  ;;  %v9718_v6 = vsub.f32 %v14025_v58, %v9710_v39  ;;  %v11932_v30 = vpop.f32.mrb[118].mxu0  ;;  %v9716_v46 = vmul.f32 0.01, %v9525_v23 }
0x203d   :  { %v9725_v36 = vsub.f32 %v14032_v61, %v9717_v53  ;;  %v9713_v18 = vmul.f32 0.01, %v11932_v30  ;;  %v9396_v34 = vpop.f32.mrb[119].mxu0 }
0x203e   :  { %v12382_v35 = vpack.c.bf16 %v9719_v25, %v9718_v6  ;;  %v9724_v26 = vsub.f32 %v14035_v43, %v9716_v46  ;;  %v9712_v19 = vmul.f32 0.01, %v9396_v34  ;;  %v9695_v43 = vsel %vm158_vm2, %v14397_v16, 0.0 }
0x203f   :  { %v9721_v57 = vsub.f32 %v14058_v44, %v9713_v18 }
0x2040   :  { %v12391_v60 = vpack.c.bf16 %v9725_v36, %v9724_v26  ;;  %v9720_v48 = vsub.f32 %v14061_v9, %v9712_v19 }
0x2042   :  { %v12385_v22 = vpack.c.bf16 %v9721_v57, %v9720_v48 }
0x20fe   :  { %v9684_v51 = vpop.f32.mrb[120].mxu1 }
0x20ff   :  { %v9703_v56 = vmul.f32 0.01, %v9684_v51  ;;  %v11950_v28 = vpop.f32.mrb[121].mxu1 }
0x2101   :  { %v9705_v58 = vsub.f32 %v14019_v11, %v9703_v56  ;;  %v9614_v63 = vpop.f32.mrb[120].mxu0  ;;  %v14590_v11 = vld [vmem:[#allocation11_spill] sm:$0xff] }
0x2102   :  { %v9702_v10 = vmul.f32 0.01, %v9614_v63  ;;  %v11945_v61 = vpop.f32.mrb[121].mxu0 }
0x2103   :  { %11957 = vmatpush3.msk.msra.mxu1 %vm71_vm0, %v9705_v58 }
0x2104   :  { %v9704_v0 = vsub.f32 %v14040_v42, %v9702_v10  ;;  %11959 = vmatmul.mubr.msk.f32.vlgmr.msra.gmra.mrb[122].mxu1 %vm64_vm1, %v14045_v38  ;;  %12387 = vmatprep.subr.bf16.mxu1 %v14557_v49  ;;  %v9696_v42 = vrot.slane %v9695_v43, 4  ;;  %v9688_v38 = vsel %vm158_vm2, %v14405_v29, 0.0 }
0x2105   :  { %12389 = vmatpush3.bf16.msra.mxu1 %v12388_v54  ;;  %11980 = vmatprep.mubr.msk.f32.mxu1 %vm12455_vm10, %v14558_v27  ;;  %v9689_v44 = vrot.slane %v9688_v38, 4 }
0x2106   :  { %11952 = vmatpush3.msk.msra.mxu0 %vm71_vm0, %v9704_v0  ;;  %12390 = vmatprep.subr.bf16.mxu1 %v14557_v49  ;;  %v9697_v9 = vadd.f32 %v9696_v42, %v9695_v43  ;;  %v9262_v42 = vsel %vm335_vm3, %v14326_v55, 0.0  ;;  %vm10286_vm0 = vcmask 15360  }
0x2107   :  { %11954 = vmatmul.mubr.msk.f32.vlgmr.msra.gmra.mrb[122].mxu0 %vm64_vm1, %v14590_v11  ;;  %12381 = vmatprep.subr.bf16.mxu0 %v14557_v49  ;;  %v9690_v2 = vadd.f32 %v9689_v44, %v9688_v38  ;;  %v9263_v38 = vrot.slane %v9262_v42, 4 }
0x2108   :  { %12383 = vmatpush3.bf16.msra.mxu0 %v12382_v35  ;;  %11969 = vmatprep.mubr.msk.f32.mxu0 %vm12455_vm10, %v14558_v27  ;;  %v9698_v32 = vrot.slane %v9697_v9, 2 }
0x2109   :  { %12384 = vmatprep.subr.bf16.mxu0 %v14557_v49  ;;  %12392 = vmatpush3.bf16.msra.mxu1 %v12391_v60  ;;  %v9691_v45 = vrot.slane %v9690_v2, 2 }
0x210a   :  { %12399 = vmatprep.subr.bf16.mxu1 %v14557_v49  ;;  %v9699_v52 = vadd.f32 %v9698_v32, %v9697_v9  ;;  %v9264_v9 = vadd.f32 %v9263_v38, %v9262_v42 }
0x210b   :  { %v9692_v40 = vadd.f32 %v9691_v45, %v9690_v2 }
0x210c   :  { %12386 = vmatpush3.bf16.msra.mxu0 %v12385_v22  ;;  %v9700_v59 = vrot.slane %v9699_v52, 1  ;;  %v9265_v32 = vrot.slane %v9264_v9, 2 }
0x210d   :  { %12393 = vmatprep.subr.bf16.mxu0 %v14557_v49  ;;  %v9693_v31 = vrot.slane %v9692_v40, 1 }
0x210e   :  { %v9701_v21 = vadd.f32 %v9700_v59, %v9699_v52  ;;  %v9266_v52 = vadd.f32 %v9265_v32, %v9264_v9 }
0x210f   :  { %v9694_v13 = vadd.f32 %v9693_v31, %v9692_v40 }
0x2110   :  { %v9707_v4 = vmul.f32 0.01, %v9701_v21  ;;  %v9267_v59 = vrot.slane %v9266_v52, 1 }
0x2111   :  { %v9706_v39 = vmul.f32 0.01, %v9694_v13 }
0x2112   :  { %v9709_v8 = vsub.f32 %v14095_v17, %v9707_v4  ;;  %v9541_v17 = vsel %vm158_vm2, %v14353_v20, 0.0  ;;  %v9268_v21 = vadd.f32 %v9267_v59, %v9266_v52 }
0x2113   :  { %v9708_v16 = vsub.f32 %v14101_v41, %v9706_v39  ;;  %v9542_v41 = vrot.slane %v9541_v17, 4 }
0x2114   :  { %v9759_v25 = vrot.slane %v9709_v8, %v12590_v15  ;;  %v9746_v4 = vmul.f32 0.01, %v9268_v21 }
0x2115   :  { %v9755_v54 = vrot.slane %v9708_v16, %v12590_v15  ;;  %v9543_v35 = vadd.f32 %v9542_v41, %v9541_v17 }
0x21d7   :  { %v9904_v29 = vpop.f32.mrb[122].mxu1 }
0x21d8   :  { %v9905_v53 = vadd.f32 %v9904_v29, %v9759_v25  ;;  %v11960_v23 = vpop.f32.mrb[123].mxu1 }
0x21da   :  { %v9909_v6 = vmax.f32 %v9905_v53, 0.0  ;;  %v9831_v30 = vpop.f32.mrb[122].mxu0 }
0x21db   :  { %v9832_v46 = vadd.f32 %v9831_v30, %v9755_v54  ;;  %v11955_v36 = vpop.f32.mrb[123].mxu0 }
0x21dc   :  { %11981 = vmatmul.mubr.msk.f32.vlgmr.msra.gmra.mrb[124].mxu1 %vm158_vm2, %v9909_v6 }
0x21dd   :  { %v9908_v18 = vmax.f32 %v9832_v46, 0.0  ;;  %12401 = vmatpush3.bf16.msra.mxu1 %v14415_v47  ;;  %12002 = vmatprep.mubr.msk.f32.mxu1 %vm12455_vm10, %v14558_v27  ;;  %v9534_v47 = vsel %vm158_vm2, %v14362_v12, 0.0 }
0x21de   :  { %12402 = vmatprep.subr.bf16.mxu1 %v14557_v49  ;;  %v9535_v34 = vrot.slane %v9534_v47, 4 }
0x21df   :  { %11970 = vmatmul.mubr.msk.f32.vlgmr.msra.gmra.mrb[124].mxu0 %vm158_vm2, %v9908_v18 }
0x21e0   :  { %12395 = vmatpush3.bf16.msra.mxu0 %v14419_v5  ;;  %11991 = vmatprep.mubr.msk.f32.mxu0 %vm12455_vm10, %v14558_v27  ;;  %v9536_v26 = vadd.f32 %v9535_v34, %v9534_v47  ;;  %v9544_v5 = vrot.slane %v9543_v35, 2  ;;  %vm10293_vm10 = vcmask 48128  }
0x21e1   :  { %12396 = vmatprep.subr.bf16.mxu0 %v14557_v49  ;;  %12404 = vmatpush3.bf16.msra.mxu1 %v14423_v24 }
0x21e2   :  { %v9537_v19 = vrot.slane %v9536_v26, 2  ;;  %v9545_v57 = vadd.f32 %v9544_v5, %v9543_v35 }
0x21e4   :  { %12398 = vmatpush3.bf16.msra.mxu0 %v14427_v50  ;;  %v9538_v27 = vadd.f32 %v9537_v19, %v9536_v26  ;;  %v9546_v60 = vrot.slane %v9545_v57, 1 }
0x21e6   :  { %v9539_v49 = vrot.slane %v9538_v27, 1  ;;  %v9547_v48 = vadd.f32 %v9546_v60, %v9545_v57 }
0x21e8   :  { %v9540_v24 = vadd.f32 %v9539_v49, %v9538_v27  ;;  %v9727_v22 = vmul.f32 0.01, %v9547_v48  ;;  %v10265_v49 = vpop.permute.xlu1 %10264  ;;  %v10259_v48 = vpop.permute.xlu0 %10258 }
0x21ea   :  { %v9726_v50 = vmul.f32 0.01, %v9540_v24  ;;  %v9729_v51 = vsub.f32 %v14177_v33, %v9727_v22  ;;  %v9269_v33 = vsel %vm335_vm3, %v14319_v7, 0.0  ;;  %v9748_v7 = vsub.f32 %v14232_v14, %v9746_v4  ;;  %v14591_v22 = vld [vmem:[#allocation8_spill] sm:$0xff] }
0x21ec   :  { %v9728_v20 = vsub.f32 %v14180_v1, %v9726_v50  ;;  %v9919_v56 = vrot.slane %v9729_v51, %v12590_v15  ;;  %v9270_v1 = vrot.slane %v9269_v33, 4  ;;  %v10075_v29 = vrot.slane %v9748_v7, %v12590_v15  ;;  %v10271_v24 = vpop.permute.xlu1 %10270 }
0x21ed   :  { %v10285_v50 = vsel %vm335_vm3, %v14591_v22, %v10259_v48 }
0x21ee   :  { %v9915_v63 = vrot.slane %v9728_v20, %v12590_v15  ;;  %v9271_v44 = vadd.f32 %v9270_v1, %v9269_v33  ;;  %v10287_v51 = vsel %vm10286_vm0, %v10285_v50, %v10265_v49 }
0x21f0   :  { %v9272_v2 = vrot.slane %v9271_v44, 2  ;;  %v10277_v20 = vpop.permute.xlu1 %10276 }
0x21f2   :  { %v9273_v45 = vadd.f32 %v9272_v2, %v9271_v44 }
0x21f4   :  { %v9274_v40 = vrot.slane %v9273_v45, 1 }
0x21f6   :  { %v9275_v31 = vadd.f32 %v9274_v40, %v9273_v45 }
0x21f8   :  { %v9747_v13 = vmul.f32 0.01, %v9275_v31 }
0x21fa   :  { %v9749_v39 = vsub.f32 %v14229_v37, %v9747_v13 }
0x21fc   :  { %v10079_v8 = vrot.slane %v9749_v39, %v12590_v15 }
0x22af   :  { %v10064_v12 = vpop.f32.mrb[124].mxu1 }
0x22b0   :  { %v10065_v28 = vadd.f32 %v10064_v12, %v9919_v56  ;;  %v11982_v58 = vpop.f32.mrb[125].mxu1 }
0x22b2   :  { %v10069_v10 = vmax.f32 %v10065_v28, 0.0  ;;  %v9991_v61 = vpop.f32.mrb[124].mxu0 }
0x22b3   :  { %v9992_v0 = vadd.f32 %v9991_v61, %v9915_v63  ;;  %v11971_v11 = vpop.f32.mrb[125].mxu0 }
0x22b4   :  { %12003 = vmatmul.mubr.msk.f32.vlgmr.msra.gmra.mrb[126].mxu1 %vm158_vm2, %v10069_v10 }
0x22b5   :  { %v10068_v43 = vmax.f32 %v9992_v0, 0.0 }
0x22b7   :  { %11992 = vmatmul.mubr.msk.f32.vlgmr.msra.gmra.mrb[126].mxu0 %vm158_vm2, %v10068_v43  ;;  %vm10288_vm2 = vcmask 23552  }
0x22b8   :  { %v10289_v56 = vsel %vm10288_vm2, %v10287_v51, %v10271_v24 }
0x22b9   :  { %v10290_v12 = vsel %vm64_vm1, %v10289_v56, %v10277_v20 }
0x2387   :  { %v10224_v55 = vpop.f32.mrb[126].mxu1 }
0x2388   :  { %v10225_v16 = vadd.f32 %v10224_v55, %v10079_v8  ;;  %v12004_v25 = vpop.f32.mrb[127].mxu1 }
0x238a   :  { %v10229_v53 = vsub.f32 %v10225_v16, %v14246_v3  ;;  %v10151_v23 = vpop.f32.mrb[126].mxu0 }
0x238b   :  { %v10152_v54 = vadd.f32 %v10151_v23, %v10075_v29  ;;  %v11993_v6 = vpop.f32.mrb[127].mxu0 }
0x238c   :  { %v10231_v30 = vmul.f32 %v10229_v53, %v10229_v53 }
0x238d   :  { %v10228_v46 = vsub.f32 %v10152_v54, %v14253_v62 }
0x238e   :  { %v10241_v36 = vsel %vm335_vm3, %v10231_v30, 0.0 }
0x238f   :  { %v10242_v37 = vrot.slane %v10241_v36, 4  ;;  %v10230_v18 = vmul.f32 %v10228_v46, %v10228_v46 }
0x2391   :  { %v10243_v14 = vadd.f32 %v10242_v37, %v10241_v36  ;;  %v10234_v17 = vsel %vm335_vm3, %v10230_v18, 0.0 }
0x2392   :  { %v10235_v41 = vrot.slane %v10234_v17, 4 }
0x2393   :  { %v10244_v47 = vrot.slane %v10243_v14, 2 }
0x2394   :  { %v10236_v34 = vadd.f32 %v10235_v41, %v10234_v17 }
0x2395   :  { %v10245_v35 = vadd.f32 %v10244_v47, %v10243_v14 }
0x2396   :  { %v10237_v15 = vrot.slane %v10236_v34, 2 }
0x2397   :  { %v10246_v26 = vrot.slane %v10245_v35, 1 }
0x2398   :  { %v10238_v3 = vadd.f32 %v10237_v15, %v10236_v34 }
0x2399   :  { %v10247_v5 = vadd.f32 %v10246_v26, %v10245_v35 }
0x239a   :  { %v10239_v19 = vrot.slane %v10238_v3, 1 }
0x239b   :  { %v10249_v27 = vmul.f32 0.125, %v10247_v5 }
0x239c   :  { %v10240_v57 = vadd.f32 %v10239_v19, %v10238_v3 }
0x239e   :  { %v10248_v60 = vmul.f32 0.125, %v10240_v57 }
0x23a0   :  { %v10281_v62 = vsel %vm10252_vm6, %v10249_v27, %v10248_v60  ;;  %vm10295_vm6 = vcmask 58368  }
0x23a1   :  { %10282 = vrot.lane.b32.xlu1 %v10281_v62, %s12461_s1 }
0x2413   :  { %v10283_v28 = vpop.permute.xlu1 %10282 }
0x2414   :  { %v10292_v58 = vsel %vm10291_vm7, %v10290_v12, %v10283_v28 }
0x2415   :  { %v10294_v63 = vsel %vm10293_vm10, %v10292_v58, 0.0 }
0x2416   :  { %10296 = vst.msk [vmem:[#allocation3] sm:$0x3] %vm10295_vm6, %v10294_v63 }
0x2417   :  { %12441 = shalt.err (!%p12438_p4)
}
0x2418   :  { %s12442_s15 = scalar_lea.hbm %s14522_s10, 32 }
0x2419   :  { %p12443_p5 = scmp.ne.s32.totalorder %s14522_s10, %s12442_s15  ;;  %p12446_p6 = scmp.lt.u32.totalorder %s12442_s15, %s14522_s10 }
0x241b   :  { %p12448_p7 = pnand %p12446_p6, %p12443_p5 }
0x241d   :  { %12451 = shalt.err (!%p12448_p7)
}
0x241e   :  { %10306 = dma.vmem_to_hbm [thread:$0]  %s10304_s12, 32, %s14522_s10, [#allocation4]  }
0x241f   :  { %12452 = dma.done.wait [#allocation4], 32  }
0x2420   :  { %12453 = vsyncadd [#allocation4], 4294967264 }
0x2421   :  { %10310 = vsyncpa [#allocation4], 1 }

</bundles_post_ra>
